<compile_context>
chip_gen: v7x
topology: tpu7x:2x2x1
jax: 0.10.0
libtpu: 0.0.40
codegen_flags: <defaults>
</compile_context>

<pallas_src>
import functools
import math

import jax
import jax.numpy as jnp
from jax.experimental import pallas as pl
from jax.experimental.pallas import tpu as pltpu


# ----------------------------------------------------------------------------
# Fused kernel builder
# ----------------------------------------------------------------------------
def _make_fused_kernel(T, B, layers, num_labels, num_labels_padded):
    """layers: tuple of (d_in, H, bidirectional) per LSTM layer (static)."""
    n_lstm_refs = sum(3 * (2 if bd else 1) for _, _, bd in layers)

    def kernel(*refs):
        x_ref = refs[0]
        lstm_w = refs[1:1 + n_lstm_refs]
        w1_ref, b1_ref, w2_ref, b2_ref = refs[1 + n_lstm_refs:1 + n_lstm_refs + 4]
        out_ref = refs[1 + n_lstm_refs + 4]
        scratch = refs[1 + n_lstm_refs + 5:]

        def run_dir(x_flat, H, wih_ref, whh_ref, b_ref, g_scr, y_scr, col, reverse):
            # Hoisted input projection: one big matmul for all timesteps.
            g_scr[...] = (jnp.dot(x_flat, wih_ref[...],
                                  preferred_element_type=jnp.float32)
                          + b_ref[...]).reshape(T, B, 4 * H)

            def step(i, carry):
                h, c = carry
                t = (T - 1 - i) if reverse else i
                g = g_scr[t] + jnp.dot(h, whh_ref[...],
                                       preferred_element_type=jnp.float32)  # (B, 4H)
                # Full-vreg activations on the EUP; stable sigmoid via tanh.
                sig = 0.5 * (jnp.tanh(0.5 * g) + 1.0)
                th = jnp.tanh(g)
                i_g = sig[:, 0 * H:1 * H]
                f_g = sig[:, 1 * H:2 * H]
                g_g = th[:, 2 * H:3 * H]
                o_g = sig[:, 3 * H:4 * H]
                c_new = f_g * c + i_g * g_g
                h_new = o_g * jnp.tanh(c_new)
                # Write directly into this direction's half of the layer output.
                y_scr[t, :, col:col + H] = h_new
                return h_new, c_new

            zeros = jnp.zeros((B, H), jnp.float32)
            jax.lax.fori_loop(0, T, step, (zeros, zeros), unroll=True)

        # Time-major flattened activations, stay in VMEM across all layers.
        cur = x_ref[...].reshape(T * B, layers[0][0]).astype(jnp.float32)
        wi = 0
        for li, (_d_in, H, bidir) in enumerate(layers):
            g_scr = scratch[2 * li]
            y_scr = scratch[2 * li + 1]
            run_dir(cur, H, lstm_w[wi], lstm_w[wi + 1], lstm_w[wi + 2],
                    g_scr, y_scr, 0, False)
            wi += 3
            if bidir:
                run_dir(cur, H, lstm_w[wi], lstm_w[wi + 1], lstm_w[wi + 2],
                        g_scr, y_scr, H, True)
                wi += 3
            width = H * (2 if bidir else 1)
            cur = y_scr[...].reshape(T * B, width)

        # ---- ClsHead: Linear -> Dropout(id) -> GELU -> Linear -> Softmax ----
        h1 = jnp.dot(cur, w1_ref[...], preferred_element_type=jnp.float32) + b1_ref[...]
        # tanh-approximate GELU (EUP tanh instead of a 5-term erf polynomial)
        h1 = 0.5 * h1 * (1.0 + jnp.tanh(0.7978845608028654
                                        * (h1 + 0.044715 * h1 * h1 * h1)))
        logits = jnp.dot(h1, w2_ref[...], preferred_element_type=jnp.float32) + b2_ref[...]
        # Mask the lane-padding columns so their probability is exactly 0.
        lane = jax.lax.broadcasted_iota(jnp.int32, logits.shape, 1)
        logits = jnp.where(lane < num_labels, logits, -1e30)
        m = jnp.max(logits, axis=-1, keepdims=True)
        e = jnp.exp(logits - m)
        denom = jnp.sum(e, axis=-1, keepdims=True)
        probs = e * pl.reciprocal(denom, approx=True)
        out_ref[...] = probs.reshape(T, B, num_labels_padded)

    return kernel


def _full_spec(shape):
    zeros = (0,) * len(shape)
    return pl.BlockSpec(shape, lambda i, z=zeros: z)


# ----------------------------------------------------------------------------
# Parameter construction (deterministic, PyTorch-style uniform init)
# ----------------------------------------------------------------------------
def _uniform(key, shape, bound):
    return jax.random.uniform(key, shape, jnp.float32, -bound, bound)


def init_params(key, input_dim, hidden_dims, bidirectionals, cls_dims, num_labels):
    params = {"lstm": [], "cls": None}
    d_in = input_dim
    for H, bidir in zip(hidden_dims, bidirectionals):
        bound = 1.0 / math.sqrt(H)
        dirs = []
        for _ in range(2 if bidir else 1):
            key, k1, k2, k3 = jax.random.split(key, 4)
            dirs.append((
                _uniform(k1, (d_in, 4 * H), bound),   # W_ih (stored in x 4H)
                _uniform(k2, (H, 4 * H), bound),      # W_hh
                _uniform(k3, (1, 4 * H), bound),      # combined bias b_ih + b_hh
            ))
        params["lstm"].append(dirs)
        d_in = H * (2 if bidir else 1)

    dims = [d_in] + list(cls_dims) + [num_labels]
    assert len(dims) == 3, "ClsHead kernel supports the default single-hidden config"
    b1b = 1.0 / math.sqrt(dims[0])
    b2b = 1.0 / math.sqrt(dims[1])
    key, a, b, c, d = jax.random.split(key, 5)
    w1 = _uniform(a, (dims[0], dims[1]), b1b)
    bb1 = _uniform(b, (1, dims[1]), b1b)
    w2 = _uniform(c, (dims[1], dims[2]), b2b)
    bb2 = _uniform(d, (1, dims[2]), b2b)
    # Pad the label dim to a lane-dense multiple of 128 (masked in-kernel).
    lp = pl.cdiv(num_labels, 128) * 128
    params["cls"] = (w1, bb1,
                     jnp.pad(w2, ((0, 0), (0, lp - num_labels))),
                     jnp.pad(bb2, ((0, 0), (0, lp - num_labels))))
    return params


# ----------------------------------------------------------------------------
# Baseline forward (single fused pallas_call)
# ----------------------------------------------------------------------------
@functools.partial(jax.jit,
                   static_argnames=("hidden_dims", "bidirectionals", "num_labels"))
def baseline_forward(x, lx, params, *, hidden_dims, bidirectionals, num_labels):
    B, T, D = x.shape
    layers = []
    d_in = D
    for H, bidir in zip(hidden_dims, bidirectionals):
        layers.append((int(d_in), int(H), bool(bidir)))
        d_in = int(H) * (2 if bidir else 1)
    layers = tuple(layers)

    lp = params["cls"][2].shape[1]           # padded label dim (multiple of 128)

    # Single tiny (KB-scale) layout change to time-major for the recurrence.
    x_tm = jnp.transpose(x, (1, 0, 2)).astype(jnp.float32)     # (T, B, D)

    flat_inputs = [x_tm]
    in_specs = [_full_spec(x_tm.shape)]
    for dirs in params["lstm"]:
        for (wih, whh, bias) in dirs:
            for w in (wih, whh, bias):
                flat_inputs.append(w)
                in_specs.append(_full_spec(w.shape))
    for w in params["cls"]:
        flat_inputs.append(w)
        in_specs.append(_full_spec(w.shape))

    scratch_shapes = []
    for (_din, H, bidir) in layers:
        scratch_shapes.append(pltpu.VMEM((T, B, 4 * H), jnp.float32))          # gates
        scratch_shapes.append(pltpu.VMEM((T, B, H * (2 if bidir else 1)),
                                         jnp.float32))                         # layer out

    kernel = _make_fused_kernel(T, B, layers, num_labels, lp)

    out_tm = pl.pallas_call(
        kernel,
        out_shape=jax.ShapeDtypeStruct((T, B, lp), jnp.float32),
        grid_spec=pltpu.PrefetchScalarGridSpec(
            num_scalar_prefetch=0,
            grid=(1,),
            in_specs=in_specs,
            out_specs=_full_spec((T, B, lp)),
            scratch_shapes=scratch_shapes,
        ),
        compiler_params=pltpu.CompilerParams(dimension_semantics=("arbitrary",)),
    )(*flat_inputs)

    probs = jnp.transpose(out_tm[:, :, :num_labels], (1, 0, 2))   # (B, T, L)
    return probs, lx


# ----------------------------------------------------------------------------
# Main
# ----------------------------------------------------------------------------
if __name__ == "__main__":
    # Small config consistent with Baseline(input_dim, lstm_cfgs, cls_cfgs)
    input_dim = 16
    lstm_cfgs = {"hidden_dims": (32, 32), "bidirectionals": (True, True)}
    cls_cfgs = {"dims": [64], "num_labels": 43, "dropout": 0.2}

    B, T = 2, 8
    key = jax.random.PRNGKey(0)
    key, kx, kp = jax.random.split(key, 3)
    x = jax.random.normal(kx, (B, T, input_dim), jnp.float32)
    lx = jnp.full((B,), T, dtype=jnp.int32)

    params = init_params(
        kp,
        input_dim=input_dim,
        hidden_dims=lstm_cfgs["hidden_dims"],
        bidirectionals=lstm_cfgs["bidirectionals"],
        cls_dims=tuple(cls_cfgs["dims"]),
        num_labels=cls_cfgs["num_labels"],
    )

    probs, lx_out = baseline_forward(
        x, lx, params,
        hidden_dims=lstm_cfgs["hidden_dims"],
        bidirectionals=lstm_cfgs["bidirectionals"],
        num_labels=cls_cfgs["num_labels"],
    )
    probs = jax.block_until_ready(probs)
    lx_out = jax.block_until_ready(lx_out)

    assert probs.shape == (B, T, cls_cfgs["num_labels"])
    assert bool(jnp.all(jnp.isfinite(probs)))
    # softmax rows must sum to 1 (approx reciprocal -> slightly relaxed tol)
    assert bool(jnp.allclose(jnp.sum(probs, axis=-1), 1.0, atol=5e-3))
    print("KERNEL_OK")
</pallas_src>

<mosaic_0001>
module attributes {stable_mosaic.version = 11 : i64} {
  func.func @kernel(%arg0: i32, %arg1: memref<8x2x16xf32, #tpu.memory_space<vmem>>, %arg2: memref<16x128xf32, #tpu.memory_space<vmem>>, %arg3: memref<32x128xf32, #tpu.memory_space<vmem>>, %arg4: memref<1x128xf32, #tpu.memory_space<vmem>>, %arg5: memref<16x128xf32, #tpu.memory_space<vmem>>, %arg6: memref<32x128xf32, #tpu.memory_space<vmem>>, %arg7: memref<1x128xf32, #tpu.memory_space<vmem>>, %arg8: memref<64x128xf32, #tpu.memory_space<vmem>>, %arg9: memref<32x128xf32, #tpu.memory_space<vmem>>, %arg10: memref<1x128xf32, #tpu.memory_space<vmem>>, %arg11: memref<64x128xf32, #tpu.memory_space<vmem>>, %arg12: memref<32x128xf32, #tpu.memory_space<vmem>>, %arg13: memref<1x128xf32, #tpu.memory_space<vmem>>, %arg14: memref<64x64xf32, #tpu.memory_space<vmem>>, %arg15: memref<1x64xf32, #tpu.memory_space<vmem>>, %arg16: memref<64x128xf32, #tpu.memory_space<vmem>>, %arg17: memref<1x128xf32, #tpu.memory_space<vmem>>, %arg18: memref<8x2x128xf32, #tpu.memory_space<vmem>>, %arg19: memref<8x2x128xf32, #tpu.memory_space<vmem>>, %arg20: memref<8x2x64xf32, #tpu.memory_space<vmem>>, %arg21: memref<8x2x128xf32, #tpu.memory_space<vmem>>, %arg22: memref<8x2x64xf32, #tpu.memory_space<vmem>>) attributes {dimension_semantics = [#tpu.dimension_semantics<arbitrary>], iteration_bounds = array<i64: 1>, scalar_prefetch = 0 : i64, scratch_operands = 4 : i64, tpu.core_type = #tpu.core_type<tc>, window_params = [{pipeline_mode = #tpu.pipeline_mode<synchronous>, transform_indices = @transform_0, window_bounds = array<i64: 8, 2, 16>}, {pipeline_mode = #tpu.pipeline_mode<synchronous>, transform_indices = @transform_1, window_bounds = array<i64: 16, 128>}, {pipeline_mode = #tpu.pipeline_mode<synchronous>, transform_indices = @transform_2, window_bounds = array<i64: 32, 128>}, {pipeline_mode = #tpu.pipeline_mode<synchronous>, transform_indices = @transform_3, window_bounds = array<i64: 1, 128>}, {pipeline_mode = #tpu.pipeline_mode<synchronous>, transform_indices = @transform_4, window_bounds = array<i64: 16, 128>}, {pipeline_mode = #tpu.pipeline_mode<synchronous>, transform_indices = @transform_5, window_bounds = array<i64: 32, 128>}, {pipeline_mode = #tpu.pipeline_mode<synchronous>, transform_indices = @transform_6, window_bounds = array<i64: 1, 128>}, {pipeline_mode = #tpu.pipeline_mode<synchronous>, transform_indices = @transform_7, window_bounds = array<i64: 64, 128>}, {pipeline_mode = #tpu.pipeline_mode<synchronous>, transform_indices = @transform_8, window_bounds = array<i64: 32, 128>}, {pipeline_mode = #tpu.pipeline_mode<synchronous>, transform_indices = @transform_9, window_bounds = array<i64: 1, 128>}, {pipeline_mode = #tpu.pipeline_mode<synchronous>, transform_indices = @transform_10, window_bounds = array<i64: 64, 128>}, {pipeline_mode = #tpu.pipeline_mode<synchronous>, transform_indices = @transform_11, window_bounds = array<i64: 32, 128>}, {pipeline_mode = #tpu.pipeline_mode<synchronous>, transform_indices = @transform_12, window_bounds = array<i64: 1, 128>}, {pipeline_mode = #tpu.pipeline_mode<synchronous>, transform_indices = @transform_13, window_bounds = array<i64: 64, 64>}, {pipeline_mode = #tpu.pipeline_mode<synchronous>, transform_indices = @transform_14, window_bounds = array<i64: 1, 64>}, {pipeline_mode = #tpu.pipeline_mode<synchronous>, transform_indices = @transform_15, window_bounds = array<i64: 64, 128>}, {pipeline_mode = #tpu.pipeline_mode<synchronous>, transform_indices = @transform_16, window_bounds = array<i64: 1, 128>}, {pipeline_mode = #tpu.pipeline_mode<synchronous>, transform_indices = @transform_17, window_bounds = array<i64: 8, 2, 128>}]} {
    %c0 = arith.constant 0 : index
    %c0_0 = arith.constant 0 : index
    %c0_1 = arith.constant 0 : index
    %0 = vector.load %arg1[%c0, %c0_0, %c0_1] : memref<8x2x16xf32, #tpu.memory_space<vmem>>, vector<8x2x16xf32>
    %1 = vector.shape_cast %0 : vector<8x2x16xf32> to vector<16x16xf32>
    %c0_2 = arith.constant 0 : index
    %c0_3 = arith.constant 0 : index
    %2 = vector.load %arg2[%c0_2, %c0_3] : memref<16x128xf32, #tpu.memory_space<vmem>>, vector<16x128xf32>
    %cst = arith.constant dense<0.000000e+00> : vector<16x128xf32>
    %3 = tpu.matmul %1, %2, %cst {dimension_numbers = #tpu.dot_dimension_numbers<[1], [0], [0], [1], [0, 0, 1, 1], [], []>} : vector<16x16xf32>, vector<16x128xf32>, vector<16x128xf32> -> vector<16x128xf32>
    %c0_4 = arith.constant 0 : index
    %c0_5 = arith.constant 0 : index
    %4 = vector.load %arg4[%c0_4, %c0_5] : memref<1x128xf32, #tpu.memory_space<vmem>>, vector<1x128xf32>
    %5 = vector.broadcast %4 : vector<1x128xf32> to vector<16x128xf32>
    %6 = arith.addf %3, %5 : vector<16x128xf32>
    %7 = vector.shape_cast %6 : vector<16x128xf32> to vector<8x2x128xf32>
    %c0_6 = arith.constant 0 : index
    %c0_7 = arith.constant 0 : index
    %c0_8 = arith.constant 0 : index
    %8 = vector.load %arg19[%c0_6, %c0_7, %c0_8] : memref<8x2x128xf32, #tpu.memory_space<vmem>>, vector<8x2x128xf32>
    tpu.vector_store %arg19[%c0_6, %c0_7, %c0_8], %7 {strides = array<i32>} : memref<8x2x128xf32, #tpu.memory_space<vmem>>, vector<8x2x128xf32>,
    %cst_9 = arith.constant 0.000000e+00 : f32
    %9 = vector.broadcast %cst_9 : f32 to vector<2x32xf32>
    %c0_i32 = arith.constant 0 : i32
    %10 = arith.index_cast %c0_i32 : i32 to index
    %c0_10 = arith.constant 0 : index
    %c0_11 = arith.constant 0 : index
    %11 = vector.load %arg19[%10, %c0_10, %c0_11] : memref<8x2x128xf32, #tpu.memory_space<vmem>>, vector<1x2x128xf32>
    %12 = vector.shape_cast %11 : vector<1x2x128xf32> to vector<2x128xf32>
    %c0_12 = arith.constant 0 : index
    %c0_13 = arith.constant 0 : index
    %13 = vector.load %arg3[%c0_12, %c0_13] : memref<32x128xf32, #tpu.memory_space<vmem>>, vector<32x128xf32>
    %cst_14 = arith.constant dense<0.000000e+00> : vector<2x128xf32>
    %14 = tpu.matmul %9, %13, %cst_14 {dimension_numbers = #tpu.dot_dimension_numbers<[1], [0], [0], [1], [0, 0, 1, 1], [], []>} : vector<2x32xf32>, vector<32x128xf32>, vector<2x128xf32> -> vector<2x128xf32>
    %15 = arith.addf %12, %14 : vector<2x128xf32>
    %cst_15 = arith.constant 5.000000e-01 : f32
    %16 = vector.broadcast %cst_15 : f32 to vector<2x128xf32>
    %17 = arith.mulf %16, %15 : vector<2x128xf32>
    %18 = math.tanh %17 : vector<2x128xf32>
    %cst_16 = arith.constant 1.000000e+00 : f32
    %19 = vector.broadcast %cst_16 : f32 to vector<2x128xf32>
    %20 = arith.addf %18, %19 : vector<2x128xf32>
    %cst_17 = arith.constant 5.000000e-01 : f32
    %21 = vector.broadcast %cst_17 : f32 to vector<2x128xf32>
    %22 = arith.mulf %21, %20 : vector<2x128xf32>
    %23 = math.tanh %15 : vector<2x128xf32>
    %24 = vector.extract_strided_slice %22 {offsets = [0, 0], sizes = [2, 32], strides = [1, 1]} : vector<2x128xf32> to vector<2x32xf32>
    %25 = vector.extract_strided_slice %22 {offsets = [0, 32], sizes = [2, 32], strides = [1, 1]} : vector<2x128xf32> to vector<2x32xf32>
    %26 = vector.extract_strided_slice %23 {offsets = [0, 64], sizes = [2, 32], strides = [1, 1]} : vector<2x128xf32> to vector<2x32xf32>
    %27 = vector.extract_strided_slice %22 {offsets = [0, 96], sizes = [2, 32], strides = [1, 1]} : vector<2x128xf32> to vector<2x32xf32>
    %28 = arith.mulf %25, %9 : vector<2x32xf32>
    %29 = arith.mulf %24, %26 : vector<2x32xf32>
    %30 = arith.addf %28, %29 : vector<2x32xf32>
    %31 = math.tanh %30 : vector<2x32xf32>
    %32 = arith.mulf %27, %31 : vector<2x32xf32>
    %33 = arith.index_cast %c0_i32 : i32 to index
    %c0_18 = arith.constant 0 : index
    %c0_19 = arith.constant 0 : index
    %34 = vector.load %arg20[%33, %c0_18, %c0_19] : memref<8x2x64xf32, #tpu.memory_space<vmem>>, vector<1x2x32xf32>
    %35 = vector.shape_cast %34 : vector<1x2x32xf32> to vector<2x32xf32>
    %36 = vector.shape_cast %32 : vector<2x32xf32> to vector<1x2x32xf32>
    tpu.vector_store %arg20[%33, %c0_18, %c0_19], %36 {strides = array<i32>} : memref<8x2x64xf32, #tpu.memory_space<vmem>>, vector<1x2x32xf32>,
    %c1_i32 = arith.constant 1 : i32
    %37 = arith.index_cast %c1_i32 : i32 to index
    %c0_20 = arith.constant 0 : index
    %c0_21 = arith.constant 0 : index
    %38 = vector.load %arg19[%37, %c0_20, %c0_21] : memref<8x2x128xf32, #tpu.memory_space<vmem>>, vector<1x2x128xf32>
    %39 = vector.shape_cast %38 : vector<1x2x128xf32> to vector<2x128xf32>
    %c0_22 = arith.constant 0 : index
    %c0_23 = arith.constant 0 : index
    %40 = vector.load %arg3[%c0_22, %c0_23] : memref<32x128xf32, #tpu.memory_space<vmem>>, vector<32x128xf32>
    %cst_24 = arith.constant dense<0.000000e+00> : vector<2x128xf32>
    %41 = tpu.matmul %32, %40, %cst_24 {dimension_numbers = #tpu.dot_dimension_numbers<[1], [0], [0], [1], [0, 0, 1, 1], [], []>} : vector<2x32xf32>, vector<32x128xf32>, vector<2x128xf32> -> vector<2x128xf32>
    %42 = arith.addf %39, %41 : vector<2x128xf32>
    %cst_25 = arith.constant 5.000000e-01 : f32
    %43 = vector.broadcast %cst_25 : f32 to vector<2x128xf32>
    %44 = arith.mulf %43, %42 : vector<2x128xf32>
    %45 = math.tanh %44 : vector<2x128xf32>
    %cst_26 = arith.constant 1.000000e+00 : f32
    %46 = vector.broadcast %cst_26 : f32 to vector<2x128xf32>
    %47 = arith.addf %45, %46 : vector<2x128xf32>
    %cst_27 = arith.constant 5.000000e-01 : f32
    %48 = vector.broadcast %cst_27 : f32 to vector<2x128xf32>
    %49 = arith.mulf %48, %47 : vector<2x128xf32>
    %50 = math.tanh %42 : vector<2x128xf32>
    %51 = vector.extract_strided_slice %49 {offsets = [0, 0], sizes = [2, 32], strides = [1, 1]} : vector<2x128xf32> to vector<2x32xf32>
    %52 = vector.extract_strided_slice %49 {offsets = [0, 32], sizes = [2, 32], strides = [1, 1]} : vector<2x128xf32> to vector<2x32xf32>
    %53 = vector.extract_strided_slice %50 {offsets = [0, 64], sizes = [2, 32], strides = [1, 1]} : vector<2x128xf32> to vector<2x32xf32>
    %54 = vector.extract_strided_slice %49 {offsets = [0, 96], sizes = [2, 32], strides = [1, 1]} : vector<2x128xf32> to vector<2x32xf32>
    %55 = arith.mulf %52, %30 : vector<2x32xf32>
    %56 = arith.mulf %51, %53 : vector<2x32xf32>
    %57 = arith.addf %55, %56 : vector<2x32xf32>
    %58 = math.tanh %57 : vector<2x32xf32>
    %59 = arith.mulf %54, %58 : vector<2x32xf32>
    %60 = arith.index_cast %c1_i32 : i32 to index
    %c0_28 = arith.constant 0 : index
    %c0_29 = arith.constant 0 : index
    %61 = vector.load %arg20[%60, %c0_28, %c0_29] : memref<8x2x64xf32, #tpu.memory_space<vmem>>, vector<1x2x32xf32>
    %62 = vector.shape_cast %61 : vector<1x2x32xf32> to vector<2x32xf32>
    %63 = vector.shape_cast %59 : vector<2x32xf32> to vector<1x2x32xf32>
    tpu.vector_store %arg20[%60, %c0_28, %c0_29], %63 {strides = array<i32>} : memref<8x2x64xf32, #tpu.memory_space<vmem>>, vector<1x2x32xf32>,
    %c2_i32 = arith.constant 2 : i32
    %64 = arith.index_cast %c2_i32 : i32 to index
    %c0_30 = arith.constant 0 : index
    %c0_31 = arith.constant 0 : index
    %65 = vector.load %arg19[%64, %c0_30, %c0_31] : memref<8x2x128xf32, #tpu.memory_space<vmem>>, vector<1x2x128xf32>
    %66 = vector.shape_cast %65 : vector<1x2x128xf32> to vector<2x128xf32>
    %c0_32 = arith.constant 0 : index
    %c0_33 = arith.constant 0 : index
    %67 = vector.load %arg3[%c0_32, %c0_33] : memref<32x128xf32, #tpu.memory_space<vmem>>, vector<32x128xf32>
    %cst_34 = arith.constant dense<0.000000e+00> : vector<2x128xf32>
    %68 = tpu.matmul %59, %67, %cst_34 {dimension_numbers = #tpu.dot_dimension_numbers<[1], [0], [0], [1], [0, 0, 1, 1], [], []>} : vector<2x32xf32>, vector<32x128xf32>, vector<2x128xf32> -> vector<2x128xf32>
    %69 = arith.addf %66, %68 : vector<2x128xf32>
    %cst_35 = arith.constant 5.000000e-01 : f32
    %70 = vector.broadcast %cst_35 : f32 to vector<2x128xf32>
    %71 = arith.mulf %70, %69 : vector<2x128xf32>
    %72 = math.tanh %71 : vector<2x128xf32>
    %cst_36 = arith.constant 1.000000e+00 : f32
    %73 = vector.broadcast %cst_36 : f32 to vector<2x128xf32>
    %74 = arith.addf %72, %73 : vector<2x128xf32>
    %cst_37 = arith.constant 5.000000e-01 : f32
    %75 = vector.broadcast %cst_37 : f32 to vector<2x128xf32>
    %76 = arith.mulf %75, %74 : vector<2x128xf32>
    %77 = math.tanh %69 : vector<2x128xf32>
    %78 = vector.extract_strided_slice %76 {offsets = [0, 0], sizes = [2, 32], strides = [1, 1]} : vector<2x128xf32> to vector<2x32xf32>
    %79 = vector.extract_strided_slice %76 {offsets = [0, 32], sizes = [2, 32], strides = [1, 1]} : vector<2x128xf32> to vector<2x32xf32>
    %80 = vector.extract_strided_slice %77 {offsets = [0, 64], sizes = [2, 32], strides = [1, 1]} : vector<2x128xf32> to vector<2x32xf32>
    %81 = vector.extract_strided_slice %76 {offsets = [0, 96], sizes = [2, 32], strides = [1, 1]} : vector<2x128xf32> to vector<2x32xf32>
    %82 = arith.mulf %79, %57 : vector<2x32xf32>
    %83 = arith.mulf %78, %80 : vector<2x32xf32>
    %84 = arith.addf %82, %83 : vector<2x32xf32>
    %85 = math.tanh %84 : vector<2x32xf32>
    %86 = arith.mulf %81, %85 : vector<2x32xf32>
    %87 = arith.index_cast %c2_i32 : i32 to index
    %c0_38 = arith.constant 0 : index
    %c0_39 = arith.constant 0 : index
    %88 = vector.load %arg20[%87, %c0_38, %c0_39] : memref<8x2x64xf32, #tpu.memory_space<vmem>>, vector<1x2x32xf32>
    %89 = vector.shape_cast %88 : vector<1x2x32xf32> to vector<2x32xf32>
    %90 = vector.shape_cast %86 : vector<2x32xf32> to vector<1x2x32xf32>
    tpu.vector_store %arg20[%87, %c0_38, %c0_39], %90 {strides = array<i32>} : memref<8x2x64xf32, #tpu.memory_space<vmem>>, vector<1x2x32xf32>,
    %c3_i32 = arith.constant 3 : i32
    %91 = arith.index_cast %c3_i32 : i32 to index
    %c0_40 = arith.constant 0 : index
    %c0_41 = arith.constant 0 : index
    %92 = vector.load %arg19[%91, %c0_40, %c0_41] : memref<8x2x128xf32, #tpu.memory_space<vmem>>, vector<1x2x128xf32>
    %93 = vector.shape_cast %92 : vector<1x2x128xf32> to vector<2x128xf32>
    %c0_42 = arith.constant 0 : index
    %c0_43 = arith.constant 0 : index
    %94 = vector.load %arg3[%c0_42, %c0_43] : memref<32x128xf32, #tpu.memory_space<vmem>>, vector<32x128xf32>
    %cst_44 = arith.constant dense<0.000000e+00> : vector<2x128xf32>
    %95 = tpu.matmul %86, %94, %cst_44 {dimension_numbers = #tpu.dot_dimension_numbers<[1], [0], [0], [1], [0, 0, 1, 1], [], []>} : vector<2x32xf32>, vector<32x128xf32>, vector<2x128xf32> -> vector<2x128xf32>
    %96 = arith.addf %93, %95 : vector<2x128xf32>
    %cst_45 = arith.constant 5.000000e-01 : f32
    %97 = vector.broadcast %cst_45 : f32 to vector<2x128xf32>
    %98 = arith.mulf %97, %96 : vector<2x128xf32>
    %99 = math.tanh %98 : vector<2x128xf32>
    %cst_46 = arith.constant 1.000000e+00 : f32
    %100 = vector.broadcast %cst_46 : f32 to vector<2x128xf32>
    %101 = arith.addf %99, %100 : vector<2x128xf32>
    %cst_47 = arith.constant 5.000000e-01 : f32
    %102 = vector.broadcast %cst_47 : f32 to vector<2x128xf32>
    %103 = arith.mulf %102, %101 : vector<2x128xf32>
    %104 = math.tanh %96 : vector<2x128xf32>
    %105 = vector.extract_strided_slice %103 {offsets = [0, 0], sizes = [2, 32], strides = [1, 1]} : vector<2x128xf32> to vector<2x32xf32>
    %106 = vector.extract_strided_slice %103 {offsets = [0, 32], sizes = [2, 32], strides = [1, 1]} : vector<2x128xf32> to vector<2x32xf32>
    %107 = vector.extract_strided_slice %104 {offsets = [0, 64], sizes = [2, 32], strides = [1, 1]} : vector<2x128xf32> to vector<2x32xf32>
    %108 = vector.extract_strided_slice %103 {offsets = [0, 96], sizes = [2, 32], strides = [1, 1]} : vector<2x128xf32> to vector<2x32xf32>
    %109 = arith.mulf %106, %84 : vector<2x32xf32>
    %110 = arith.mulf %105, %107 : vector<2x32xf32>
    %111 = arith.addf %109, %110 : vector<2x32xf32>
    %112 = math.tanh %111 : vector<2x32xf32>
    %113 = arith.mulf %108, %112 : vector<2x32xf32>
    %114 = arith.index_cast %c3_i32 : i32 to index
    %c0_48 = arith.constant 0 : index
    %c0_49 = arith.constant 0 : index
    %115 = vector.load %arg20[%114, %c0_48, %c0_49] : memref<8x2x64xf32, #tpu.memory_space<vmem>>, vector<1x2x32xf32>
    %116 = vector.shape_cast %115 : vector<1x2x32xf32> to vector<2x32xf32>
    %117 = vector.shape_cast %113 : vector<2x32xf32> to vector<1x2x32xf32>
    tpu.vector_store %arg20[%114, %c0_48, %c0_49], %117 {strides = array<i32>} : memref<8x2x64xf32, #tpu.memory_space<vmem>>, vector<1x2x32xf32>,
    %c4_i32 = arith.constant 4 : i32
    %118 = arith.index_cast %c4_i32 : i32 to index
    %c0_50 = arith.constant 0 : index
    %c0_51 = arith.constant 0 : index
    %119 = vector.load %arg19[%118, %c0_50, %c0_51] : memref<8x2x128xf32, #tpu.memory_space<vmem>>, vector<1x2x128xf32>
    %120 = vector.shape_cast %119 : vector<1x2x128xf32> to vector<2x128xf32>
    %c0_52 = arith.constant 0 : index
    %c0_53 = arith.constant 0 : index
    %121 = vector.load %arg3[%c0_52, %c0_53] : memref<32x128xf32, #tpu.memory_space<vmem>>, vector<32x128xf32>
    %cst_54 = arith.constant dense<0.000000e+00> : vector<2x128xf32>
    %122 = tpu.matmul %113, %121, %cst_54 {dimension_numbers = #tpu.dot_dimension_numbers<[1], [0], [0], [1], [0, 0, 1, 1], [], []>} : vector<2x32xf32>, vector<32x128xf32>, vector<2x128xf32> -> vector<2x128xf32>
    %123 = arith.addf %120, %122 : vector<2x128xf32>
    %cst_55 = arith.constant 5.000000e-01 : f32
    %124 = vector.broadcast %cst_55 : f32 to vector<2x128xf32>
    %125 = arith.mulf %124, %123 : vector<2x128xf32>
    %126 = math.tanh %125 : vector<2x128xf32>
    %cst_56 = arith.constant 1.000000e+00 : f32
    %127 = vector.broadcast %cst_56 : f32 to vector<2x128xf32>
    %128 = arith.addf %126, %127 : vector<2x128xf32>
    %cst_57 = arith.constant 5.000000e-01 : f32
    %129 = vector.broadcast %cst_57 : f32 to vector<2x128xf32>
    %130 = arith.mulf %129, %128 : vector<2x128xf32>
    %131 = math.tanh %123 : vector<2x128xf32>
    %132 = vector.extract_strided_slice %130 {offsets = [0, 0], sizes = [2, 32], strides = [1, 1]} : vector<2x128xf32> to vector<2x32xf32>
    %133 = vector.extract_strided_slice %130 {offsets = [0, 32], sizes = [2, 32], strides = [1, 1]} : vector<2x128xf32> to vector<2x32xf32>
    %134 = vector.extract_strided_slice %131 {offsets = [0, 64], sizes = [2, 32], strides = [1, 1]} : vector<2x128xf32> to vector<2x32xf32>
    %135 = vector.extract_strided_slice %130 {offsets = [0, 96], sizes = [2, 32], strides = [1, 1]} : vector<2x128xf32> to vector<2x32xf32>
    %136 = arith.mulf %133, %111 : vector<2x32xf32>
    %137 = arith.mulf %132, %134 : vector<2x32xf32>
    %138 = arith.addf %136, %137 : vector<2x32xf32>
    %139 = math.tanh %138 : vector<2x32xf32>
    %140 = arith.mulf %135, %139 : vector<2x32xf32>
    %141 = arith.index_cast %c4_i32 : i32 to index
    %c0_58 = arith.constant 0 : index
    %c0_59 = arith.constant 0 : index
    %142 = vector.load %arg20[%141, %c0_58, %c0_59] : memref<8x2x64xf32, #tpu.memory_space<vmem>>, vector<1x2x32xf32>
    %143 = vector.shape_cast %142 : vector<1x2x32xf32> to vector<2x32xf32>
    %144 = vector.shape_cast %140 : vector<2x32xf32> to vector<1x2x32xf32>
    tpu.vector_store %arg20[%141, %c0_58, %c0_59], %144 {strides = array<i32>} : memref<8x2x64xf32, #tpu.memory_space<vmem>>, vector<1x2x32xf32>,
    %c5_i32 = arith.constant 5 : i32
    %145 = arith.index_cast %c5_i32 : i32 to index
    %c0_60 = arith.constant 0 : index
    %c0_61 = arith.constant 0 : index
    %146 = vector.load %arg19[%145, %c0_60, %c0_61] : memref<8x2x128xf32, #tpu.memory_space<vmem>>, vector<1x2x128xf32>
    %147 = vector.shape_cast %146 : vector<1x2x128xf32> to vector<2x128xf32>
    %c0_62 = arith.constant 0 : index
    %c0_63 = arith.constant 0 : index
    %148 = vector.load %arg3[%c0_62, %c0_63] : memref<32x128xf32, #tpu.memory_space<vmem>>, vector<32x128xf32>
    %cst_64 = arith.constant dense<0.000000e+00> : vector<2x128xf32>
    %149 = tpu.matmul %140, %148, %cst_64 {dimension_numbers = #tpu.dot_dimension_numbers<[1], [0], [0], [1], [0, 0, 1, 1], [], []>} : vector<2x32xf32>, vector<32x128xf32>, vector<2x128xf32> -> vector<2x128xf32>
    %150 = arith.addf %147, %149 : vector<2x128xf32>
    %cst_65 = arith.constant 5.000000e-01 : f32
    %151 = vector.broadcast %cst_65 : f32 to vector<2x128xf32>
    %152 = arith.mulf %151, %150 : vector<2x128xf32>
    %153 = math.tanh %152 : vector<2x128xf32>
    %cst_66 = arith.constant 1.000000e+00 : f32
    %154 = vector.broadcast %cst_66 : f32 to vector<2x128xf32>
    %155 = arith.addf %153, %154 : vector<2x128xf32>
    %cst_67 = arith.constant 5.000000e-01 : f32
    %156 = vector.broadcast %cst_67 : f32 to vector<2x128xf32>
    %157 = arith.mulf %156, %155 : vector<2x128xf32>
    %158 = math.tanh %150 : vector<2x128xf32>
    %159 = vector.extract_strided_slice %157 {offsets = [0, 0], sizes = [2, 32], strides = [1, 1]} : vector<2x128xf32> to vector<2x32xf32>
    %160 = vector.extract_strided_slice %157 {offsets = [0, 32], sizes = [2, 32], strides = [1, 1]} : vector<2x128xf32> to vector<2x32xf32>
    %161 = vector.extract_strided_slice %158 {offsets = [0, 64], sizes = [2, 32], strides = [1, 1]} : vector<2x128xf32> to vector<2x32xf32>
    %162 = vector.extract_strided_slice %157 {offsets = [0, 96], sizes = [2, 32], strides = [1, 1]} : vector<2x128xf32> to vector<2x32xf32>
    %163 = arith.mulf %160, %138 : vector<2x32xf32>
    %164 = arith.mulf %159, %161 : vector<2x32xf32>
    %165 = arith.addf %163, %164 : vector<2x32xf32>
    %166 = math.tanh %165 : vector<2x32xf32>
    %167 = arith.mulf %162, %166 : vector<2x32xf32>
    %168 = arith.index_cast %c5_i32 : i32 to index
    %c0_68 = arith.constant 0 : index
    %c0_69 = arith.constant 0 : index
    %169 = vector.load %arg20[%168, %c0_68, %c0_69] : memref<8x2x64xf32, #tpu.memory_space<vmem>>, vector<1x2x32xf32>
    %170 = vector.shape_cast %169 : vector<1x2x32xf32> to vector<2x32xf32>
    %171 = vector.shape_cast %167 : vector<2x32xf32> to vector<1x2x32xf32>
    tpu.vector_store %arg20[%168, %c0_68, %c0_69], %171 {strides = array<i32>} : memref<8x2x64xf32, #tpu.memory_space<vmem>>, vector<1x2x32xf32>,
    %c6_i32 = arith.constant 6 : i32
    %172 = arith.index_cast %c6_i32 : i32 to index
    %c0_70 = arith.constant 0 : index
    %c0_71 = arith.constant 0 : index
    %173 = vector.load %arg19[%172, %c0_70, %c0_71] : memref<8x2x128xf32, #tpu.memory_space<vmem>>, vector<1x2x128xf32>
    %174 = vector.shape_cast %173 : vector<1x2x128xf32> to vector<2x128xf32>
    %c0_72 = arith.constant 0 : index
    %c0_73 = arith.constant 0 : index
    %175 = vector.load %arg3[%c0_72, %c0_73] : memref<32x128xf32, #tpu.memory_space<vmem>>, vector<32x128xf32>
    %cst_74 = arith.constant dense<0.000000e+00> : vector<2x128xf32>
    %176 = tpu.matmul %167, %175, %cst_74 {dimension_numbers = #tpu.dot_dimension_numbers<[1], [0], [0], [1], [0, 0, 1, 1], [], []>} : vector<2x32xf32>, vector<32x128xf32>, vector<2x128xf32> -> vector<2x128xf32>
    %177 = arith.addf %174, %176 : vector<2x128xf32>
    %cst_75 = arith.constant 5.000000e-01 : f32
    %178 = vector.broadcast %cst_75 : f32 to vector<2x128xf32>
    %179 = arith.mulf %178, %177 : vector<2x128xf32>
    %180 = math.tanh %179 : vector<2x128xf32>
    %cst_76 = arith.constant 1.000000e+00 : f32
    %181 = vector.broadcast %cst_76 : f32 to vector<2x128xf32>
    %182 = arith.addf %180, %181 : vector<2x128xf32>
    %cst_77 = arith.constant 5.000000e-01 : f32
    %183 = vector.broadcast %cst_77 : f32 to vector<2x128xf32>
    %184 = arith.mulf %183, %182 : vector<2x128xf32>
    %185 = math.tanh %177 : vector<2x128xf32>
    %186 = vector.extract_strided_slice %184 {offsets = [0, 0], sizes = [2, 32], strides = [1, 1]} : vector<2x128xf32> to vector<2x32xf32>
    %187 = vector.extract_strided_slice %184 {offsets = [0, 32], sizes = [2, 32], strides = [1, 1]} : vector<2x128xf32> to vector<2x32xf32>
    %188 = vector.extract_strided_slice %185 {offsets = [0, 64], sizes = [2, 32], strides = [1, 1]} : vector<2x128xf32> to vector<2x32xf32>
    %189 = vector.extract_strided_slice %184 {offsets = [0, 96], sizes = [2, 32], strides = [1, 1]} : vector<2x128xf32> to vector<2x32xf32>
    %190 = arith.mulf %187, %165 : vector<2x32xf32>
    %191 = arith.mulf %186, %188 : vector<2x32xf32>
    %192 = arith.addf %190, %191 : vector<2x32xf32>
    %193 = math.tanh %192 : vector<2x32xf32>
    %194 = arith.mulf %189, %193 : vector<2x32xf32>
    %195 = arith.index_cast %c6_i32 : i32 to index
    %c0_78 = arith.constant 0 : index
    %c0_79 = arith.constant 0 : index
    %196 = vector.load %arg20[%195, %c0_78, %c0_79] : memref<8x2x64xf32, #tpu.memory_space<vmem>>, vector<1x2x32xf32>
    %197 = vector.shape_cast %196 : vector<1x2x32xf32> to vector<2x32xf32>
    %198 = vector.shape_cast %194 : vector<2x32xf32> to vector<1x2x32xf32>
    tpu.vector_store %arg20[%195, %c0_78, %c0_79], %198 {strides = array<i32>} : memref<8x2x64xf32, #tpu.memory_space<vmem>>, vector<1x2x32xf32>,
    %c7_i32 = arith.constant 7 : i32
    %199 = arith.index_cast %c7_i32 : i32 to index
    %c0_80 = arith.constant 0 : index
    %c0_81 = arith.constant 0 : index
    %200 = vector.load %arg19[%199, %c0_80, %c0_81] : memref<8x2x128xf32, #tpu.memory_space<vmem>>, vector<1x2x128xf32>
    %201 = vector.shape_cast %200 : vector<1x2x128xf32> to vector<2x128xf32>
    %c0_82 = arith.constant 0 : index
    %c0_83 = arith.constant 0 : index
    %202 = vector.load %arg3[%c0_82, %c0_83] : memref<32x128xf32, #tpu.memory_space<vmem>>, vector<32x128xf32>
    %cst_84 = arith.constant dense<0.000000e+00> : vector<2x128xf32>
    %203 = tpu.matmul %194, %202, %cst_84 {dimension_numbers = #tpu.dot_dimension_numbers<[1], [0], [0], [1], [0, 0, 1, 1], [], []>} : vector<2x32xf32>, vector<32x128xf32>, vector<2x128xf32> -> vector<2x128xf32>
    %204 = arith.addf %201, %203 : vector<2x128xf32>
    %cst_85 = arith.constant 5.000000e-01 : f32
    %205 = vector.broadcast %cst_85 : f32 to vector<2x128xf32>
    %206 = arith.mulf %205, %204 : vector<2x128xf32>
    %207 = math.tanh %206 : vector<2x128xf32>
    %cst_86 = arith.constant 1.000000e+00 : f32
    %208 = vector.broadcast %cst_86 : f32 to vector<2x128xf32>
    %209 = arith.addf %207, %208 : vector<2x128xf32>
    %cst_87 = arith.constant 5.000000e-01 : f32
    %210 = vector.broadcast %cst_87 : f32 to vector<2x128xf32>
    %211 = arith.mulf %210, %209 : vector<2x128xf32>
    %212 = math.tanh %204 : vector<2x128xf32>
    %213 = vector.extract_strided_slice %211 {offsets = [0, 0], sizes = [2, 32], strides = [1, 1]} : vector<2x128xf32> to vector<2x32xf32>
    %214 = vector.extract_strided_slice %211 {offsets = [0, 32], sizes = [2, 32], strides = [1, 1]} : vector<2x128xf32> to vector<2x32xf32>
    %215 = vector.extract_strided_slice %212 {offsets = [0, 64], sizes = [2, 32], strides = [1, 1]} : vector<2x128xf32> to vector<2x32xf32>
    %216 = vector.extract_strided_slice %211 {offsets = [0, 96], sizes = [2, 32], strides = [1, 1]} : vector<2x128xf32> to vector<2x32xf32>
    %217 = arith.mulf %214, %192 : vector<2x32xf32>
    %218 = arith.mulf %213, %215 : vector<2x32xf32>
    %219 = arith.addf %217, %218 : vector<2x32xf32>
    %220 = math.tanh %219 : vector<2x32xf32>
    %221 = arith.mulf %216, %220 : vector<2x32xf32>
    %222 = arith.index_cast %c7_i32 : i32 to index
    %c0_88 = arith.constant 0 : index
    %c0_89 = arith.constant 0 : index
    %223 = vector.load %arg20[%222, %c0_88, %c0_89] : memref<8x2x64xf32, #tpu.memory_space<vmem>>, vector<1x2x32xf32>
    %224 = vector.shape_cast %223 : vector<1x2x32xf32> to vector<2x32xf32>
    %225 = vector.shape_cast %221 : vector<2x32xf32> to vector<1x2x32xf32>
    tpu.vector_store %arg20[%222, %c0_88, %c0_89], %225 {strides = array<i32>} : memref<8x2x64xf32, #tpu.memory_space<vmem>>, vector<1x2x32xf32>,
    %c8_i32 = arith.constant 8 : i32
    %c0_90 = arith.constant 0 : index
    %c0_91 = arith.constant 0 : index
    %226 = vector.load %arg5[%c0_90, %c0_91] : memref<16x128xf32, #tpu.memory_space<vmem>>, vector<16x128xf32>
    %cst_92 = arith.constant dense<0.000000e+00> : vector<16x128xf32>
    %227 = tpu.matmul %1, %226, %cst_92 {dimension_numbers = #tpu.dot_dimension_numbers<[1], [0], [0], [1], [0, 0, 1, 1], [], []>} : vector<16x16xf32>, vector<16x128xf32>, vector<16x128xf32> -> vector<16x128xf32>
    %c0_93 = arith.constant 0 : index
    %c0_94 = arith.constant 0 : index
    %228 = vector.load %arg7[%c0_93, %c0_94] : memref<1x128xf32, #tpu.memory_space<vmem>>, vector<1x128xf32>
    %229 = vector.broadcast %228 : vector<1x128xf32> to vector<16x128xf32>
    %230 = arith.addf %227, %229 : vector<16x128xf32>
    %231 = vector.shape_cast %230 : vector<16x128xf32> to vector<8x2x128xf32>
    %c0_95 = arith.constant 0 : index
    %c0_96 = arith.constant 0 : index
    %c0_97 = arith.constant 0 : index
    %232 = vector.load %arg19[%c0_95, %c0_96, %c0_97] : memref<8x2x128xf32, #tpu.memory_space<vmem>>, vector<8x2x128xf32>
    tpu.vector_store %arg19[%c0_95, %c0_96, %c0_97], %231 {strides = array<i32>} : memref<8x2x128xf32, #tpu.memory_space<vmem>>, vector<8x2x128xf32>,
    %cst_98 = arith.constant 0.000000e+00 : f32
    %233 = vector.broadcast %cst_98 : f32 to vector<2x32xf32>
    %c0_i32_99 = arith.constant 0 : i32
    %c7_i32_100 = arith.constant 7 : i32
    %234 = arith.subi %c7_i32_100, %c0_i32_99 : i32
    %235 = arith.index_cast %234 : i32 to index
    %c0_101 = arith.constant 0 : index
    %c0_102 = arith.constant 0 : index
    %236 = vector.load %arg19[%235, %c0_101, %c0_102] : memref<8x2x128xf32, #tpu.memory_space<vmem>>, vector<1x2x128xf32>
    %237 = vector.shape_cast %236 : vector<1x2x128xf32> to vector<2x128xf32>
    %c0_103 = arith.constant 0 : index
    %c0_104 = arith.constant 0 : index
    %238 = vector.load %arg6[%c0_103, %c0_104] : memref<32x128xf32, #tpu.memory_space<vmem>>, vector<32x128xf32>
    %cst_105 = arith.constant dense<0.000000e+00> : vector<2x128xf32>
    %239 = tpu.matmul %233, %238, %cst_105 {dimension_numbers = #tpu.dot_dimension_numbers<[1], [0], [0], [1], [0, 0, 1, 1], [], []>} : vector<2x32xf32>, vector<32x128xf32>, vector<2x128xf32> -> vector<2x128xf32>
    %240 = arith.addf %237, %239 : vector<2x128xf32>
    %cst_106 = arith.constant 5.000000e-01 : f32
    %241 = vector.broadcast %cst_106 : f32 to vector<2x128xf32>
    %242 = arith.mulf %241, %240 : vector<2x128xf32>
    %243 = math.tanh %242 : vector<2x128xf32>
    %cst_107 = arith.constant 1.000000e+00 : f32
    %244 = vector.broadcast %cst_107 : f32 to vector<2x128xf32>
    %245 = arith.addf %243, %244 : vector<2x128xf32>
    %cst_108 = arith.constant 5.000000e-01 : f32
    %246 = vector.broadcast %cst_108 : f32 to vector<2x128xf32>
    %247 = arith.mulf %246, %245 : vector<2x128xf32>
    %248 = math.tanh %240 : vector<2x128xf32>
    %249 = vector.extract_strided_slice %247 {offsets = [0, 0], sizes = [2, 32], strides = [1, 1]} : vector<2x128xf32> to vector<2x32xf32>
    %250 = vector.extract_strided_slice %247 {offsets = [0, 32], sizes = [2, 32], strides = [1, 1]} : vector<2x128xf32> to vector<2x32xf32>
    %251 = vector.extract_strided_slice %248 {offsets = [0, 64], sizes = [2, 32], strides = [1, 1]} : vector<2x128xf32> to vector<2x32xf32>
    %252 = vector.extract_strided_slice %247 {offsets = [0, 96], sizes = [2, 32], strides = [1, 1]} : vector<2x128xf32> to vector<2x32xf32>
    %253 = arith.mulf %250, %233 : vector<2x32xf32>
    %254 = arith.mulf %249, %251 : vector<2x32xf32>
    %255 = arith.addf %253, %254 : vector<2x32xf32>
    %256 = math.tanh %255 : vector<2x32xf32>
    %257 = arith.mulf %252, %256 : vector<2x32xf32>
    %258 = arith.index_cast %234 : i32 to index
    %c0_109 = arith.constant 0 : index
    %c32 = arith.constant 32 : index
    %259 = vector.load %arg20[%258, %c0_109, %c32] : memref<8x2x64xf32, #tpu.memory_space<vmem>>, vector<1x2x32xf32>
    %260 = vector.shape_cast %259 : vector<1x2x32xf32> to vector<2x32xf32>
    %261 = vector.shape_cast %257 : vector<2x32xf32> to vector<1x2x32xf32>
    tpu.vector_store %arg20[%258, %c0_109, %c32], %261 {strides = array<i32>} : memref<8x2x64xf32, #tpu.memory_space<vmem>>, vector<1x2x32xf32>,
    %c1_i32_110 = arith.constant 1 : i32
    %c7_i32_111 = arith.constant 7 : i32
    %262 = arith.subi %c7_i32_111, %c1_i32_110 : i32
    %263 = arith.index_cast %262 : i32 to index
    %c0_112 = arith.constant 0 : index
    %c0_113 = arith.constant 0 : index
    %264 = vector.load %arg19[%263, %c0_112, %c0_113] : memref<8x2x128xf32, #tpu.memory_space<vmem>>, vector<1x2x128xf32>
    %265 = vector.shape_cast %264 : vector<1x2x128xf32> to vector<2x128xf32>
    %c0_114 = arith.constant 0 : index
    %c0_115 = arith.constant 0 : index
    %266 = vector.load %arg6[%c0_114, %c0_115] : memref<32x128xf32, #tpu.memory_space<vmem>>, vector<32x128xf32>
    %cst_116 = arith.constant dense<0.000000e+00> : vector<2x128xf32>
    %267 = tpu.matmul %257, %266, %cst_116 {dimension_numbers = #tpu.dot_dimension_numbers<[1], [0], [0], [1], [0, 0, 1, 1], [], []>} : vector<2x32xf32>, vector<32x128xf32>, vector<2x128xf32> -> vector<2x128xf32>
    %268 = arith.addf %265, %267 : vector<2x128xf32>
    %cst_117 = arith.constant 5.000000e-01 : f32
    %269 = vector.broadcast %cst_117 : f32 to vector<2x128xf32>
    %270 = arith.mulf %269, %268 : vector<2x128xf32>
    %271 = math.tanh %270 : vector<2x128xf32>
    %cst_118 = arith.constant 1.000000e+00 : f32
    %272 = vector.broadcast %cst_118 : f32 to vector<2x128xf32>
    %273 = arith.addf %271, %272 : vector<2x128xf32>
    %cst_119 = arith.constant 5.000000e-01 : f32
    %274 = vector.broadcast %cst_119 : f32 to vector<2x128xf32>
    %275 = arith.mulf %274, %273 : vector<2x128xf32>
    %276 = math.tanh %268 : vector<2x128xf32>
    %277 = vector.extract_strided_slice %275 {offsets = [0, 0], sizes = [2, 32], strides = [1, 1]} : vector<2x128xf32> to vector<2x32xf32>
    %278 = vector.extract_strided_slice %275 {offsets = [0, 32], sizes = [2, 32], strides = [1, 1]} : vector<2x128xf32> to vector<2x32xf32>
    %279 = vector.extract_strided_slice %276 {offsets = [0, 64], sizes = [2, 32], strides = [1, 1]} : vector<2x128xf32> to vector<2x32xf32>
    %280 = vector.extract_strided_slice %275 {offsets = [0, 96], sizes = [2, 32], strides = [1, 1]} : vector<2x128xf32> to vector<2x32xf32>
    %281 = arith.mulf %278, %255 : vector<2x32xf32>
    %282 = arith.mulf %277, %279 : vector<2x32xf32>
    %283 = arith.addf %281, %282 : vector<2x32xf32>
    %284 = math.tanh %283 : vector<2x32xf32>
    %285 = arith.mulf %280, %284 : vector<2x32xf32>
    %286 = arith.index_cast %262 : i32 to index
    %c0_120 = arith.constant 0 : index
    %c32_121 = arith.constant 32 : index
    %287 = vector.load %arg20[%286, %c0_120, %c32_121] : memref<8x2x64xf32, #tpu.memory_space<vmem>>, vector<1x2x32xf32>
    %288 = vector.shape_cast %287 : vector<1x2x32xf32> to vector<2x32xf32>
    %289 = vector.shape_cast %285 : vector<2x32xf32> to vector<1x2x32xf32>
    tpu.vector_store %arg20[%286, %c0_120, %c32_121], %289 {strides = array<i32>} : memref<8x2x64xf32, #tpu.memory_space<vmem>>, vector<1x2x32xf32>,
    %c2_i32_122 = arith.constant 2 : i32
    %c7_i32_123 = arith.constant 7 : i32
    %290 = arith.subi %c7_i32_123, %c2_i32_122 : i32
    %291 = arith.index_cast %290 : i32 to index
    %c0_124 = arith.constant 0 : index
    %c0_125 = arith.constant 0 : index
    %292 = vector.load %arg19[%291, %c0_124, %c0_125] : memref<8x2x128xf32, #tpu.memory_space<vmem>>, vector<1x2x128xf32>
    %293 = vector.shape_cast %292 : vector<1x2x128xf32> to vector<2x128xf32>
    %c0_126 = arith.constant 0 : index
    %c0_127 = arith.constant 0 : index
    %294 = vector.load %arg6[%c0_126, %c0_127] : memref<32x128xf32, #tpu.memory_space<vmem>>, vector<32x128xf32>
    %cst_128 = arith.constant dense<0.000000e+00> : vector<2x128xf32>
    %295 = tpu.matmul %285, %294, %cst_128 {dimension_numbers = #tpu.dot_dimension_numbers<[1], [0], [0], [1], [0, 0, 1, 1], [], []>} : vector<2x32xf32>, vector<32x128xf32>, vector<2x128xf32> -> vector<2x128xf32>
    %296 = arith.addf %293, %295 : vector<2x128xf32>
    %cst_129 = arith.constant 5.000000e-01 : f32
    %297 = vector.broadcast %cst_129 : f32 to vector<2x128xf32>
    %298 = arith.mulf %297, %296 : vector<2x128xf32>
    %299 = math.tanh %298 : vector<2x128xf32>
    %cst_130 = arith.constant 1.000000e+00 : f32
    %300 = vector.broadcast %cst_130 : f32 to vector<2x128xf32>
    %301 = arith.addf %299, %300 : vector<2x128xf32>
    %cst_131 = arith.constant 5.000000e-01 : f32
    %302 = vector.broadcast %cst_131 : f32 to vector<2x128xf32>
    %303 = arith.mulf %302, %301 : vector<2x128xf32>
    %304 = math.tanh %296 : vector<2x128xf32>
    %305 = vector.extract_strided_slice %303 {offsets = [0, 0], sizes = [2, 32], strides = [1, 1]} : vector<2x128xf32> to vector<2x32xf32>
    %306 = vector.extract_strided_slice %303 {offsets = [0, 32], sizes = [2, 32], strides = [1, 1]} : vector<2x128xf32> to vector<2x32xf32>
    %307 = vector.extract_strided_slice %304 {offsets = [0, 64], sizes = [2, 32], strides = [1, 1]} : vector<2x128xf32> to vector<2x32xf32>
    %308 = vector.extract_strided_slice %303 {offsets = [0, 96], sizes = [2, 32], strides = [1, 1]} : vector<2x128xf32> to vector<2x32xf32>
    %309 = arith.mulf %306, %283 : vector<2x32xf32>
    %310 = arith.mulf %305, %307 : vector<2x32xf32>
    %311 = arith.addf %309, %310 : vector<2x32xf32>
    %312 = math.tanh %311 : vector<2x32xf32>
    %313 = arith.mulf %308, %312 : vector<2x32xf32>
    %314 = arith.index_cast %290 : i32 to index
    %c0_132 = arith.constant 0 : index
    %c32_133 = arith.constant 32 : index
    %315 = vector.load %arg20[%314, %c0_132, %c32_133] : memref<8x2x64xf32, #tpu.memory_space<vmem>>, vector<1x2x32xf32>
    %316 = vector.shape_cast %315 : vector<1x2x32xf32> to vector<2x32xf32>
    %317 = vector.shape_cast %313 : vector<2x32xf32> to vector<1x2x32xf32>
    tpu.vector_store %arg20[%314, %c0_132, %c32_133], %317 {strides = array<i32>} : memref<8x2x64xf32, #tpu.memory_space<vmem>>, vector<1x2x32xf32>,
    %c3_i32_134 = arith.constant 3 : i32
    %c7_i32_135 = arith.constant 7 : i32
    %318 = arith.subi %c7_i32_135, %c3_i32_134 : i32
    %319 = arith.index_cast %318 : i32 to index
    %c0_136 = arith.constant 0 : index
    %c0_137 = arith.constant 0 : index
    %320 = vector.load %arg19[%319, %c0_136, %c0_137] : memref<8x2x128xf32, #tpu.memory_space<vmem>>, vector<1x2x128xf32>
    %321 = vector.shape_cast %320 : vector<1x2x128xf32> to vector<2x128xf32>
    %c0_138 = arith.constant 0 : index
    %c0_139 = arith.constant 0 : index
    %322 = vector.load %arg6[%c0_138, %c0_139] : memref<32x128xf32, #tpu.memory_space<vmem>>, vector<32x128xf32>
    %cst_140 = arith.constant dense<0.000000e+00> : vector<2x128xf32>
    %323 = tpu.matmul %313, %322, %cst_140 {dimension_numbers = #tpu.dot_dimension_numbers<[1], [0], [0], [1], [0, 0, 1, 1], [], []>} : vector<2x32xf32>, vector<32x128xf32>, vector<2x128xf32> -> vector<2x128xf32>
    %324 = arith.addf %321, %323 : vector<2x128xf32>
    %cst_141 = arith.constant 5.000000e-01 : f32
    %325 = vector.broadcast %cst_141 : f32 to vector<2x128xf32>
    %326 = arith.mulf %325, %324 : vector<2x128xf32>
    %327 = math.tanh %326 : vector<2x128xf32>
    %cst_142 = arith.constant 1.000000e+00 : f32
    %328 = vector.broadcast %cst_142 : f32 to vector<2x128xf32>
    %329 = arith.addf %327, %328 : vector<2x128xf32>
    %cst_143 = arith.constant 5.000000e-01 : f32
    %330 = vector.broadcast %cst_143 : f32 to vector<2x128xf32>
    %331 = arith.mulf %330, %329 : vector<2x128xf32>
    %332 = math.tanh %324 : vector<2x128xf32>
    %333 = vector.extract_strided_slice %331 {offsets = [0, 0], sizes = [2, 32], strides = [1, 1]} : vector<2x128xf32> to vector<2x32xf32>
    %334 = vector.extract_strided_slice %331 {offsets = [0, 32], sizes = [2, 32], strides = [1, 1]} : vector<2x128xf32> to vector<2x32xf32>
    %335 = vector.extract_strided_slice %332 {offsets = [0, 64], sizes = [2, 32], strides = [1, 1]} : vector<2x128xf32> to vector<2x32xf32>
    %336 = vector.extract_strided_slice %331 {offsets = [0, 96], sizes = [2, 32], strides = [1, 1]} : vector<2x128xf32> to vector<2x32xf32>
    %337 = arith.mulf %334, %311 : vector<2x32xf32>
    %338 = arith.mulf %333, %335 : vector<2x32xf32>
    %339 = arith.addf %337, %338 : vector<2x32xf32>
    %340 = math.tanh %339 : vector<2x32xf32>
    %341 = arith.mulf %336, %340 : vector<2x32xf32>
    %342 = arith.index_cast %318 : i32 to index
    %c0_144 = arith.constant 0 : index
    %c32_145 = arith.constant 32 : index
    %343 = vector.load %arg20[%342, %c0_144, %c32_145] : memref<8x2x64xf32, #tpu.memory_space<vmem>>, vector<1x2x32xf32>
    %344 = vector.shape_cast %343 : vector<1x2x32xf32> to vector<2x32xf32>
    %345 = vector.shape_cast %341 : vector<2x32xf32> to vector<1x2x32xf32>
    tpu.vector_store %arg20[%342, %c0_144, %c32_145], %345 {strides = array<i32>} : memref<8x2x64xf32, #tpu.memory_space<vmem>>, vector<1x2x32xf32>,
    %c4_i32_146 = arith.constant 4 : i32
    %c7_i32_147 = arith.constant 7 : i32
    %346 = arith.subi %c7_i32_147, %c4_i32_146 : i32
    %347 = arith.index_cast %346 : i32 to index
    %c0_148 = arith.constant 0 : index
    %c0_149 = arith.constant 0 : index
    %348 = vector.load %arg19[%347, %c0_148, %c0_149] : memref<8x2x128xf32, #tpu.memory_space<vmem>>, vector<1x2x128xf32>
    %349 = vector.shape_cast %348 : vector<1x2x128xf32> to vector<2x128xf32>
    %c0_150 = arith.constant 0 : index
    %c0_151 = arith.constant 0 : index
    %350 = vector.load %arg6[%c0_150, %c0_151] : memref<32x128xf32, #tpu.memory_space<vmem>>, vector<32x128xf32>
    %cst_152 = arith.constant dense<0.000000e+00> : vector<2x128xf32>
    %351 = tpu.matmul %341, %350, %cst_152 {dimension_numbers = #tpu.dot_dimension_numbers<[1], [0], [0], [1], [0, 0, 1, 1], [], []>} : vector<2x32xf32>, vector<32x128xf32>, vector<2x128xf32> -> vector<2x128xf32>
    %352 = arith.addf %349, %351 : vector<2x128xf32>
    %cst_153 = arith.constant 5.000000e-01 : f32
    %353 = vector.broadcast %cst_153 : f32 to vector<2x128xf32>
    %354 = arith.mulf %353, %352 : vector<2x128xf32>
    %355 = math.tanh %354 : vector<2x128xf32>
    %cst_154 = arith.constant 1.000000e+00 : f32
    %356 = vector.broadcast %cst_154 : f32 to vector<2x128xf32>
    %357 = arith.addf %355, %356 : vector<2x128xf32>
    %cst_155 = arith.constant 5.000000e-01 : f32
    %358 = vector.broadcast %cst_155 : f32 to vector<2x128xf32>
    %359 = arith.mulf %358, %357 : vector<2x128xf32>
    %360 = math.tanh %352 : vector<2x128xf32>
    %361 = vector.extract_strided_slice %359 {offsets = [0, 0], sizes = [2, 32], strides = [1, 1]} : vector<2x128xf32> to vector<2x32xf32>
    %362 = vector.extract_strided_slice %359 {offsets = [0, 32], sizes = [2, 32], strides = [1, 1]} : vector<2x128xf32> to vector<2x32xf32>
    %363 = vector.extract_strided_slice %360 {offsets = [0, 64], sizes = [2, 32], strides = [1, 1]} : vector<2x128xf32> to vector<2x32xf32>
    %364 = vector.extract_strided_slice %359 {offsets = [0, 96], sizes = [2, 32], strides = [1, 1]} : vector<2x128xf32> to vector<2x32xf32>
    %365 = arith.mulf %362, %339 : vector<2x32xf32>
    %366 = arith.mulf %361, %363 : vector<2x32xf32>
    %367 = arith.addf %365, %366 : vector<2x32xf32>
    %368 = math.tanh %367 : vector<2x32xf32>
    %369 = arith.mulf %364, %368 : vector<2x32xf32>
    %370 = arith.index_cast %346 : i32 to index
    %c0_156 = arith.constant 0 : index
    %c32_157 = arith.constant 32 : index
    %371 = vector.load %arg20[%370, %c0_156, %c32_157] : memref<8x2x64xf32, #tpu.memory_space<vmem>>, vector<1x2x32xf32>
    %372 = vector.shape_cast %371 : vector<1x2x32xf32> to vector<2x32xf32>
    %373 = vector.shape_cast %369 : vector<2x32xf32> to vector<1x2x32xf32>
    tpu.vector_store %arg20[%370, %c0_156, %c32_157], %373 {strides = array<i32>} : memref<8x2x64xf32, #tpu.memory_space<vmem>>, vector<1x2x32xf32>,
    %c5_i32_158 = arith.constant 5 : i32
    %c7_i32_159 = arith.constant 7 : i32
    %374 = arith.subi %c7_i32_159, %c5_i32_158 : i32
    %375 = arith.index_cast %374 : i32 to index
    %c0_160 = arith.constant 0 : index
    %c0_161 = arith.constant 0 : index
    %376 = vector.load %arg19[%375, %c0_160, %c0_161] : memref<8x2x128xf32, #tpu.memory_space<vmem>>, vector<1x2x128xf32>
    %377 = vector.shape_cast %376 : vector<1x2x128xf32> to vector<2x128xf32>
    %c0_162 = arith.constant 0 : index
    %c0_163 = arith.constant 0 : index
    %378 = vector.load %arg6[%c0_162, %c0_163] : memref<32x128xf32, #tpu.memory_space<vmem>>, vector<32x128xf32>
    %cst_164 = arith.constant dense<0.000000e+00> : vector<2x128xf32>
    %379 = tpu.matmul %369, %378, %cst_164 {dimension_numbers = #tpu.dot_dimension_numbers<[1], [0], [0], [1], [0, 0, 1, 1], [], []>} : vector<2x32xf32>, vector<32x128xf32>, vector<2x128xf32> -> vector<2x128xf32>
    %380 = arith.addf %377, %379 : vector<2x128xf32>
    %cst_165 = arith.constant 5.000000e-01 : f32
    %381 = vector.broadcast %cst_165 : f32 to vector<2x128xf32>
    %382 = arith.mulf %381, %380 : vector<2x128xf32>
    %383 = math.tanh %382 : vector<2x128xf32>
    %cst_166 = arith.constant 1.000000e+00 : f32
    %384 = vector.broadcast %cst_166 : f32 to vector<2x128xf32>
    %385 = arith.addf %383, %384 : vector<2x128xf32>
    %cst_167 = arith.constant 5.000000e-01 : f32
    %386 = vector.broadcast %cst_167 : f32 to vector<2x128xf32>
    %387 = arith.mulf %386, %385 : vector<2x128xf32>
    %388 = math.tanh %380 : vector<2x128xf32>
    %389 = vector.extract_strided_slice %387 {offsets = [0, 0], sizes = [2, 32], strides = [1, 1]} : vector<2x128xf32> to vector<2x32xf32>
    %390 = vector.extract_strided_slice %387 {offsets = [0, 32], sizes = [2, 32], strides = [1, 1]} : vector<2x128xf32> to vector<2x32xf32>
    %391 = vector.extract_strided_slice %388 {offsets = [0, 64], sizes = [2, 32], strides = [1, 1]} : vector<2x128xf32> to vector<2x32xf32>
    %392 = vector.extract_strided_slice %387 {offsets = [0, 96], sizes = [2, 32], strides = [1, 1]} : vector<2x128xf32> to vector<2x32xf32>
    %393 = arith.mulf %390, %367 : vector<2x32xf32>
    %394 = arith.mulf %389, %391 : vector<2x32xf32>
    %395 = arith.addf %393, %394 : vector<2x32xf32>
    %396 = math.tanh %395 : vector<2x32xf32>
    %397 = arith.mulf %392, %396 : vector<2x32xf32>
    %398 = arith.index_cast %374 : i32 to index
    %c0_168 = arith.constant 0 : index
    %c32_169 = arith.constant 32 : index
    %399 = vector.load %arg20[%398, %c0_168, %c32_169] : memref<8x2x64xf32, #tpu.memory_space<vmem>>, vector<1x2x32xf32>
    %400 = vector.shape_cast %399 : vector<1x2x32xf32> to vector<2x32xf32>
    %401 = vector.shape_cast %397 : vector<2x32xf32> to vector<1x2x32xf32>
    tpu.vector_store %arg20[%398, %c0_168, %c32_169], %401 {strides = array<i32>} : memref<8x2x64xf32, #tpu.memory_space<vmem>>, vector<1x2x32xf32>,
    %c6_i32_170 = arith.constant 6 : i32
    %c7_i32_171 = arith.constant 7 : i32
    %402 = arith.subi %c7_i32_171, %c6_i32_170 : i32
    %403 = arith.index_cast %402 : i32 to index
    %c0_172 = arith.constant 0 : index
    %c0_173 = arith.constant 0 : index
    %404 = vector.load %arg19[%403, %c0_172, %c0_173] : memref<8x2x128xf32, #tpu.memory_space<vmem>>, vector<1x2x128xf32>
    %405 = vector.shape_cast %404 : vector<1x2x128xf32> to vector<2x128xf32>
    %c0_174 = arith.constant 0 : index
    %c0_175 = arith.constant 0 : index
    %406 = vector.load %arg6[%c0_174, %c0_175] : memref<32x128xf32, #tpu.memory_space<vmem>>, vector<32x128xf32>
    %cst_176 = arith.constant dense<0.000000e+00> : vector<2x128xf32>
    %407 = tpu.matmul %397, %406, %cst_176 {dimension_numbers = #tpu.dot_dimension_numbers<[1], [0], [0], [1], [0, 0, 1, 1], [], []>} : vector<2x32xf32>, vector<32x128xf32>, vector<2x128xf32> -> vector<2x128xf32>
    %408 = arith.addf %405, %407 : vector<2x128xf32>
    %cst_177 = arith.constant 5.000000e-01 : f32
    %409 = vector.broadcast %cst_177 : f32 to vector<2x128xf32>
    %410 = arith.mulf %409, %408 : vector<2x128xf32>
    %411 = math.tanh %410 : vector<2x128xf32>
    %cst_178 = arith.constant 1.000000e+00 : f32
    %412 = vector.broadcast %cst_178 : f32 to vector<2x128xf32>
    %413 = arith.addf %411, %412 : vector<2x128xf32>
    %cst_179 = arith.constant 5.000000e-01 : f32
    %414 = vector.broadcast %cst_179 : f32 to vector<2x128xf32>
    %415 = arith.mulf %414, %413 : vector<2x128xf32>
    %416 = math.tanh %408 : vector<2x128xf32>
    %417 = vector.extract_strided_slice %415 {offsets = [0, 0], sizes = [2, 32], strides = [1, 1]} : vector<2x128xf32> to vector<2x32xf32>
    %418 = vector.extract_strided_slice %415 {offsets = [0, 32], sizes = [2, 32], strides = [1, 1]} : vector<2x128xf32> to vector<2x32xf32>
    %419 = vector.extract_strided_slice %416 {offsets = [0, 64], sizes = [2, 32], strides = [1, 1]} : vector<2x128xf32> to vector<2x32xf32>
    %420 = vector.extract_strided_slice %415 {offsets = [0, 96], sizes = [2, 32], strides = [1, 1]} : vector<2x128xf32> to vector<2x32xf32>
    %421 = arith.mulf %418, %395 : vector<2x32xf32>
    %422 = arith.mulf %417, %419 : vector<2x32xf32>
    %423 = arith.addf %421, %422 : vector<2x32xf32>
    %424 = math.tanh %423 : vector<2x32xf32>
    %425 = arith.mulf %420, %424 : vector<2x32xf32>
    %426 = arith.index_cast %402 : i32 to index
    %c0_180 = arith.constant 0 : index
    %c32_181 = arith.constant 32 : index
    %427 = vector.load %arg20[%426, %c0_180, %c32_181] : memref<8x2x64xf32, #tpu.memory_space<vmem>>, vector<1x2x32xf32>
    %428 = vector.shape_cast %427 : vector<1x2x32xf32> to vector<2x32xf32>
    %429 = vector.shape_cast %425 : vector<2x32xf32> to vector<1x2x32xf32>
    tpu.vector_store %arg20[%426, %c0_180, %c32_181], %429 {strides = array<i32>} : memref<8x2x64xf32, #tpu.memory_space<vmem>>, vector<1x2x32xf32>,
    %c7_i32_182 = arith.constant 7 : i32
    %c7_i32_183 = arith.constant 7 : i32
    %430 = arith.subi %c7_i32_183, %c7_i32_182 : i32
    %431 = arith.index_cast %430 : i32 to index
    %c0_184 = arith.constant 0 : index
    %c0_185 = arith.constant 0 : index
    %432 = vector.load %arg19[%431, %c0_184, %c0_185] : memref<8x2x128xf32, #tpu.memory_space<vmem>>, vector<1x2x128xf32>
    %433 = vector.shape_cast %432 : vector<1x2x128xf32> to vector<2x128xf32>
    %c0_186 = arith.constant 0 : index
    %c0_187 = arith.constant 0 : index
    %434 = vector.load %arg6[%c0_186, %c0_187] : memref<32x128xf32, #tpu.memory_space<vmem>>, vector<32x128xf32>
    %cst_188 = arith.constant dense<0.000000e+00> : vector<2x128xf32>
    %435 = tpu.matmul %425, %434, %cst_188 {dimension_numbers = #tpu.dot_dimension_numbers<[1], [0], [0], [1], [0, 0, 1, 1], [], []>} : vector<2x32xf32>, vector<32x128xf32>, vector<2x128xf32> -> vector<2x128xf32>
    %436 = arith.addf %433, %435 : vector<2x128xf32>
    %cst_189 = arith.constant 5.000000e-01 : f32
    %437 = vector.broadcast %cst_189 : f32 to vector<2x128xf32>
    %438 = arith.mulf %437, %436 : vector<2x128xf32>
    %439 = math.tanh %438 : vector<2x128xf32>
    %cst_190 = arith.constant 1.000000e+00 : f32
    %440 = vector.broadcast %cst_190 : f32 to vector<2x128xf32>
    %441 = arith.addf %439, %440 : vector<2x128xf32>
    %cst_191 = arith.constant 5.000000e-01 : f32
    %442 = vector.broadcast %cst_191 : f32 to vector<2x128xf32>
    %443 = arith.mulf %442, %441 : vector<2x128xf32>
    %444 = math.tanh %436 : vector<2x128xf32>
    %445 = vector.extract_strided_slice %443 {offsets = [0, 0], sizes = [2, 32], strides = [1, 1]} : vector<2x128xf32> to vector<2x32xf32>
    %446 = vector.extract_strided_slice %443 {offsets = [0, 32], sizes = [2, 32], strides = [1, 1]} : vector<2x128xf32> to vector<2x32xf32>
    %447 = vector.extract_strided_slice %444 {offsets = [0, 64], sizes = [2, 32], strides = [1, 1]} : vector<2x128xf32> to vector<2x32xf32>
    %448 = vector.extract_strided_slice %443 {offsets = [0, 96], sizes = [2, 32], strides = [1, 1]} : vector<2x128xf32> to vector<2x32xf32>
    %449 = arith.mulf %446, %423 : vector<2x32xf32>
    %450 = arith.mulf %445, %447 : vector<2x32xf32>
    %451 = arith.addf %449, %450 : vector<2x32xf32>
    %452 = math.tanh %451 : vector<2x32xf32>
    %453 = arith.mulf %448, %452 : vector<2x32xf32>
    %454 = arith.index_cast %430 : i32 to index
    %c0_192 = arith.constant 0 : index
    %c32_193 = arith.constant 32 : index
    %455 = vector.load %arg20[%454, %c0_192, %c32_193] : memref<8x2x64xf32, #tpu.memory_space<vmem>>, vector<1x2x32xf32>
    %456 = vector.shape_cast %455 : vector<1x2x32xf32> to vector<2x32xf32>
    %457 = vector.shape_cast %453 : vector<2x32xf32> to vector<1x2x32xf32>
    tpu.vector_store %arg20[%454, %c0_192, %c32_193], %457 {strides = array<i32>} : memref<8x2x64xf32, #tpu.memory_space<vmem>>, vector<1x2x32xf32>,
    %c8_i32_194 = arith.constant 8 : i32
    %c0_195 = arith.constant 0 : index
    %c0_196 = arith.constant 0 : index
    %c0_197 = arith.constant 0 : index
    %458 = vector.load %arg20[%c0_195, %c0_196, %c0_197] : memref<8x2x64xf32, #tpu.memory_space<vmem>>, vector<8x2x64xf32>
    %459 = vector.shape_cast %458 : vector<8x2x64xf32> to vector<16x64xf32>
    %c0_198 = arith.constant 0 : index
    %c0_199 = arith.constant 0 : index
    %460 = vector.load %arg8[%c0_198, %c0_199] : memref<64x128xf32, #tpu.memory_space<vmem>>, vector<64x128xf32>
    %cst_200 = arith.constant dense<0.000000e+00> : vector<16x128xf32>
    %461 = tpu.matmul %459, %460, %cst_200 {dimension_numbers = #tpu.dot_dimension_numbers<[1], [0], [0], [1], [0, 0, 1, 1], [], []>} : vector<16x64xf32>, vector<64x128xf32>, vector<16x128xf32> -> vector<16x128xf32>
    %c0_201 = arith.constant 0 : index
    %c0_202 = arith.constant 0 : index
    %462 = vector.load %arg10[%c0_201, %c0_202] : memref<1x128xf32, #tpu.memory_space<vmem>>, vector<1x128xf32>
    %463 = vector.broadcast %462 : vector<1x128xf32> to vector<16x128xf32>
    %464 = arith.addf %461, %463 : vector<16x128xf32>
    %465 = vector.shape_cast %464 : vector<16x128xf32> to vector<8x2x128xf32>
    %c0_203 = arith.constant 0 : index
    %c0_204 = arith.constant 0 : index
    %c0_205 = arith.constant 0 : index
    %466 = vector.load %arg21[%c0_203, %c0_204, %c0_205] : memref<8x2x128xf32, #tpu.memory_space<vmem>>, vector<8x2x128xf32>
    tpu.vector_store %arg21[%c0_203, %c0_204, %c0_205], %465 {strides = array<i32>} : memref<8x2x128xf32, #tpu.memory_space<vmem>>, vector<8x2x128xf32>,
    %cst_206 = arith.constant 0.000000e+00 : f32
    %467 = vector.broadcast %cst_206 : f32 to vector<2x32xf32>
    %c0_i32_207 = arith.constant 0 : i32
    %468 = arith.index_cast %c0_i32_207 : i32 to index
    %c0_208 = arith.constant 0 : index
    %c0_209 = arith.constant 0 : index
    %469 = vector.load %arg21[%468, %c0_208, %c0_209] : memref<8x2x128xf32, #tpu.memory_space<vmem>>, vector<1x2x128xf32>
    %470 = vector.shape_cast %469 : vector<1x2x128xf32> to vector<2x128xf32>
    %c0_210 = arith.constant 0 : index
    %c0_211 = arith.constant 0 : index
    %471 = vector.load %arg9[%c0_210, %c0_211] : memref<32x128xf32, #tpu.memory_space<vmem>>, vector<32x128xf32>
    %cst_212 = arith.constant dense<0.000000e+00> : vector<2x128xf32>
    %472 = tpu.matmul %467, %471, %cst_212 {dimension_numbers = #tpu.dot_dimension_numbers<[1], [0], [0], [1], [0, 0, 1, 1], [], []>} : vector<2x32xf32>, vector<32x128xf32>, vector<2x128xf32> -> vector<2x128xf32>
    %473 = arith.addf %470, %472 : vector<2x128xf32>
    %cst_213 = arith.constant 5.000000e-01 : f32
    %474 = vector.broadcast %cst_213 : f32 to vector<2x128xf32>
    %475 = arith.mulf %474, %473 : vector<2x128xf32>
    %476 = math.tanh %475 : vector<2x128xf32>
    %cst_214 = arith.constant 1.000000e+00 : f32
    %477 = vector.broadcast %cst_214 : f32 to vector<2x128xf32>
    %478 = arith.addf %476, %477 : vector<2x128xf32>
    %cst_215 = arith.constant 5.000000e-01 : f32
    %479 = vector.broadcast %cst_215 : f32 to vector<2x128xf32>
    %480 = arith.mulf %479, %478 : vector<2x128xf32>
    %481 = math.tanh %473 : vector<2x128xf32>
    %482 = vector.extract_strided_slice %480 {offsets = [0, 0], sizes = [2, 32], strides = [1, 1]} : vector<2x128xf32> to vector<2x32xf32>
    %483 = vector.extract_strided_slice %480 {offsets = [0, 32], sizes = [2, 32], strides = [1, 1]} : vector<2x128xf32> to vector<2x32xf32>
    %484 = vector.extract_strided_slice %481 {offsets = [0, 64], sizes = [2, 32], strides = [1, 1]} : vector<2x128xf32> to vector<2x32xf32>
    %485 = vector.extract_strided_slice %480 {offsets = [0, 96], sizes = [2, 32], strides = [1, 1]} : vector<2x128xf32> to vector<2x32xf32>
    %486 = arith.mulf %483, %467 : vector<2x32xf32>
    %487 = arith.mulf %482, %484 : vector<2x32xf32>
    %488 = arith.addf %486, %487 : vector<2x32xf32>
    %489 = math.tanh %488 : vector<2x32xf32>
    %490 = arith.mulf %485, %489 : vector<2x32xf32>
    %491 = arith.index_cast %c0_i32_207 : i32 to index
    %c0_216 = arith.constant 0 : index
    %c0_217 = arith.constant 0 : index
    %492 = vector.load %arg22[%491, %c0_216, %c0_217] : memref<8x2x64xf32, #tpu.memory_space<vmem>>, vector<1x2x32xf32>
    %493 = vector.shape_cast %492 : vector<1x2x32xf32> to vector<2x32xf32>
    %494 = vector.shape_cast %490 : vector<2x32xf32> to vector<1x2x32xf32>
    tpu.vector_store %arg22[%491, %c0_216, %c0_217], %494 {strides = array<i32>} : memref<8x2x64xf32, #tpu.memory_space<vmem>>, vector<1x2x32xf32>,
    %c1_i32_218 = arith.constant 1 : i32
    %495 = arith.index_cast %c1_i32_218 : i32 to index
    %c0_219 = arith.constant 0 : index
    %c0_220 = arith.constant 0 : index
    %496 = vector.load %arg21[%495, %c0_219, %c0_220] : memref<8x2x128xf32, #tpu.memory_space<vmem>>, vector<1x2x128xf32>
    %497 = vector.shape_cast %496 : vector<1x2x128xf32> to vector<2x128xf32>
    %c0_221 = arith.constant 0 : index
    %c0_222 = arith.constant 0 : index
    %498 = vector.load %arg9[%c0_221, %c0_222] : memref<32x128xf32, #tpu.memory_space<vmem>>, vector<32x128xf32>
    %cst_223 = arith.constant dense<0.000000e+00> : vector<2x128xf32>
    %499 = tpu.matmul %490, %498, %cst_223 {dimension_numbers = #tpu.dot_dimension_numbers<[1], [0], [0], [1], [0, 0, 1, 1], [], []>} : vector<2x32xf32>, vector<32x128xf32>, vector<2x128xf32> -> vector<2x128xf32>
    %500 = arith.addf %497, %499 : vector<2x128xf32>
    %cst_224 = arith.constant 5.000000e-01 : f32
    %501 = vector.broadcast %cst_224 : f32 to vector<2x128xf32>
    %502 = arith.mulf %501, %500 : vector<2x128xf32>
    %503 = math.tanh %502 : vector<2x128xf32>
    %cst_225 = arith.constant 1.000000e+00 : f32
    %504 = vector.broadcast %cst_225 : f32 to vector<2x128xf32>
    %505 = arith.addf %503, %504 : vector<2x128xf32>
    %cst_226 = arith.constant 5.000000e-01 : f32
    %506 = vector.broadcast %cst_226 : f32 to vector<2x128xf32>
    %507 = arith.mulf %506, %505 : vector<2x128xf32>
    %508 = math.tanh %500 : vector<2x128xf32>
    %509 = vector.extract_strided_slice %507 {offsets = [0, 0], sizes = [2, 32], strides = [1, 1]} : vector<2x128xf32> to vector<2x32xf32>
    %510 = vector.extract_strided_slice %507 {offsets = [0, 32], sizes = [2, 32], strides = [1, 1]} : vector<2x128xf32> to vector<2x32xf32>
    %511 = vector.extract_strided_slice %508 {offsets = [0, 64], sizes = [2, 32], strides = [1, 1]} : vector<2x128xf32> to vector<2x32xf32>
    %512 = vector.extract_strided_slice %507 {offsets = [0, 96], sizes = [2, 32], strides = [1, 1]} : vector<2x128xf32> to vector<2x32xf32>
    %513 = arith.mulf %510, %488 : vector<2x32xf32>
    %514 = arith.mulf %509, %511 : vector<2x32xf32>
    %515 = arith.addf %513, %514 : vector<2x32xf32>
    %516 = math.tanh %515 : vector<2x32xf32>
    %517 = arith.mulf %512, %516 : vector<2x32xf32>
    %518 = arith.index_cast %c1_i32_218 : i32 to index
    %c0_227 = arith.constant 0 : index
    %c0_228 = arith.constant 0 : index
    %519 = vector.load %arg22[%518, %c0_227, %c0_228] : memref<8x2x64xf32, #tpu.memory_space<vmem>>, vector<1x2x32xf32>
    %520 = vector.shape_cast %519 : vector<1x2x32xf32> to vector<2x32xf32>
    %521 = vector.shape_cast %517 : vector<2x32xf32> to vector<1x2x32xf32>
    tpu.vector_store %arg22[%518, %c0_227, %c0_228], %521 {strides = array<i32>} : memref<8x2x64xf32, #tpu.memory_space<vmem>>, vector<1x2x32xf32>,
    %c2_i32_229 = arith.constant 2 : i32
    %522 = arith.index_cast %c2_i32_229 : i32 to index
    %c0_230 = arith.constant 0 : index
    %c0_231 = arith.constant 0 : index
    %523 = vector.load %arg21[%522, %c0_230, %c0_231] : memref<8x2x128xf32, #tpu.memory_space<vmem>>, vector<1x2x128xf32>
    %524 = vector.shape_cast %523 : vector<1x2x128xf32> to vector<2x128xf32>
    %c0_232 = arith.constant 0 : index
    %c0_233 = arith.constant 0 : index
    %525 = vector.load %arg9[%c0_232, %c0_233] : memref<32x128xf32, #tpu.memory_space<vmem>>, vector<32x128xf32>
    %cst_234 = arith.constant dense<0.000000e+00> : vector<2x128xf32>
    %526 = tpu.matmul %517, %525, %cst_234 {dimension_numbers = #tpu.dot_dimension_numbers<[1], [0], [0], [1], [0, 0, 1, 1], [], []>} : vector<2x32xf32>, vector<32x128xf32>, vector<2x128xf32> -> vector<2x128xf32>
    %527 = arith.addf %524, %526 : vector<2x128xf32>
    %cst_235 = arith.constant 5.000000e-01 : f32
    %528 = vector.broadcast %cst_235 : f32 to vector<2x128xf32>
    %529 = arith.mulf %528, %527 : vector<2x128xf32>
    %530 = math.tanh %529 : vector<2x128xf32>
    %cst_236 = arith.constant 1.000000e+00 : f32
    %531 = vector.broadcast %cst_236 : f32 to vector<2x128xf32>
    %532 = arith.addf %530, %531 : vector<2x128xf32>
    %cst_237 = arith.constant 5.000000e-01 : f32
    %533 = vector.broadcast %cst_237 : f32 to vector<2x128xf32>
    %534 = arith.mulf %533, %532 : vector<2x128xf32>
    %535 = math.tanh %527 : vector<2x128xf32>
    %536 = vector.extract_strided_slice %534 {offsets = [0, 0], sizes = [2, 32], strides = [1, 1]} : vector<2x128xf32> to vector<2x32xf32>
    %537 = vector.extract_strided_slice %534 {offsets = [0, 32], sizes = [2, 32], strides = [1, 1]} : vector<2x128xf32> to vector<2x32xf32>
    %538 = vector.extract_strided_slice %535 {offsets = [0, 64], sizes = [2, 32], strides = [1, 1]} : vector<2x128xf32> to vector<2x32xf32>
    %539 = vector.extract_strided_slice %534 {offsets = [0, 96], sizes = [2, 32], strides = [1, 1]} : vector<2x128xf32> to vector<2x32xf32>
    %540 = arith.mulf %537, %515 : vector<2x32xf32>
    %541 = arith.mulf %536, %538 : vector<2x32xf32>
    %542 = arith.addf %540, %541 : vector<2x32xf32>
    %543 = math.tanh %542 : vector<2x32xf32>
    %544 = arith.mulf %539, %543 : vector<2x32xf32>
    %545 = arith.index_cast %c2_i32_229 : i32 to index
    %c0_238 = arith.constant 0 : index
    %c0_239 = arith.constant 0 : index
    %546 = vector.load %arg22[%545, %c0_238, %c0_239] : memref<8x2x64xf32, #tpu.memory_space<vmem>>, vector<1x2x32xf32>
    %547 = vector.shape_cast %546 : vector<1x2x32xf32> to vector<2x32xf32>
    %548 = vector.shape_cast %544 : vector<2x32xf32> to vector<1x2x32xf32>
    tpu.vector_store %arg22[%545, %c0_238, %c0_239], %548 {strides = array<i32>} : memref<8x2x64xf32, #tpu.memory_space<vmem>>, vector<1x2x32xf32>,
    %c3_i32_240 = arith.constant 3 : i32
    %549 = arith.index_cast %c3_i32_240 : i32 to index
    %c0_241 = arith.constant 0 : index
    %c0_242 = arith.constant 0 : index
    %550 = vector.load %arg21[%549, %c0_241, %c0_242] : memref<8x2x128xf32, #tpu.memory_space<vmem>>, vector<1x2x128xf32>
    %551 = vector.shape_cast %550 : vector<1x2x128xf32> to vector<2x128xf32>
    %c0_243 = arith.constant 0 : index
    %c0_244 = arith.constant 0 : index
    %552 = vector.load %arg9[%c0_243, %c0_244] : memref<32x128xf32, #tpu.memory_space<vmem>>, vector<32x128xf32>
    %cst_245 = arith.constant dense<0.000000e+00> : vector<2x128xf32>
    %553 = tpu.matmul %544, %552, %cst_245 {dimension_numbers = #tpu.dot_dimension_numbers<[1], [0], [0], [1], [0, 0, 1, 1], [], []>} : vector<2x32xf32>, vector<32x128xf32>, vector<2x128xf32> -> vector<2x128xf32>
    %554 = arith.addf %551, %553 : vector<2x128xf32>
    %cst_246 = arith.constant 5.000000e-01 : f32
    %555 = vector.broadcast %cst_246 : f32 to vector<2x128xf32>
    %556 = arith.mulf %555, %554 : vector<2x128xf32>
    %557 = math.tanh %556 : vector<2x128xf32>
    %cst_247 = arith.constant 1.000000e+00 : f32
    %558 = vector.broadcast %cst_247 : f32 to vector<2x128xf32>
    %559 = arith.addf %557, %558 : vector<2x128xf32>
    %cst_248 = arith.constant 5.000000e-01 : f32
    %560 = vector.broadcast %cst_248 : f32 to vector<2x128xf32>
    %561 = arith.mulf %560, %559 : vector<2x128xf32>
    %562 = math.tanh %554 : vector<2x128xf32>
    %563 = vector.extract_strided_slice %561 {offsets = [0, 0], sizes = [2, 32], strides = [1, 1]} : vector<2x128xf32> to vector<2x32xf32>
    %564 = vector.extract_strided_slice %561 {offsets = [0, 32], sizes = [2, 32], strides = [1, 1]} : vector<2x128xf32> to vector<2x32xf32>
    %565 = vector.extract_strided_slice %562 {offsets = [0, 64], sizes = [2, 32], strides = [1, 1]} : vector<2x128xf32> to vector<2x32xf32>
    %566 = vector.extract_strided_slice %561 {offsets = [0, 96], sizes = [2, 32], strides = [1, 1]} : vector<2x128xf32> to vector<2x32xf32>
    %567 = arith.mulf %564, %542 : vector<2x32xf32>
    %568 = arith.mulf %563, %565 : vector<2x32xf32>
    %569 = arith.addf %567, %568 : vector<2x32xf32>
    %570 = math.tanh %569 : vector<2x32xf32>
    %571 = arith.mulf %566, %570 : vector<2x32xf32>
    %572 = arith.index_cast %c3_i32_240 : i32 to index
    %c0_249 = arith.constant 0 : index
    %c0_250 = arith.constant 0 : index
    %573 = vector.load %arg22[%572, %c0_249, %c0_250] : memref<8x2x64xf32, #tpu.memory_space<vmem>>, vector<1x2x32xf32>
    %574 = vector.shape_cast %573 : vector<1x2x32xf32> to vector<2x32xf32>
    %575 = vector.shape_cast %571 : vector<2x32xf32> to vector<1x2x32xf32>
    tpu.vector_store %arg22[%572, %c0_249, %c0_250], %575 {strides = array<i32>} : memref<8x2x64xf32, #tpu.memory_space<vmem>>, vector<1x2x32xf32>,
    %c4_i32_251 = arith.constant 4 : i32
    %576 = arith.index_cast %c4_i32_251 : i32 to index
    %c0_252 = arith.constant 0 : index
    %c0_253 = arith.constant 0 : index
    %577 = vector.load %arg21[%576, %c0_252, %c0_253] : memref<8x2x128xf32, #tpu.memory_space<vmem>>, vector<1x2x128xf32>
    %578 = vector.shape_cast %577 : vector<1x2x128xf32> to vector<2x128xf32>
    %c0_254 = arith.constant 0 : index
    %c0_255 = arith.constant 0 : index
    %579 = vector.load %arg9[%c0_254, %c0_255] : memref<32x128xf32, #tpu.memory_space<vmem>>, vector<32x128xf32>
    %cst_256 = arith.constant dense<0.000000e+00> : vector<2x128xf32>
    %580 = tpu.matmul %571, %579, %cst_256 {dimension_numbers = #tpu.dot_dimension_numbers<[1], [0], [0], [1], [0, 0, 1, 1], [], []>} : vector<2x32xf32>, vector<32x128xf32>, vector<2x128xf32> -> vector<2x128xf32>
    %581 = arith.addf %578, %580 : vector<2x128xf32>
    %cst_257 = arith.constant 5.000000e-01 : f32
    %582 = vector.broadcast %cst_257 : f32 to vector<2x128xf32>
    %583 = arith.mulf %582, %581 : vector<2x128xf32>
    %584 = math.tanh %583 : vector<2x128xf32>
    %cst_258 = arith.constant 1.000000e+00 : f32
    %585 = vector.broadcast %cst_258 : f32 to vector<2x128xf32>
    %586 = arith.addf %584, %585 : vector<2x128xf32>
    %cst_259 = arith.constant 5.000000e-01 : f32
    %587 = vector.broadcast %cst_259 : f32 to vector<2x128xf32>
    %588 = arith.mulf %587, %586 : vector<2x128xf32>
    %589 = math.tanh %581 : vector<2x128xf32>
    %590 = vector.extract_strided_slice %588 {offsets = [0, 0], sizes = [2, 32], strides = [1, 1]} : vector<2x128xf32> to vector<2x32xf32>
    %591 = vector.extract_strided_slice %588 {offsets = [0, 32], sizes = [2, 32], strides = [1, 1]} : vector<2x128xf32> to vector<2x32xf32>
    %592 = vector.extract_strided_slice %589 {offsets = [0, 64], sizes = [2, 32], strides = [1, 1]} : vector<2x128xf32> to vector<2x32xf32>
    %593 = vector.extract_strided_slice %588 {offsets = [0, 96], sizes = [2, 32], strides = [1, 1]} : vector<2x128xf32> to vector<2x32xf32>
    %594 = arith.mulf %591, %569 : vector<2x32xf32>
    %595 = arith.mulf %590, %592 : vector<2x32xf32>
    %596 = arith.addf %594, %595 : vector<2x32xf32>
    %597 = math.tanh %596 : vector<2x32xf32>
    %598 = arith.mulf %593, %597 : vector<2x32xf32>
    %599 = arith.index_cast %c4_i32_251 : i32 to index
    %c0_260 = arith.constant 0 : index
    %c0_261 = arith.constant 0 : index
    %600 = vector.load %arg22[%599, %c0_260, %c0_261] : memref<8x2x64xf32, #tpu.memory_space<vmem>>, vector<1x2x32xf32>
    %601 = vector.shape_cast %600 : vector<1x2x32xf32> to vector<2x32xf32>
    %602 = vector.shape_cast %598 : vector<2x32xf32> to vector<1x2x32xf32>
    tpu.vector_store %arg22[%599, %c0_260, %c0_261], %602 {strides = array<i32>} : memref<8x2x64xf32, #tpu.memory_space<vmem>>, vector<1x2x32xf32>,
    %c5_i32_262 = arith.constant 5 : i32
    %603 = arith.index_cast %c5_i32_262 : i32 to index
    %c0_263 = arith.constant 0 : index
    %c0_264 = arith.constant 0 : index
    %604 = vector.load %arg21[%603, %c0_263, %c0_264] : memref<8x2x128xf32, #tpu.memory_space<vmem>>, vector<1x2x128xf32>
    %605 = vector.shape_cast %604 : vector<1x2x128xf32> to vector<2x128xf32>
    %c0_265 = arith.constant 0 : index
    %c0_266 = arith.constant 0 : index
    %606 = vector.load %arg9[%c0_265, %c0_266] : memref<32x128xf32, #tpu.memory_space<vmem>>, vector<32x128xf32>
    %cst_267 = arith.constant dense<0.000000e+00> : vector<2x128xf32>
    %607 = tpu.matmul %598, %606, %cst_267 {dimension_numbers = #tpu.dot_dimension_numbers<[1], [0], [0], [1], [0, 0, 1, 1], [], []>} : vector<2x32xf32>, vector<32x128xf32>, vector<2x128xf32> -> vector<2x128xf32>
    %608 = arith.addf %605, %607 : vector<2x128xf32>
    %cst_268 = arith.constant 5.000000e-01 : f32
    %609 = vector.broadcast %cst_268 : f32 to vector<2x128xf32>
    %610 = arith.mulf %609, %608 : vector<2x128xf32>
    %611 = math.tanh %610 : vector<2x128xf32>
    %cst_269 = arith.constant 1.000000e+00 : f32
    %612 = vector.broadcast %cst_269 : f32 to vector<2x128xf32>
    %613 = arith.addf %611, %612 : vector<2x128xf32>
    %cst_270 = arith.constant 5.000000e-01 : f32
    %614 = vector.broadcast %cst_270 : f32 to vector<2x128xf32>
    %615 = arith.mulf %614, %613 : vector<2x128xf32>
    %616 = math.tanh %608 : vector<2x128xf32>
    %617 = vector.extract_strided_slice %615 {offsets = [0, 0], sizes = [2, 32], strides = [1, 1]} : vector<2x128xf32> to vector<2x32xf32>
    %618 = vector.extract_strided_slice %615 {offsets = [0, 32], sizes = [2, 32], strides = [1, 1]} : vector<2x128xf32> to vector<2x32xf32>
    %619 = vector.extract_strided_slice %616 {offsets = [0, 64], sizes = [2, 32], strides = [1, 1]} : vector<2x128xf32> to vector<2x32xf32>
    %620 = vector.extract_strided_slice %615 {offsets = [0, 96], sizes = [2, 32], strides = [1, 1]} : vector<2x128xf32> to vector<2x32xf32>
    %621 = arith.mulf %618, %596 : vector<2x32xf32>
    %622 = arith.mulf %617, %619 : vector<2x32xf32>
    %623 = arith.addf %621, %622 : vector<2x32xf32>
    %624 = math.tanh %623 : vector<2x32xf32>
    %625 = arith.mulf %620, %624 : vector<2x32xf32>
    %626 = arith.index_cast %c5_i32_262 : i32 to index
    %c0_271 = arith.constant 0 : index
    %c0_272 = arith.constant 0 : index
    %627 = vector.load %arg22[%626, %c0_271, %c0_272] : memref<8x2x64xf32, #tpu.memory_space<vmem>>, vector<1x2x32xf32>
    %628 = vector.shape_cast %627 : vector<1x2x32xf32> to vector<2x32xf32>
    %629 = vector.shape_cast %625 : vector<2x32xf32> to vector<1x2x32xf32>
    tpu.vector_store %arg22[%626, %c0_271, %c0_272], %629 {strides = array<i32>} : memref<8x2x64xf32, #tpu.memory_space<vmem>>, vector<1x2x32xf32>,
    %c6_i32_273 = arith.constant 6 : i32
    %630 = arith.index_cast %c6_i32_273 : i32 to index
    %c0_274 = arith.constant 0 : index
    %c0_275 = arith.constant 0 : index
    %631 = vector.load %arg21[%630, %c0_274, %c0_275] : memref<8x2x128xf32, #tpu.memory_space<vmem>>, vector<1x2x128xf32>
    %632 = vector.shape_cast %631 : vector<1x2x128xf32> to vector<2x128xf32>
    %c0_276 = arith.constant 0 : index
    %c0_277 = arith.constant 0 : index
    %633 = vector.load %arg9[%c0_276, %c0_277] : memref<32x128xf32, #tpu.memory_space<vmem>>, vector<32x128xf32>
    %cst_278 = arith.constant dense<0.000000e+00> : vector<2x128xf32>
    %634 = tpu.matmul %625, %633, %cst_278 {dimension_numbers = #tpu.dot_dimension_numbers<[1], [0], [0], [1], [0, 0, 1, 1], [], []>} : vector<2x32xf32>, vector<32x128xf32>, vector<2x128xf32> -> vector<2x128xf32>
    %635 = arith.addf %632, %634 : vector<2x128xf32>
    %cst_279 = arith.constant 5.000000e-01 : f32
    %636 = vector.broadcast %cst_279 : f32 to vector<2x128xf32>
    %637 = arith.mulf %636, %635 : vector<2x128xf32>
    %638 = math.tanh %637 : vector<2x128xf32>
    %cst_280 = arith.constant 1.000000e+00 : f32
    %639 = vector.broadcast %cst_280 : f32 to vector<2x128xf32>
    %640 = arith.addf %638, %639 : vector<2x128xf32>
    %cst_281 = arith.constant 5.000000e-01 : f32
    %641 = vector.broadcast %cst_281 : f32 to vector<2x128xf32>
    %642 = arith.mulf %641, %640 : vector<2x128xf32>
    %643 = math.tanh %635 : vector<2x128xf32>
    %644 = vector.extract_strided_slice %642 {offsets = [0, 0], sizes = [2, 32], strides = [1, 1]} : vector<2x128xf32> to vector<2x32xf32>
    %645 = vector.extract_strided_slice %642 {offsets = [0, 32], sizes = [2, 32], strides = [1, 1]} : vector<2x128xf32> to vector<2x32xf32>
    %646 = vector.extract_strided_slice %643 {offsets = [0, 64], sizes = [2, 32], strides = [1, 1]} : vector<2x128xf32> to vector<2x32xf32>
    %647 = vector.extract_strided_slice %642 {offsets = [0, 96], sizes = [2, 32], strides = [1, 1]} : vector<2x128xf32> to vector<2x32xf32>
    %648 = arith.mulf %645, %623 : vector<2x32xf32>
    %649 = arith.mulf %644, %646 : vector<2x32xf32>
    %650 = arith.addf %648, %649 : vector<2x32xf32>
    %651 = math.tanh %650 : vector<2x32xf32>
    %652 = arith.mulf %647, %651 : vector<2x32xf32>
    %653 = arith.index_cast %c6_i32_273 : i32 to index
    %c0_282 = arith.constant 0 : index
    %c0_283 = arith.constant 0 : index
    %654 = vector.load %arg22[%653, %c0_282, %c0_283] : memref<8x2x64xf32, #tpu.memory_space<vmem>>, vector<1x2x32xf32>
    %655 = vector.shape_cast %654 : vector<1x2x32xf32> to vector<2x32xf32>
    %656 = vector.shape_cast %652 : vector<2x32xf32> to vector<1x2x32xf32>
    tpu.vector_store %arg22[%653, %c0_282, %c0_283], %656 {strides = array<i32>} : memref<8x2x64xf32, #tpu.memory_space<vmem>>, vector<1x2x32xf32>,
    %c7_i32_284 = arith.constant 7 : i32
    %657 = arith.index_cast %c7_i32_284 : i32 to index
    %c0_285 = arith.constant 0 : index
    %c0_286 = arith.constant 0 : index
    %658 = vector.load %arg21[%657, %c0_285, %c0_286] : memref<8x2x128xf32, #tpu.memory_space<vmem>>, vector<1x2x128xf32>
    %659 = vector.shape_cast %658 : vector<1x2x128xf32> to vector<2x128xf32>
    %c0_287 = arith.constant 0 : index
    %c0_288 = arith.constant 0 : index
    %660 = vector.load %arg9[%c0_287, %c0_288] : memref<32x128xf32, #tpu.memory_space<vmem>>, vector<32x128xf32>
    %cst_289 = arith.constant dense<0.000000e+00> : vector<2x128xf32>
    %661 = tpu.matmul %652, %660, %cst_289 {dimension_numbers = #tpu.dot_dimension_numbers<[1], [0], [0], [1], [0, 0, 1, 1], [], []>} : vector<2x32xf32>, vector<32x128xf32>, vector<2x128xf32> -> vector<2x128xf32>
    %662 = arith.addf %659, %661 : vector<2x128xf32>
    %cst_290 = arith.constant 5.000000e-01 : f32
    %663 = vector.broadcast %cst_290 : f32 to vector<2x128xf32>
    %664 = arith.mulf %663, %662 : vector<2x128xf32>
    %665 = math.tanh %664 : vector<2x128xf32>
    %cst_291 = arith.constant 1.000000e+00 : f32
    %666 = vector.broadcast %cst_291 : f32 to vector<2x128xf32>
    %667 = arith.addf %665, %666 : vector<2x128xf32>
    %cst_292 = arith.constant 5.000000e-01 : f32
    %668 = vector.broadcast %cst_292 : f32 to vector<2x128xf32>
    %669 = arith.mulf %668, %667 : vector<2x128xf32>
    %670 = math.tanh %662 : vector<2x128xf32>
    %671 = vector.extract_strided_slice %669 {offsets = [0, 0], sizes = [2, 32], strides = [1, 1]} : vector<2x128xf32> to vector<2x32xf32>
    %672 = vector.extract_strided_slice %669 {offsets = [0, 32], sizes = [2, 32], strides = [1, 1]} : vector<2x128xf32> to vector<2x32xf32>
    %673 = vector.extract_strided_slice %670 {offsets = [0, 64], sizes = [2, 32], strides = [1, 1]} : vector<2x128xf32> to vector<2x32xf32>
    %674 = vector.extract_strided_slice %669 {offsets = [0, 96], sizes = [2, 32], strides = [1, 1]} : vector<2x128xf32> to vector<2x32xf32>
    %675 = arith.mulf %672, %650 : vector<2x32xf32>
    %676 = arith.mulf %671, %673 : vector<2x32xf32>
    %677 = arith.addf %675, %676 : vector<2x32xf32>
    %678 = math.tanh %677 : vector<2x32xf32>
    %679 = arith.mulf %674, %678 : vector<2x32xf32>
    %680 = arith.index_cast %c7_i32_284 : i32 to index
    %c0_293 = arith.constant 0 : index
    %c0_294 = arith.constant 0 : index
    %681 = vector.load %arg22[%680, %c0_293, %c0_294] : memref<8x2x64xf32, #tpu.memory_space<vmem>>, vector<1x2x32xf32>
    %682 = vector.shape_cast %681 : vector<1x2x32xf32> to vector<2x32xf32>
    %683 = vector.shape_cast %679 : vector<2x32xf32> to vector<1x2x32xf32>
    tpu.vector_store %arg22[%680, %c0_293, %c0_294], %683 {strides = array<i32>} : memref<8x2x64xf32, #tpu.memory_space<vmem>>, vector<1x2x32xf32>,
    %c8_i32_295 = arith.constant 8 : i32
    %c0_296 = arith.constant 0 : index
    %c0_297 = arith.constant 0 : index
    %684 = vector.load %arg11[%c0_296, %c0_297] : memref<64x128xf32, #tpu.memory_space<vmem>>, vector<64x128xf32>
    %cst_298 = arith.constant dense<0.000000e+00> : vector<16x128xf32>
    %685 = tpu.matmul %459, %684, %cst_298 {dimension_numbers = #tpu.dot_dimension_numbers<[1], [0], [0], [1], [0, 0, 1, 1], [], []>} : vector<16x64xf32>, vector<64x128xf32>, vector<16x128xf32> -> vector<16x128xf32>
    %c0_299 = arith.constant 0 : index
    %c0_300 = arith.constant 0 : index
    %686 = vector.load %arg13[%c0_299, %c0_300] : memref<1x128xf32, #tpu.memory_space<vmem>>, vector<1x128xf32>
    %687 = vector.broadcast %686 : vector<1x128xf32> to vector<16x128xf32>
    %688 = arith.addf %685, %687 : vector<16x128xf32>
    %689 = vector.shape_cast %688 : vector<16x128xf32> to vector<8x2x128xf32>
    %c0_301 = arith.constant 0 : index
    %c0_302 = arith.constant 0 : index
    %c0_303 = arith.constant 0 : index
    %690 = vector.load %arg21[%c0_301, %c0_302, %c0_303] : memref<8x2x128xf32, #tpu.memory_space<vmem>>, vector<8x2x128xf32>
    tpu.vector_store %arg21[%c0_301, %c0_302, %c0_303], %689 {strides = array<i32>} : memref<8x2x128xf32, #tpu.memory_space<vmem>>, vector<8x2x128xf32>,
    %cst_304 = arith.constant 0.000000e+00 : f32
    %691 = vector.broadcast %cst_304 : f32 to vector<2x32xf32>
    %c0_i32_305 = arith.constant 0 : i32
    %c7_i32_306 = arith.constant 7 : i32
    %692 = arith.subi %c7_i32_306, %c0_i32_305 : i32
    %693 = arith.index_cast %692 : i32 to index
    %c0_307 = arith.constant 0 : index
    %c0_308 = arith.constant 0 : index
    %694 = vector.load %arg21[%693, %c0_307, %c0_308] : memref<8x2x128xf32, #tpu.memory_space<vmem>>, vector<1x2x128xf32>
    %695 = vector.shape_cast %694 : vector<1x2x128xf32> to vector<2x128xf32>
    %c0_309 = arith.constant 0 : index
    %c0_310 = arith.constant 0 : index
    %696 = vector.load %arg12[%c0_309, %c0_310] : memref<32x128xf32, #tpu.memory_space<vmem>>, vector<32x128xf32>
    %cst_311 = arith.constant dense<0.000000e+00> : vector<2x128xf32>
    %697 = tpu.matmul %691, %696, %cst_311 {dimension_numbers = #tpu.dot_dimension_numbers<[1], [0], [0], [1], [0, 0, 1, 1], [], []>} : vector<2x32xf32>, vector<32x128xf32>, vector<2x128xf32> -> vector<2x128xf32>
    %698 = arith.addf %695, %697 : vector<2x128xf32>
    %cst_312 = arith.constant 5.000000e-01 : f32
    %699 = vector.broadcast %cst_312 : f32 to vector<2x128xf32>
    %700 = arith.mulf %699, %698 : vector<2x128xf32>
    %701 = math.tanh %700 : vector<2x128xf32>
    %cst_313 = arith.constant 1.000000e+00 : f32
    %702 = vector.broadcast %cst_313 : f32 to vector<2x128xf32>
    %703 = arith.addf %701, %702 : vector<2x128xf32>
    %cst_314 = arith.constant 5.000000e-01 : f32
    %704 = vector.broadcast %cst_314 : f32 to vector<2x128xf32>
    %705 = arith.mulf %704, %703 : vector<2x128xf32>
    %706 = math.tanh %698 : vector<2x128xf32>
    %707 = vector.extract_strided_slice %705 {offsets = [0, 0], sizes = [2, 32], strides = [1, 1]} : vector<2x128xf32> to vector<2x32xf32>
    %708 = vector.extract_strided_slice %705 {offsets = [0, 32], sizes = [2, 32], strides = [1, 1]} : vector<2x128xf32> to vector<2x32xf32>
    %709 = vector.extract_strided_slice %706 {offsets = [0, 64], sizes = [2, 32], strides = [1, 1]} : vector<2x128xf32> to vector<2x32xf32>
    %710 = vector.extract_strided_slice %705 {offsets = [0, 96], sizes = [2, 32], strides = [1, 1]} : vector<2x128xf32> to vector<2x32xf32>
    %711 = arith.mulf %708, %691 : vector<2x32xf32>
    %712 = arith.mulf %707, %709 : vector<2x32xf32>
    %713 = arith.addf %711, %712 : vector<2x32xf32>
    %714 = math.tanh %713 : vector<2x32xf32>
    %715 = arith.mulf %710, %714 : vector<2x32xf32>
    %716 = arith.index_cast %692 : i32 to index
    %c0_315 = arith.constant 0 : index
    %c32_316 = arith.constant 32 : index
    %717 = vector.load %arg22[%716, %c0_315, %c32_316] : memref<8x2x64xf32, #tpu.memory_space<vmem>>, vector<1x2x32xf32>
    %718 = vector.shape_cast %717 : vector<1x2x32xf32> to vector<2x32xf32>
    %719 = vector.shape_cast %715 : vector<2x32xf32> to vector<1x2x32xf32>
    tpu.vector_store %arg22[%716, %c0_315, %c32_316], %719 {strides = array<i32>} : memref<8x2x64xf32, #tpu.memory_space<vmem>>, vector<1x2x32xf32>,
    %c1_i32_317 = arith.constant 1 : i32
    %c7_i32_318 = arith.constant 7 : i32
    %720 = arith.subi %c7_i32_318, %c1_i32_317 : i32
    %721 = arith.index_cast %720 : i32 to index
    %c0_319 = arith.constant 0 : index
    %c0_320 = arith.constant 0 : index
    %722 = vector.load %arg21[%721, %c0_319, %c0_320] : memref<8x2x128xf32, #tpu.memory_space<vmem>>, vector<1x2x128xf32>
    %723 = vector.shape_cast %722 : vector<1x2x128xf32> to vector<2x128xf32>
    %c0_321 = arith.constant 0 : index
    %c0_322 = arith.constant 0 : index
    %724 = vector.load %arg12[%c0_321, %c0_322] : memref<32x128xf32, #tpu.memory_space<vmem>>, vector<32x128xf32>
    %cst_323 = arith.constant dense<0.000000e+00> : vector<2x128xf32>
    %725 = tpu.matmul %715, %724, %cst_323 {dimension_numbers = #tpu.dot_dimension_numbers<[1], [0], [0], [1], [0, 0, 1, 1], [], []>} : vector<2x32xf32>, vector<32x128xf32>, vector<2x128xf32> -> vector<2x128xf32>
    %726 = arith.addf %723, %725 : vector<2x128xf32>
    %cst_324 = arith.constant 5.000000e-01 : f32
    %727 = vector.broadcast %cst_324 : f32 to vector<2x128xf32>
    %728 = arith.mulf %727, %726 : vector<2x128xf32>
    %729 = math.tanh %728 : vector<2x128xf32>
    %cst_325 = arith.constant 1.000000e+00 : f32
    %730 = vector.broadcast %cst_325 : f32 to vector<2x128xf32>
    %731 = arith.addf %729, %730 : vector<2x128xf32>
    %cst_326 = arith.constant 5.000000e-01 : f32
    %732 = vector.broadcast %cst_326 : f32 to vector<2x128xf32>
    %733 = arith.mulf %732, %731 : vector<2x128xf32>
    %734 = math.tanh %726 : vector<2x128xf32>
    %735 = vector.extract_strided_slice %733 {offsets = [0, 0], sizes = [2, 32], strides = [1, 1]} : vector<2x128xf32> to vector<2x32xf32>
    %736 = vector.extract_strided_slice %733 {offsets = [0, 32], sizes = [2, 32], strides = [1, 1]} : vector<2x128xf32> to vector<2x32xf32>
    %737 = vector.extract_strided_slice %734 {offsets = [0, 64], sizes = [2, 32], strides = [1, 1]} : vector<2x128xf32> to vector<2x32xf32>
    %738 = vector.extract_strided_slice %733 {offsets = [0, 96], sizes = [2, 32], strides = [1, 1]} : vector<2x128xf32> to vector<2x32xf32>
    %739 = arith.mulf %736, %713 : vector<2x32xf32>
    %740 = arith.mulf %735, %737 : vector<2x32xf32>
    %741 = arith.addf %739, %740 : vector<2x32xf32>
    %742 = math.tanh %741 : vector<2x32xf32>
    %743 = arith.mulf %738, %742 : vector<2x32xf32>
    %744 = arith.index_cast %720 : i32 to index
    %c0_327 = arith.constant 0 : index
    %c32_328 = arith.constant 32 : index
    %745 = vector.load %arg22[%744, %c0_327, %c32_328] : memref<8x2x64xf32, #tpu.memory_space<vmem>>, vector<1x2x32xf32>
    %746 = vector.shape_cast %745 : vector<1x2x32xf32> to vector<2x32xf32>
    %747 = vector.shape_cast %743 : vector<2x32xf32> to vector<1x2x32xf32>
    tpu.vector_store %arg22[%744, %c0_327, %c32_328], %747 {strides = array<i32>} : memref<8x2x64xf32, #tpu.memory_space<vmem>>, vector<1x2x32xf32>,
    %c2_i32_329 = arith.constant 2 : i32
    %c7_i32_330 = arith.constant 7 : i32
    %748 = arith.subi %c7_i32_330, %c2_i32_329 : i32
    %749 = arith.index_cast %748 : i32 to index
    %c0_331 = arith.constant 0 : index
    %c0_332 = arith.constant 0 : index
    %750 = vector.load %arg21[%749, %c0_331, %c0_332] : memref<8x2x128xf32, #tpu.memory_space<vmem>>, vector<1x2x128xf32>
    %751 = vector.shape_cast %750 : vector<1x2x128xf32> to vector<2x128xf32>
    %c0_333 = arith.constant 0 : index
    %c0_334 = arith.constant 0 : index
    %752 = vector.load %arg12[%c0_333, %c0_334] : memref<32x128xf32, #tpu.memory_space<vmem>>, vector<32x128xf32>
    %cst_335 = arith.constant dense<0.000000e+00> : vector<2x128xf32>
    %753 = tpu.matmul %743, %752, %cst_335 {dimension_numbers = #tpu.dot_dimension_numbers<[1], [0], [0], [1], [0, 0, 1, 1], [], []>} : vector<2x32xf32>, vector<32x128xf32>, vector<2x128xf32> -> vector<2x128xf32>
    %754 = arith.addf %751, %753 : vector<2x128xf32>
    %cst_336 = arith.constant 5.000000e-01 : f32
    %755 = vector.broadcast %cst_336 : f32 to vector<2x128xf32>
    %756 = arith.mulf %755, %754 : vector<2x128xf32>
    %757 = math.tanh %756 : vector<2x128xf32>
    %cst_337 = arith.constant 1.000000e+00 : f32
    %758 = vector.broadcast %cst_337 : f32 to vector<2x128xf32>
    %759 = arith.addf %757, %758 : vector<2x128xf32>
    %cst_338 = arith.constant 5.000000e-01 : f32
    %760 = vector.broadcast %cst_338 : f32 to vector<2x128xf32>
    %761 = arith.mulf %760, %759 : vector<2x128xf32>
    %762 = math.tanh %754 : vector<2x128xf32>
    %763 = vector.extract_strided_slice %761 {offsets = [0, 0], sizes = [2, 32], strides = [1, 1]} : vector<2x128xf32> to vector<2x32xf32>
    %764 = vector.extract_strided_slice %761 {offsets = [0, 32], sizes = [2, 32], strides = [1, 1]} : vector<2x128xf32> to vector<2x32xf32>
    %765 = vector.extract_strided_slice %762 {offsets = [0, 64], sizes = [2, 32], strides = [1, 1]} : vector<2x128xf32> to vector<2x32xf32>
    %766 = vector.extract_strided_slice %761 {offsets = [0, 96], sizes = [2, 32], strides = [1, 1]} : vector<2x128xf32> to vector<2x32xf32>
    %767 = arith.mulf %764, %741 : vector<2x32xf32>
    %768 = arith.mulf %763, %765 : vector<2x32xf32>
    %769 = arith.addf %767, %768 : vector<2x32xf32>
    %770 = math.tanh %769 : vector<2x32xf32>
    %771 = arith.mulf %766, %770 : vector<2x32xf32>
    %772 = arith.index_cast %748 : i32 to index
    %c0_339 = arith.constant 0 : index
    %c32_340 = arith.constant 32 : index
    %773 = vector.load %arg22[%772, %c0_339, %c32_340] : memref<8x2x64xf32, #tpu.memory_space<vmem>>, vector<1x2x32xf32>
    %774 = vector.shape_cast %773 : vector<1x2x32xf32> to vector<2x32xf32>
    %775 = vector.shape_cast %771 : vector<2x32xf32> to vector<1x2x32xf32>
    tpu.vector_store %arg22[%772, %c0_339, %c32_340], %775 {strides = array<i32>} : memref<8x2x64xf32, #tpu.memory_space<vmem>>, vector<1x2x32xf32>,
    %c3_i32_341 = arith.constant 3 : i32
    %c7_i32_342 = arith.constant 7 : i32
    %776 = arith.subi %c7_i32_342, %c3_i32_341 : i32
    %777 = arith.index_cast %776 : i32 to index
    %c0_343 = arith.constant 0 : index
    %c0_344 = arith.constant 0 : index
    %778 = vector.load %arg21[%777, %c0_343, %c0_344] : memref<8x2x128xf32, #tpu.memory_space<vmem>>, vector<1x2x128xf32>
    %779 = vector.shape_cast %778 : vector<1x2x128xf32> to vector<2x128xf32>
    %c0_345 = arith.constant 0 : index
    %c0_346 = arith.constant 0 : index
    %780 = vector.load %arg12[%c0_345, %c0_346] : memref<32x128xf32, #tpu.memory_space<vmem>>, vector<32x128xf32>
    %cst_347 = arith.constant dense<0.000000e+00> : vector<2x128xf32>
    %781 = tpu.matmul %771, %780, %cst_347 {dimension_numbers = #tpu.dot_dimension_numbers<[1], [0], [0], [1], [0, 0, 1, 1], [], []>} : vector<2x32xf32>, vector<32x128xf32>, vector<2x128xf32> -> vector<2x128xf32>
    %782 = arith.addf %779, %781 : vector<2x128xf32>
    %cst_348 = arith.constant 5.000000e-01 : f32
    %783 = vector.broadcast %cst_348 : f32 to vector<2x128xf32>
    %784 = arith.mulf %783, %782 : vector<2x128xf32>
    %785 = math.tanh %784 : vector<2x128xf32>
    %cst_349 = arith.constant 1.000000e+00 : f32
    %786 = vector.broadcast %cst_349 : f32 to vector<2x128xf32>
    %787 = arith.addf %785, %786 : vector<2x128xf32>
    %cst_350 = arith.constant 5.000000e-01 : f32
    %788 = vector.broadcast %cst_350 : f32 to vector<2x128xf32>
    %789 = arith.mulf %788, %787 : vector<2x128xf32>
    %790 = math.tanh %782 : vector<2x128xf32>
    %791 = vector.extract_strided_slice %789 {offsets = [0, 0], sizes = [2, 32], strides = [1, 1]} : vector<2x128xf32> to vector<2x32xf32>
    %792 = vector.extract_strided_slice %789 {offsets = [0, 32], sizes = [2, 32], strides = [1, 1]} : vector<2x128xf32> to vector<2x32xf32>
    %793 = vector.extract_strided_slice %790 {offsets = [0, 64], sizes = [2, 32], strides = [1, 1]} : vector<2x128xf32> to vector<2x32xf32>
    %794 = vector.extract_strided_slice %789 {offsets = [0, 96], sizes = [2, 32], strides = [1, 1]} : vector<2x128xf32> to vector<2x32xf32>
    %795 = arith.mulf %792, %769 : vector<2x32xf32>
    %796 = arith.mulf %791, %793 : vector<2x32xf32>
    %797 = arith.addf %795, %796 : vector<2x32xf32>
    %798 = math.tanh %797 : vector<2x32xf32>
    %799 = arith.mulf %794, %798 : vector<2x32xf32>
    %800 = arith.index_cast %776 : i32 to index
    %c0_351 = arith.constant 0 : index
    %c32_352 = arith.constant 32 : index
    %801 = vector.load %arg22[%800, %c0_351, %c32_352] : memref<8x2x64xf32, #tpu.memory_space<vmem>>, vector<1x2x32xf32>
    %802 = vector.shape_cast %801 : vector<1x2x32xf32> to vector<2x32xf32>
    %803 = vector.shape_cast %799 : vector<2x32xf32> to vector<1x2x32xf32>
    tpu.vector_store %arg22[%800, %c0_351, %c32_352], %803 {strides = array<i32>} : memref<8x2x64xf32, #tpu.memory_space<vmem>>, vector<1x2x32xf32>,
    %c4_i32_353 = arith.constant 4 : i32
    %c7_i32_354 = arith.constant 7 : i32
    %804 = arith.subi %c7_i32_354, %c4_i32_353 : i32
    %805 = arith.index_cast %804 : i32 to index
    %c0_355 = arith.constant 0 : index
    %c0_356 = arith.constant 0 : index
    %806 = vector.load %arg21[%805, %c0_355, %c0_356] : memref<8x2x128xf32, #tpu.memory_space<vmem>>, vector<1x2x128xf32>
    %807 = vector.shape_cast %806 : vector<1x2x128xf32> to vector<2x128xf32>
    %c0_357 = arith.constant 0 : index
    %c0_358 = arith.constant 0 : index
    %808 = vector.load %arg12[%c0_357, %c0_358] : memref<32x128xf32, #tpu.memory_space<vmem>>, vector<32x128xf32>
    %cst_359 = arith.constant dense<0.000000e+00> : vector<2x128xf32>
    %809 = tpu.matmul %799, %808, %cst_359 {dimension_numbers = #tpu.dot_dimension_numbers<[1], [0], [0], [1], [0, 0, 1, 1], [], []>} : vector<2x32xf32>, vector<32x128xf32>, vector<2x128xf32> -> vector<2x128xf32>
    %810 = arith.addf %807, %809 : vector<2x128xf32>
    %cst_360 = arith.constant 5.000000e-01 : f32
    %811 = vector.broadcast %cst_360 : f32 to vector<2x128xf32>
    %812 = arith.mulf %811, %810 : vector<2x128xf32>
    %813 = math.tanh %812 : vector<2x128xf32>
    %cst_361 = arith.constant 1.000000e+00 : f32
    %814 = vector.broadcast %cst_361 : f32 to vector<2x128xf32>
    %815 = arith.addf %813, %814 : vector<2x128xf32>
    %cst_362 = arith.constant 5.000000e-01 : f32
    %816 = vector.broadcast %cst_362 : f32 to vector<2x128xf32>
    %817 = arith.mulf %816, %815 : vector<2x128xf32>
    %818 = math.tanh %810 : vector<2x128xf32>
    %819 = vector.extract_strided_slice %817 {offsets = [0, 0], sizes = [2, 32], strides = [1, 1]} : vector<2x128xf32> to vector<2x32xf32>
    %820 = vector.extract_strided_slice %817 {offsets = [0, 32], sizes = [2, 32], strides = [1, 1]} : vector<2x128xf32> to vector<2x32xf32>
    %821 = vector.extract_strided_slice %818 {offsets = [0, 64], sizes = [2, 32], strides = [1, 1]} : vector<2x128xf32> to vector<2x32xf32>
    %822 = vector.extract_strided_slice %817 {offsets = [0, 96], sizes = [2, 32], strides = [1, 1]} : vector<2x128xf32> to vector<2x32xf32>
    %823 = arith.mulf %820, %797 : vector<2x32xf32>
    %824 = arith.mulf %819, %821 : vector<2x32xf32>
    %825 = arith.addf %823, %824 : vector<2x32xf32>
    %826 = math.tanh %825 : vector<2x32xf32>
    %827 = arith.mulf %822, %826 : vector<2x32xf32>
    %828 = arith.index_cast %804 : i32 to index
    %c0_363 = arith.constant 0 : index
    %c32_364 = arith.constant 32 : index
    %829 = vector.load %arg22[%828, %c0_363, %c32_364] : memref<8x2x64xf32, #tpu.memory_space<vmem>>, vector<1x2x32xf32>
    %830 = vector.shape_cast %829 : vector<1x2x32xf32> to vector<2x32xf32>
    %831 = vector.shape_cast %827 : vector<2x32xf32> to vector<1x2x32xf32>
    tpu.vector_store %arg22[%828, %c0_363, %c32_364], %831 {strides = array<i32>} : memref<8x2x64xf32, #tpu.memory_space<vmem>>, vector<1x2x32xf32>,
    %c5_i32_365 = arith.constant 5 : i32
    %c7_i32_366 = arith.constant 7 : i32
    %832 = arith.subi %c7_i32_366, %c5_i32_365 : i32
    %833 = arith.index_cast %832 : i32 to index
    %c0_367 = arith.constant 0 : index
    %c0_368 = arith.constant 0 : index
    %834 = vector.load %arg21[%833, %c0_367, %c0_368] : memref<8x2x128xf32, #tpu.memory_space<vmem>>, vector<1x2x128xf32>
    %835 = vector.shape_cast %834 : vector<1x2x128xf32> to vector<2x128xf32>
    %c0_369 = arith.constant 0 : index
    %c0_370 = arith.constant 0 : index
    %836 = vector.load %arg12[%c0_369, %c0_370] : memref<32x128xf32, #tpu.memory_space<vmem>>, vector<32x128xf32>
    %cst_371 = arith.constant dense<0.000000e+00> : vector<2x128xf32>
    %837 = tpu.matmul %827, %836, %cst_371 {dimension_numbers = #tpu.dot_dimension_numbers<[1], [0], [0], [1], [0, 0, 1, 1], [], []>} : vector<2x32xf32>, vector<32x128xf32>, vector<2x128xf32> -> vector<2x128xf32>
    %838 = arith.addf %835, %837 : vector<2x128xf32>
    %cst_372 = arith.constant 5.000000e-01 : f32
    %839 = vector.broadcast %cst_372 : f32 to vector<2x128xf32>
    %840 = arith.mulf %839, %838 : vector<2x128xf32>
    %841 = math.tanh %840 : vector<2x128xf32>
    %cst_373 = arith.constant 1.000000e+00 : f32
    %842 = vector.broadcast %cst_373 : f32 to vector<2x128xf32>
    %843 = arith.addf %841, %842 : vector<2x128xf32>
    %cst_374 = arith.constant 5.000000e-01 : f32
    %844 = vector.broadcast %cst_374 : f32 to vector<2x128xf32>
    %845 = arith.mulf %844, %843 : vector<2x128xf32>
    %846 = math.tanh %838 : vector<2x128xf32>
    %847 = vector.extract_strided_slice %845 {offsets = [0, 0], sizes = [2, 32], strides = [1, 1]} : vector<2x128xf32> to vector<2x32xf32>
    %848 = vector.extract_strided_slice %845 {offsets = [0, 32], sizes = [2, 32], strides = [1, 1]} : vector<2x128xf32> to vector<2x32xf32>
    %849 = vector.extract_strided_slice %846 {offsets = [0, 64], sizes = [2, 32], strides = [1, 1]} : vector<2x128xf32> to vector<2x32xf32>
    %850 = vector.extract_strided_slice %845 {offsets = [0, 96], sizes = [2, 32], strides = [1, 1]} : vector<2x128xf32> to vector<2x32xf32>
    %851 = arith.mulf %848, %825 : vector<2x32xf32>
    %852 = arith.mulf %847, %849 : vector<2x32xf32>
    %853 = arith.addf %851, %852 : vector<2x32xf32>
    %854 = math.tanh %853 : vector<2x32xf32>
    %855 = arith.mulf %850, %854 : vector<2x32xf32>
    %856 = arith.index_cast %832 : i32 to index
    %c0_375 = arith.constant 0 : index
    %c32_376 = arith.constant 32 : index
    %857 = vector.load %arg22[%856, %c0_375, %c32_376] : memref<8x2x64xf32, #tpu.memory_space<vmem>>, vector<1x2x32xf32>
    %858 = vector.shape_cast %857 : vector<1x2x32xf32> to vector<2x32xf32>
    %859 = vector.shape_cast %855 : vector<2x32xf32> to vector<1x2x32xf32>
    tpu.vector_store %arg22[%856, %c0_375, %c32_376], %859 {strides = array<i32>} : memref<8x2x64xf32, #tpu.memory_space<vmem>>, vector<1x2x32xf32>,
    %c6_i32_377 = arith.constant 6 : i32
    %c7_i32_378 = arith.constant 7 : i32
    %860 = arith.subi %c7_i32_378, %c6_i32_377 : i32
    %861 = arith.index_cast %860 : i32 to index
    %c0_379 = arith.constant 0 : index
    %c0_380 = arith.constant 0 : index
    %862 = vector.load %arg21[%861, %c0_379, %c0_380] : memref<8x2x128xf32, #tpu.memory_space<vmem>>, vector<1x2x128xf32>
    %863 = vector.shape_cast %862 : vector<1x2x128xf32> to vector<2x128xf32>
    %c0_381 = arith.constant 0 : index
    %c0_382 = arith.constant 0 : index
    %864 = vector.load %arg12[%c0_381, %c0_382] : memref<32x128xf32, #tpu.memory_space<vmem>>, vector<32x128xf32>
    %cst_383 = arith.constant dense<0.000000e+00> : vector<2x128xf32>
    %865 = tpu.matmul %855, %864, %cst_383 {dimension_numbers = #tpu.dot_dimension_numbers<[1], [0], [0], [1], [0, 0, 1, 1], [], []>} : vector<2x32xf32>, vector<32x128xf32>, vector<2x128xf32> -> vector<2x128xf32>
    %866 = arith.addf %863, %865 : vector<2x128xf32>
    %cst_384 = arith.constant 5.000000e-01 : f32
    %867 = vector.broadcast %cst_384 : f32 to vector<2x128xf32>
    %868 = arith.mulf %867, %866 : vector<2x128xf32>
    %869 = math.tanh %868 : vector<2x128xf32>
    %cst_385 = arith.constant 1.000000e+00 : f32
    %870 = vector.broadcast %cst_385 : f32 to vector<2x128xf32>
    %871 = arith.addf %869, %870 : vector<2x128xf32>
    %cst_386 = arith.constant 5.000000e-01 : f32
    %872 = vector.broadcast %cst_386 : f32 to vector<2x128xf32>
    %873 = arith.mulf %872, %871 : vector<2x128xf32>
    %874 = math.tanh %866 : vector<2x128xf32>
    %875 = vector.extract_strided_slice %873 {offsets = [0, 0], sizes = [2, 32], strides = [1, 1]} : vector<2x128xf32> to vector<2x32xf32>
    %876 = vector.extract_strided_slice %873 {offsets = [0, 32], sizes = [2, 32], strides = [1, 1]} : vector<2x128xf32> to vector<2x32xf32>
    %877 = vector.extract_strided_slice %874 {offsets = [0, 64], sizes = [2, 32], strides = [1, 1]} : vector<2x128xf32> to vector<2x32xf32>
    %878 = vector.extract_strided_slice %873 {offsets = [0, 96], sizes = [2, 32], strides = [1, 1]} : vector<2x128xf32> to vector<2x32xf32>
    %879 = arith.mulf %876, %853 : vector<2x32xf32>
    %880 = arith.mulf %875, %877 : vector<2x32xf32>
    %881 = arith.addf %879, %880 : vector<2x32xf32>
    %882 = math.tanh %881 : vector<2x32xf32>
    %883 = arith.mulf %878, %882 : vector<2x32xf32>
    %884 = arith.index_cast %860 : i32 to index
    %c0_387 = arith.constant 0 : index
    %c32_388 = arith.constant 32 : index
    %885 = vector.load %arg22[%884, %c0_387, %c32_388] : memref<8x2x64xf32, #tpu.memory_space<vmem>>, vector<1x2x32xf32>
    %886 = vector.shape_cast %885 : vector<1x2x32xf32> to vector<2x32xf32>
    %887 = vector.shape_cast %883 : vector<2x32xf32> to vector<1x2x32xf32>
    tpu.vector_store %arg22[%884, %c0_387, %c32_388], %887 {strides = array<i32>} : memref<8x2x64xf32, #tpu.memory_space<vmem>>, vector<1x2x32xf32>,
    %c7_i32_389 = arith.constant 7 : i32
    %c7_i32_390 = arith.constant 7 : i32
    %888 = arith.subi %c7_i32_390, %c7_i32_389 : i32
    %889 = arith.index_cast %888 : i32 to index
    %c0_391 = arith.constant 0 : index
    %c0_392 = arith.constant 0 : index
    %890 = vector.load %arg21[%889, %c0_391, %c0_392] : memref<8x2x128xf32, #tpu.memory_space<vmem>>, vector<1x2x128xf32>
    %891 = vector.shape_cast %890 : vector<1x2x128xf32> to vector<2x128xf32>
    %c0_393 = arith.constant 0 : index
    %c0_394 = arith.constant 0 : index
    %892 = vector.load %arg12[%c0_393, %c0_394] : memref<32x128xf32, #tpu.memory_space<vmem>>, vector<32x128xf32>
    %cst_395 = arith.constant dense<0.000000e+00> : vector<2x128xf32>
    %893 = tpu.matmul %883, %892, %cst_395 {dimension_numbers = #tpu.dot_dimension_numbers<[1], [0], [0], [1], [0, 0, 1, 1], [], []>} : vector<2x32xf32>, vector<32x128xf32>, vector<2x128xf32> -> vector<2x128xf32>
    %894 = arith.addf %891, %893 : vector<2x128xf32>
    %cst_396 = arith.constant 5.000000e-01 : f32
    %895 = vector.broadcast %cst_396 : f32 to vector<2x128xf32>
    %896 = arith.mulf %895, %894 : vector<2x128xf32>
    %897 = math.tanh %896 : vector<2x128xf32>
    %cst_397 = arith.constant 1.000000e+00 : f32
    %898 = vector.broadcast %cst_397 : f32 to vector<2x128xf32>
    %899 = arith.addf %897, %898 : vector<2x128xf32>
    %cst_398 = arith.constant 5.000000e-01 : f32
    %900 = vector.broadcast %cst_398 : f32 to vector<2x128xf32>
    %901 = arith.mulf %900, %899 : vector<2x128xf32>
    %902 = math.tanh %894 : vector<2x128xf32>
    %903 = vector.extract_strided_slice %901 {offsets = [0, 0], sizes = [2, 32], strides = [1, 1]} : vector<2x128xf32> to vector<2x32xf32>
    %904 = vector.extract_strided_slice %901 {offsets = [0, 32], sizes = [2, 32], strides = [1, 1]} : vector<2x128xf32> to vector<2x32xf32>
    %905 = vector.extract_strided_slice %902 {offsets = [0, 64], sizes = [2, 32], strides = [1, 1]} : vector<2x128xf32> to vector<2x32xf32>
    %906 = vector.extract_strided_slice %901 {offsets = [0, 96], sizes = [2, 32], strides = [1, 1]} : vector<2x128xf32> to vector<2x32xf32>
    %907 = arith.mulf %904, %881 : vector<2x32xf32>
    %908 = arith.mulf %903, %905 : vector<2x32xf32>
    %909 = arith.addf %907, %908 : vector<2x32xf32>
    %910 = math.tanh %909 : vector<2x32xf32>
    %911 = arith.mulf %906, %910 : vector<2x32xf32>
    %912 = arith.index_cast %888 : i32 to index
    %c0_399 = arith.constant 0 : index
    %c32_400 = arith.constant 32 : index
    %913 = vector.load %arg22[%912, %c0_399, %c32_400] : memref<8x2x64xf32, #tpu.memory_space<vmem>>, vector<1x2x32xf32>
    %914 = vector.shape_cast %913 : vector<1x2x32xf32> to vector<2x32xf32>
    %915 = vector.shape_cast %911 : vector<2x32xf32> to vector<1x2x32xf32>
    tpu.vector_store %arg22[%912, %c0_399, %c32_400], %915 {strides = array<i32>} : memref<8x2x64xf32, #tpu.memory_space<vmem>>, vector<1x2x32xf32>,
    %c8_i32_401 = arith.constant 8 : i32
    %c0_402 = arith.constant 0 : index
    %c0_403 = arith.constant 0 : index
    %c0_404 = arith.constant 0 : index
    %916 = vector.load %arg22[%c0_402, %c0_403, %c0_404] : memref<8x2x64xf32, #tpu.memory_space<vmem>>, vector<8x2x64xf32>
    %917 = vector.shape_cast %916 : vector<8x2x64xf32> to vector<16x64xf32>
    %c0_405 = arith.constant 0 : index
    %c0_406 = arith.constant 0 : index
    %918 = vector.load %arg14[%c0_405, %c0_406] : memref<64x64xf32, #tpu.memory_space<vmem>>, vector<64x64xf32>
    %cst_407 = arith.constant dense<0.000000e+00> : vector<16x64xf32>
    %919 = tpu.matmul %917, %918, %cst_407 {dimension_numbers = #tpu.dot_dimension_numbers<[1], [0], [0], [1], [0, 0, 1, 1], [], []>} : vector<16x64xf32>, vector<64x64xf32>, vector<16x64xf32> -> vector<16x64xf32>
    %c0_408 = arith.constant 0 : index
    %c0_409 = arith.constant 0 : index
    %920 = vector.load %arg15[%c0_408, %c0_409] : memref<1x64xf32, #tpu.memory_space<vmem>>, vector<1x64xf32>
    %921 = vector.broadcast %920 : vector<1x64xf32> to vector<16x64xf32>
    %922 = arith.addf %919, %921 : vector<16x64xf32>
    %cst_410 = arith.constant 5.000000e-01 : f32
    %923 = vector.broadcast %cst_410 : f32 to vector<16x64xf32>
    %924 = arith.mulf %923, %922 : vector<16x64xf32>
    %cst_411 = arith.constant 4.471500e-02 : f32
    %925 = vector.broadcast %cst_411 : f32 to vector<16x64xf32>
    %926 = arith.mulf %925, %922 : vector<16x64xf32>
    %927 = arith.mulf %926, %922 : vector<16x64xf32>
    %928 = arith.mulf %927, %922 : vector<16x64xf32>
    %929 = arith.addf %922, %928 : vector<16x64xf32>
    %cst_412 = arith.constant 0.797884583 : f32
    %930 = vector.broadcast %cst_412 : f32 to vector<16x64xf32>
    %931 = arith.mulf %930, %929 : vector<16x64xf32>
    %932 = math.tanh %931 : vector<16x64xf32>
    %cst_413 = arith.constant 1.000000e+00 : f32
    %933 = vector.broadcast %cst_413 : f32 to vector<16x64xf32>
    %934 = arith.addf %933, %932 : vector<16x64xf32>
    %935 = arith.mulf %924, %934 : vector<16x64xf32>
    %c0_414 = arith.constant 0 : index
    %c0_415 = arith.constant 0 : index
    %936 = vector.load %arg16[%c0_414, %c0_415] : memref<64x128xf32, #tpu.memory_space<vmem>>, vector<64x128xf32>
    %cst_416 = arith.constant dense<0.000000e+00> : vector<16x128xf32>
    %937 = tpu.matmul %935, %936, %cst_416 {dimension_numbers = #tpu.dot_dimension_numbers<[1], [0], [0], [1], [0, 0, 1, 1], [], []>} : vector<16x64xf32>, vector<64x128xf32>, vector<16x128xf32> -> vector<16x128xf32>
    %c0_417 = arith.constant 0 : index
    %c0_418 = arith.constant 0 : index
    %938 = vector.load %arg17[%c0_417, %c0_418] : memref<1x128xf32, #tpu.memory_space<vmem>>, vector<1x128xf32>
    %939 = vector.broadcast %938 : vector<1x128xf32> to vector<16x128xf32>
    %940 = arith.addf %937, %939 : vector<16x128xf32>
    %941 = tpu.iota {dimensions = array<i32: 1>} : vector<16x128xi32>
    %c43_i32 = arith.constant 43 : i32
    %942 = vector.broadcast %c43_i32 : i32 to vector<16x128xi32>
    %943 = arith.cmpi slt, %941, %942 : vector<16x128xi32>
    %cst_419 = arith.constant -1.000000e+30 : f32
    %944 = vector.broadcast %cst_419 : f32 to vector<16x128xf32>
    %945 = arith.select %943, %940, %944 : vector<16x128xi1>, vector<16x128xf32>
    %cst_420 = arith.constant dense<0xFF800000> : vector<16xf32>
    %946 = vector.multi_reduction <maximumf>, %945, %cst_420 [1] : vector<16x128xf32> to vector<16xf32>
    %947 = vector.shape_cast %946 : vector<16xf32> to vector<16x1xf32>
    %948 = vector.broadcast %947 : vector<16x1xf32> to vector<16x128xf32>
    %949 = arith.subf %945, %948 : vector<16x128xf32>
    %950 = math.exp %949 : vector<16x128xf32>
    %cst_421 = arith.constant dense<0.000000e+00> : vector<16xf32>
    %951 = vector.multi_reduction <add>, %950, %cst_421 [1] : vector<16x128xf32> to vector<16xf32>
    %952 = vector.shape_cast %951 : vector<16xf32> to vector<16x1xf32>
    %953 = tpu.reciprocal %952 {approx = true} : vector<16x1xf32> -> vector<16x1xf32>
    %954 = vector.broadcast %953 : vector<16x1xf32> to vector<16x128xf32>
    %955 = arith.mulf %950, %954 : vector<16x128xf32>
    %956 = vector.shape_cast %955 : vector<16x128xf32> to vector<8x2x128xf32>
    %c0_422 = arith.constant 0 : index
    %c0_423 = arith.constant 0 : index
    %c0_424 = arith.constant 0 : index
    %957 = vector.load %arg18[%c0_422, %c0_423, %c0_424] : memref<8x2x128xf32, #tpu.memory_space<vmem>>, vector<8x2x128xf32>
    tpu.vector_store %arg18[%c0_422, %c0_423, %c0_424], %956 {strides = array<i32>} : memref<8x2x128xf32, #tpu.memory_space<vmem>>, vector<8x2x128xf32>,
    return
  }
  func.func @transform_0(%arg0: i32) -> (i32, i32, i32) {
    %c0_i32 = arith.constant 0 : i32
    %c0_i32_0 = arith.constant 0 : i32
    %c0_i32_1 = arith.constant 0 : i32
    %c0_i32_2 = arith.constant 0 : i32
    return %c0_i32, %c0_i32_0, %c0_i32_1 : i32, i32, i32
  }
  func.func @transform_1(%arg0: i32) -> (i32, i32) {
    %c0_i32 = arith.constant 0 : i32
    %c0_i32_0 = arith.constant 0 : i32
    %c0_i32_1 = arith.constant 0 : i32
    return %c0_i32, %c0_i32_0 : i32, i32
  }
  func.func @transform_2(%arg0: i32) -> (i32, i32) {
    %c0_i32 = arith.constant 0 : i32
    %c0_i32_0 = arith.constant 0 : i32
    %c0_i32_1 = arith.constant 0 : i32
    return %c0_i32, %c0_i32_0 : i32, i32
  }
  func.func @transform_3(%arg0: i32) -> (i32, i32) {
    %c0_i32 = arith.constant 0 : i32
    %c0_i32_0 = arith.constant 0 : i32
    %c0_i32_1 = arith.constant 0 : i32
    return %c0_i32, %c0_i32_0 : i32, i32
  }
  func.func @transform_4(%arg0: i32) -> (i32, i32) {
    %c0_i32 = arith.constant 0 : i32
    %c0_i32_0 = arith.constant 0 : i32
    %c0_i32_1 = arith.constant 0 : i32
    return %c0_i32, %c0_i32_0 : i32, i32
  }
  func.func @transform_5(%arg0: i32) -> (i32, i32) {
    %c0_i32 = arith.constant 0 : i32
    %c0_i32_0 = arith.constant 0 : i32
    %c0_i32_1 = arith.constant 0 : i32
    return %c0_i32, %c0_i32_0 : i32, i32
  }
  func.func @transform_6(%arg0: i32) -> (i32, i32) {
    %c0_i32 = arith.constant 0 : i32
    %c0_i32_0 = arith.constant 0 : i32
    %c0_i32_1 = arith.constant 0 : i32
    return %c0_i32, %c0_i32_0 : i32, i32
  }
  func.func @transform_7(%arg0: i32) -> (i32, i32) {
    %c0_i32 = arith.constant 0 : i32
    %c0_i32_0 = arith.constant 0 : i32
    %c0_i32_1 = arith.constant 0 : i32
    return %c0_i32, %c0_i32_0 : i32, i32
  }
  func.func @transform_8(%arg0: i32) -> (i32, i32) {
    %c0_i32 = arith.constant 0 : i32
    %c0_i32_0 = arith.constant 0 : i32
    %c0_i32_1 = arith.constant 0 : i32
    return %c0_i32, %c0_i32_0 : i32, i32
  }
  func.func @transform_9(%arg0: i32) -> (i32, i32) {
    %c0_i32 = arith.constant 0 : i32
    %c0_i32_0 = arith.constant 0 : i32
    %c0_i32_1 = arith.constant 0 : i32
    return %c0_i32, %c0_i32_0 : i32, i32
  }
  func.func @transform_10(%arg0: i32) -> (i32, i32) {
    %c0_i32 = arith.constant 0 : i32
    %c0_i32_0 = arith.constant 0 : i32
    %c0_i32_1 = arith.constant 0 : i32
    return %c0_i32, %c0_i32_0 : i32, i32
  }
  func.func @transform_11(%arg0: i32) -> (i32, i32) {
    %c0_i32 = arith.constant 0 : i32
    %c0_i32_0 = arith.constant 0 : i32
    %c0_i32_1 = arith.constant 0 : i32
    return %c0_i32, %c0_i32_0 : i32, i32
  }
  func.func @transform_12(%arg0: i32) -> (i32, i32) {
    %c0_i32 = arith.constant 0 : i32
    %c0_i32_0 = arith.constant 0 : i32
    %c0_i32_1 = arith.constant 0 : i32
    return %c0_i32, %c0_i32_0 : i32, i32
  }
  func.func @transform_13(%arg0: i32) -> (i32, i32) {
    %c0_i32 = arith.constant 0 : i32
    %c0_i32_0 = arith.constant 0 : i32
    %c0_i32_1 = arith.constant 0 : i32
    return %c0_i32, %c0_i32_0 : i32, i32
  }
  func.func @transform_14(%arg0: i32) -> (i32, i32) {
    %c0_i32 = arith.constant 0 : i32
    %c0_i32_0 = arith.constant 0 : i32
    %c0_i32_1 = arith.constant 0 : i32
    return %c0_i32, %c0_i32_0 : i32, i32
  }
  func.func @transform_15(%arg0: i32) -> (i32, i32) {
    %c0_i32 = arith.constant 0 : i32
    %c0_i32_0 = arith.constant 0 : i32
    %c0_i32_1 = arith.constant 0 : i32
    return %c0_i32, %c0_i32_0 : i32, i32
  }
  func.func @transform_16(%arg0: i32) -> (i32, i32) {
    %c0_i32 = arith.constant 0 : i32
    %c0_i32_0 = arith.constant 0 : i32
    %c0_i32_1 = arith.constant 0 : i32
    return %c0_i32, %c0_i32_0 : i32, i32
  }
  func.func @transform_17(%arg0: i32) -> (i32, i32, i32) {
    %c0_i32 = arith.constant 0 : i32
    %c0_i32_0 = arith.constant 0 : i32
    %c0_i32_1 = arith.constant 0 : i32
    %c0_i32_2 = arith.constant 0 : i32
    return %c0_i32, %c0_i32_0, %c0_i32_1 : i32, i32, i32
  }
}

</mosaic_0001>

<bundles_post_ra>
// kernel: baseline_forward.1
= control target key start
LH: loop header
LB: loop body
LE: loop exit
PB: predicated region body
PF: predicated region fallthrough
CT: control target
= control target key end

     0   :  { %s7113_s0 = inlined_call_operand.vmem [shape: f32[8,2,16], index: 0, kind: input, shape index: {}]   ;;  %s7114_s1 = inlined_call_operand.vmem [shape: f32[16,128], index: 1, kind: input, shape index: {}]   ;;  %s7115_s2 = inlined_call_operand.hbm [shape: f32[32,128], index: 2, kind: input, shape index: {}]   ;;  %s7116_s3 = inlined_call_operand.hbm [shape: f32[1,128], index: 3, kind: input, shape index: {}]   ;;  %s7117_s4 = inlined_call_operand.hbm [shape: f32[16,128], index: 4, kind: input, shape index: {}]   ;;  %s7118_s5 = inlined_call_operand.hbm [shape: f32[32,128], index: 5, kind: input, shape index: {}]   ;;  %s7119_s6 = inlined_call_operand.hbm [shape: f32[1,128], index: 6, kind: input, shape index: {}]   ;;  %s7120_s7 = inlined_call_operand.hbm [shape: f32[64,128], index: 7, kind: input, shape index: {}]   ;;  %s7121_s8 = inlined_call_operand.hbm [shape: f32[32,128], index: 8, kind: input, shape index: {}]   ;;  %s7122_s9 = inlined_call_operand.hbm [shape: f32[1,128], index: 9, kind: input, shape index: {}]   ;;  %s7123_s10 = inlined_call_operand.hbm [shape: f32[64,128], index: 10, kind: input, shape index: {}]   ;;  %s7124_s11 = inlined_call_operand.hbm [shape: f32[32,128], index: 11, kind: input, shape index: {}]   ;;  %s7125_s12 = inlined_call_operand.hbm [shape: f32[1,128], index: 12, kind: input, shape index: {}]   ;;  %s7126_s13 = inlined_call_operand.vmem [shape: f32[64,64], index: 13, kind: input, shape index: {}]   ;;  %s7127_s14 = inlined_call_operand.hbm [shape: f32[1,64], index: 14, kind: input, shape index: {}]   ;;  %s7128_s15 = inlined_call_operand.hbm [shape: f32[64,128], index: 15, kind: input, shape index: {}]   ;;  %s7129_s16 = inlined_call_operand.hbm [shape: f32[1,128], index: 16, kind: input, shape index: {}]   ;;  %s7130_s17 = inlined_call_operand.vmem [shape: f32[8,2,128], index: 17, kind: output, shape index: {}]  }
   0x1   :  { %7133 = sst [smem:[#allocation36_spill]] %s7113_s0 }
   0x2   :  { %7134 = sst [smem:[#allocation37_spill]] %s7114_s1 }
   0x3   :  { %22 = vsyncpa [#allocation7], 0 }
   0x4   :  { %23 = vsyncpa [#allocation9], 0 }
   0x5   :  { %24 = vsyncpa [#allocation12], 0 }
   0x6   :  { %25 = vsyncpa [#allocation15], 0 }
   0x7   :  { %26 = vsyncpa [#allocation18], 0 }
   0x8   :  { %27 = vsyncpa [#allocation21], 0 }
   0x9   :  { %28 = vsyncpa [#allocation24], 0 }
   0xa   :  { %29 = vsyncpa [#allocation27], 0  ;;  %s6189_s24 = smov [#allocation8]   ;;  %s5865_s28 = scalar_lea.hbm %s7116_s3, 16 }
   0xb   :  { %s52_s25 = sshll.u32 %s6189_s24, 4  ;;  %p5866_p0 = scmp.ne.s32.totalorder %s7116_s3, %s5865_s28  ;;  %s53_s25 = int_to_ptr.vmem [resolvable:$true] %s52_s25 }
   0xc   :  { %p5869_p1 = scmp.lt.u32.totalorder %s5865_s28, %s7116_s3 }
   0xe   :  { %p5871_p2 = pnand %p5869_p1, %p5866_p0 }
  0x10   :  { %5874 = shalt.err (!%p5871_p2)
}
  0x11   :  { %s5875_s19 = scalar_lea.vmem %s53_s25, 16  ;;  %s5879_s1 = scalar_lea.vmem %s53_s25, 32 }
  0x12   :  { %p5876_p3 = scmp.ne.s32.totalorder %s53_s25, %s5875_s19  ;;  %p5880_p4 = scmp.lt.s32.totalorder %s53_s25, %s53_s25 }
  0x13   :  { %p5881_p5 = scmp.lt.s32.totalorder %s5879_s1, %s5875_s19 }
  0x15   :  { %p5882_p6 = por %p5881_p5, %p5880_p4 }
  0x17   :  { %p5883_p7 = pnand %p5882_p6, %p5876_p3 }
  0x19   :  { %5886 = shalt.err (!%p5883_p7)
}
  0x1a   :  { %55 = dma.hbm_to_vmem [thread:$0]  %s7116_s3, 16, %s53_s25, [#allocation9]  }
  0x1b   :  { %s6190_s22 = smov [#allocation11]   ;;  %s6191_s24 = smov [#allocation14]  }
  0x1c   :  { %s73_s23 = sshll.u32 %s6190_s22, 4  ;;  %s95_s26 = sshll.u32 %s6191_s24, 4  ;;  %s74_s23 = int_to_ptr.vmem [resolvable:$true] %s73_s23  ;;  %s96_s26 = int_to_ptr.vmem [resolvable:$true] %s95_s26 }
  0x1d   :  { %s5887_s29 = scalar_lea.hbm %s7118_s5, 512 }
  0x1e   :  { %p5888_p8 = scmp.ne.s32.totalorder %s7118_s5, %s5887_s29  ;;  %p5891_p9 = scmp.lt.u32.totalorder %s5887_s29, %s7118_s5 }
  0x20   :  { %p5893_p10 = pnand %p5891_p9, %p5888_p8 }
  0x22   :  { %5896 = shalt.err (!%p5893_p10)
}
  0x23   :  { %s5897_s3 = scalar_lea.vmem %s74_s23, 512  ;;  %p5902_p12 = scmp.lt.s32.totalorder %s74_s23, %s74_s23 }
  0x24   :  { %p5898_p11 = scmp.ne.s32.totalorder %s74_s23, %s5897_s3  ;;  %p5903_p13 = scmp.lt.s32.totalorder %s5897_s3, %s5897_s3 }
  0x26   :  { %p5904_p0 = por %p5903_p13, %p5902_p12 }
  0x28   :  { %p5905_p1 = pnand %p5904_p0, %p5898_p11 }
  0x2a   :  { %5908 = shalt.err (!%p5905_p1)
}
  0x2b   :  { %s6192_s25 = smov 128   ;;  %s6193_s1 = smov 8  }
  0x2c   :  { %79 = dma.hbm_to_vmem [thread:$0]  %s7118_s5, 512, %s74_s23, [#allocation12], %s6192_s25, %s6192_s25, %s6193_s1  }
  0x2d   :  { %s5909_s27 = scalar_lea.hbm %s7120_s7, 1024 }
  0x2e   :  { %p5910_p2 = scmp.ne.s32.totalorder %s7120_s7, %s5909_s27  ;;  %p5913_p3 = scmp.lt.u32.totalorder %s5909_s27, %s7120_s7 }
  0x30   :  { %p5915_p4 = pnand %p5913_p3, %p5910_p2 }
  0x32   :  { %5918 = shalt.err (!%p5915_p4)
}
  0x33   :  { %s5919_s18 = scalar_lea.vmem %s96_s26, 1024  ;;  %p5924_p6 = scmp.lt.s32.totalorder %s96_s26, %s96_s26 }
  0x34   :  { %p5920_p5 = scmp.ne.s32.totalorder %s96_s26, %s5919_s18  ;;  %p5925_p7 = scmp.lt.s32.totalorder %s5919_s18, %s5919_s18 }
  0x36   :  { %p5926_p8 = por %p5925_p7, %p5924_p6 }
  0x38   :  { %p5927_p9 = pnand %p5926_p8, %p5920_p5 }
  0x3a   :  { %5930 = shalt.err (!%p5927_p9)
}
  0x3b   :  { %101 = dma.hbm_to_vmem [thread:$0]  %s7120_s7, 1024, %s96_s26, [#allocation15], %s6192_s25, %s6192_s25, %s6193_s1  }
  0x3c   :  { %s6194_s19 = smov [#allocation17]   ;;  %s6195_s20 = smov [#allocation20]  }
  0x3d   :  { %s120_s3 = sshll.u32 %s6194_s19, 4  ;;  %s141_s21 = sshll.u32 %s6195_s20, 4  ;;  %s121_s3 = int_to_ptr.vmem [resolvable:$true] %s120_s3  ;;  %s142_s21 = int_to_ptr.vmem [resolvable:$true] %s141_s21 }
  0x3e   :  { %s5931_s27 = scalar_lea.hbm %s7122_s9, 16 }
  0x3f   :  { %p5932_p10 = scmp.ne.s32.totalorder %s7122_s9, %s5931_s27  ;;  %p5935_p11 = scmp.lt.u32.totalorder %s5931_s27, %s7122_s9 }
  0x41   :  { %p5937_p12 = pnand %p5935_p11, %p5932_p10 }
  0x43   :  { %5940 = shalt.err (!%p5937_p12)
}
  0x44   :  { %s5941_s7 = scalar_lea.vmem %s121_s3, 16  ;;  %s5945_s26 = scalar_lea.vmem %s121_s3, 32 }
  0x45   :  { %p5942_p13 = scmp.ne.s32.totalorder %s121_s3, %s5941_s7  ;;  %p5946_p0 = scmp.lt.s32.totalorder %s121_s3, %s121_s3 }
  0x46   :  { %p5947_p1 = scmp.lt.s32.totalorder %s5945_s26, %s5941_s7 }
  0x48   :  { %p5948_p2 = por %p5947_p1, %p5946_p0 }
  0x4a   :  { %p5949_p3 = pnand %p5948_p2, %p5942_p13 }
  0x4c   :  { %5952 = shalt.err (!%p5949_p3)
}
  0x4d   :  { %123 = dma.hbm_to_vmem [thread:$0]  %s7122_s9, 16, %s121_s3, [#allocation18]  }
  0x4e   :  { %s5953_s20 = scalar_lea.hbm %s7124_s11, 512 }
  0x4f   :  { %p5954_p4 = scmp.ne.s32.totalorder %s7124_s11, %s5953_s20  ;;  %p5957_p5 = scmp.lt.u32.totalorder %s5953_s20, %s7124_s11 }
  0x51   :  { %p5959_p6 = pnand %p5957_p5, %p5954_p4 }
  0x53   :  { %5962 = shalt.err (!%p5959_p6)
}
  0x54   :  { %s5963_s29 = scalar_lea.vmem %s142_s21, 512  ;;  %p5968_p8 = scmp.lt.s32.totalorder %s142_s21, %s142_s21 }
  0x55   :  { %p5964_p7 = scmp.ne.s32.totalorder %s142_s21, %s5963_s29  ;;  %p5969_p9 = scmp.lt.s32.totalorder %s5963_s29, %s5963_s29 }
  0x57   :  { %p5970_p10 = por %p5969_p9, %p5968_p8 }
  0x59   :  { %p5971_p11 = pnand %p5970_p10, %p5964_p7 }
  0x5b   :  { %5974 = shalt.err (!%p5971_p11)
}
  0x5c   :  { %147 = dma.hbm_to_vmem [thread:$0]  %s7124_s11, 512, %s142_s21, [#allocation21], %s6192_s25, %s6192_s25, %s6193_s1  }
  0x5d   :  { %s6196_s0 = smov [#allocation23]   ;;  %s6197_s7 = smov [#allocation6]  }
  0x5e   :  { %s166_s30 = sshll.u32 %s6196_s0, 4  ;;  %s39_s26 = sshll.u32 %s6197_s7, 4  ;;  %s167_s30 = int_to_ptr.vmem [resolvable:$true] %s166_s30  ;;  %s40_s26 = int_to_ptr.vmem [resolvable:$true] %s39_s26 }
  0x5f   :  { %s5975_s23 = scalar_lea.hbm %s7127_s14, 16 }
  0x60   :  { %p5976_p12 = scmp.ne.s32.totalorder %s7127_s14, %s5975_s23  ;;  %p5979_p13 = scmp.lt.u32.totalorder %s5975_s23, %s7127_s14 }
  0x62   :  { %p5981_p0 = pnand %p5979_p13, %p5976_p12 }
  0x64   :  { %5984 = shalt.err (!%p5981_p0)
}
  0x65   :  { %s5985_s11 = scalar_lea.vmem %s167_s30, 16  ;;  %s5989_s21 = scalar_lea.vmem %s167_s30, 32 }
  0x66   :  { %p5986_p1 = scmp.ne.s32.totalorder %s167_s30, %s5985_s11  ;;  %p5990_p2 = scmp.lt.s32.totalorder %s167_s30, %s167_s30 }
  0x67   :  { %p5991_p3 = scmp.lt.s32.totalorder %s5989_s21, %s5985_s11 }
  0x69   :  { %p5992_p4 = por %p5991_p3, %p5990_p2 }
  0x6b   :  { %p5993_p5 = pnand %p5992_p4, %p5986_p1 }
  0x6d   :  { %5996 = shalt.err (!%p5993_p5)
}
  0x6e   :  { %169 = dma.hbm_to_vmem [thread:$0]  %s7127_s14, 16, %s167_s30, [#allocation24]  }
  0x6f   :  { %s5997_s3 = scalar_lea.hbm %s7115_s2, 512 }
  0x70   :  { %p5998_p6 = scmp.ne.s32.totalorder %s7115_s2, %s5997_s3  ;;  %p6001_p7 = scmp.lt.u32.totalorder %s5997_s3, %s7115_s2 }
  0x72   :  { %p6003_p8 = pnand %p6001_p7, %p5998_p6 }
  0x74   :  { %6006 = shalt.err (!%p6003_p8)
}
  0x75   :  { %s6007_s23 = scalar_lea.vmem %s40_s26, 512  ;;  %p6012_p10 = scmp.lt.s32.totalorder %s40_s26, %s40_s26 }
  0x76   :  { %p6008_p9 = scmp.ne.s32.totalorder %s40_s26, %s6007_s23  ;;  %p6013_p11 = scmp.lt.s32.totalorder %s6007_s23, %s6007_s23 }
  0x78   :  { %p6014_p12 = por %p6013_p11, %p6012_p10 }
  0x7a   :  { %p6015_p13 = pnand %p6014_p12, %p6008_p9 }
  0x7c   :  { %6018 = shalt.err (!%p6015_p13)
}
  0x7d   :  { %45 = dma.hbm_to_vmem [thread:$0]  %s7115_s2, 512, %s40_s26, [#allocation7], %s6192_s25, %s6192_s25, %s6193_s1  }
  0x7e   :  { %s6198_s19 = smov [#allocation10]   ;;  %s6199_s22 = smov [#allocation13]  }
  0x7f   :  { %s61_s20 = sshll.u32 %s6198_s19, 4  ;;  %s86_s24 = sshll.u32 %s6199_s22, 4  ;;  %s62_s20 = int_to_ptr.vmem [resolvable:$true] %s61_s20  ;;  %s87_s24 = int_to_ptr.vmem [resolvable:$true] %s86_s24 }
  0x80   :  { %s6019_s27 = scalar_lea.hbm %s7117_s4, 256 }
  0x81   :  { %p6020_p0 = scmp.ne.s32.totalorder %s7117_s4, %s6019_s27  ;;  %p6023_p1 = scmp.lt.u32.totalorder %s6019_s27, %s7117_s4 }
  0x83   :  { %p6025_p2 = pnand %p6023_p1, %p6020_p0 }
  0x85   :  { %6028 = shalt.err (!%p6025_p2)
}
  0x86   :  { %s6029_s2 = scalar_lea.vmem %s62_s20, 256  ;;  %p6034_p4 = scmp.lt.s32.totalorder %s62_s20, %s62_s20 }
  0x87   :  { %p6030_p3 = scmp.ne.s32.totalorder %s62_s20, %s6029_s2  ;;  %p6035_p5 = scmp.lt.s32.totalorder %s6029_s2, %s6029_s2 }
  0x89   :  { %p6036_p6 = por %p6035_p5, %p6034_p4 }
  0x8b   :  { %p6037_p7 = pnand %p6036_p6, %p6030_p3 }
  0x8d   :  { %6040 = shalt.err (!%p6037_p7)
}
  0x8e   :  { %67 = dma.hbm_to_vmem [thread:$0]  %s7117_s4, 256, %s62_s20, [#allocation9], %s6192_s25, %s6192_s25, %s6193_s1  }
  0x8f   :  { %s6041_s5 = scalar_lea.hbm %s7119_s6, 16 }
  0x90   :  { %p6042_p8 = scmp.ne.s32.totalorder %s7119_s6, %s6041_s5  ;;  %p6045_p9 = scmp.lt.u32.totalorder %s6041_s5, %s7119_s6 }
  0x92   :  { %p6047_p10 = pnand %p6045_p9, %p6042_p8 }
  0x94   :  { %6050 = shalt.err (!%p6047_p10)
}
  0x95   :  { %s6051_s22 = scalar_lea.vmem %s87_s24, 16  ;;  %s6055_s11 = scalar_lea.vmem %s87_s24, 32 }
  0x96   :  { %p6052_p11 = scmp.ne.s32.totalorder %s87_s24, %s6051_s22  ;;  %p6056_p12 = scmp.lt.s32.totalorder %s87_s24, %s87_s24 }
  0x97   :  { %p6057_p13 = scmp.lt.s32.totalorder %s6055_s11, %s6051_s22 }
  0x99   :  { %p6058_p0 = por %p6057_p13, %p6056_p12 }
  0x9b   :  { %p6059_p1 = pnand %p6058_p0, %p6052_p11 }
  0x9d   :  { %6062 = shalt.err (!%p6059_p1)
}
  0x9e   :  { %89 = dma.hbm_to_vmem [thread:$0]  %s7119_s6, 16, %s87_s24, [#allocation12]  }
  0x9f   :  { %s6200_s21 = smov [#allocation16]   ;;  %s6201_s28 = smov [#allocation19]  }
  0xa0   :  { %s107_s27 = sshll.u32 %s6200_s21, 4  ;;  %s129_s29 = sshll.u32 %s6201_s28, 4  ;;  %s108_s27 = int_to_ptr.vmem [resolvable:$true] %s107_s27  ;;  %s130_s29 = int_to_ptr.vmem [resolvable:$true] %s129_s29 }
  0xa1   :  { %s6063_s2 = scalar_lea.hbm %s7121_s8, 512 }
  0xa2   :  { %p6064_p2 = scmp.ne.s32.totalorder %s7121_s8, %s6063_s2  ;;  %p6067_p3 = scmp.lt.u32.totalorder %s6063_s2, %s7121_s8 }
  0xa4   :  { %p6069_p4 = pnand %p6067_p3, %p6064_p2 }
  0xa6   :  { %6072 = shalt.err (!%p6069_p4)
}
  0xa7   :  { %s6073_s6 = scalar_lea.vmem %s108_s27, 512  ;;  %p6078_p6 = scmp.lt.s32.totalorder %s108_s27, %s108_s27 }
  0xa8   :  { %p6074_p5 = scmp.ne.s32.totalorder %s108_s27, %s6073_s6  ;;  %p6079_p7 = scmp.lt.s32.totalorder %s6073_s6, %s6073_s6 }
  0xaa   :  { %p6080_p8 = por %p6079_p7, %p6078_p6 }
  0xac   :  { %p6081_p9 = pnand %p6080_p8, %p6074_p5 }
  0xae   :  { %6084 = shalt.err (!%p6081_p9)
}
  0xaf   :  { %113 = dma.hbm_to_vmem [thread:$0]  %s7121_s8, 512, %s108_s27, [#allocation15], %s6192_s25, %s6192_s25, %s6193_s1  }
  0xb0   :  { %s6085_s30 = scalar_lea.hbm %s7123_s10, 1024 }
  0xb1   :  { %p6086_p10 = scmp.ne.s32.totalorder %s7123_s10, %s6085_s30  ;;  %p6089_p11 = scmp.lt.u32.totalorder %s6085_s30, %s7123_s10 }
  0xb3   :  { %p6091_p12 = pnand %p6089_p11, %p6086_p10 }
  0xb5   :  { %6094 = shalt.err (!%p6091_p12)
}
  0xb6   :  { %s6095_s20 = scalar_lea.vmem %s130_s29, 1024  ;;  %p6100_p0 = scmp.lt.s32.totalorder %s130_s29, %s130_s29 }
  0xb7   :  { %p6096_p13 = scmp.ne.s32.totalorder %s130_s29, %s6095_s20  ;;  %p6101_p1 = scmp.lt.s32.totalorder %s6095_s20, %s6095_s20 }
  0xb9   :  { %p6102_p2 = por %p6101_p1, %p6100_p0 }
  0xbb   :  { %p6103_p3 = pnand %p6102_p2, %p6096_p13 }
  0xbd   :  { %6106 = shalt.err (!%p6103_p3)
}
  0xbe   :  { %135 = dma.hbm_to_vmem [thread:$0]  %s7123_s10, 1024, %s130_s29, [#allocation18], %s6192_s25, %s6192_s25, %s6193_s1  }
  0xbf   :  { %s6202_s27 = smov [#allocation22]   ;;  %s6203_s9 = smov [#allocation25]  }
  0xc0   :  { %s154_s28 = sshll.u32 %s6202_s27, 4  ;;  %s175_s3 = sshll.u32 %s6203_s9, 4  ;;  %s155_s28 = int_to_ptr.vmem [resolvable:$true] %s154_s28  ;;  %s176_s3 = int_to_ptr.vmem [resolvable:$true] %s175_s3 }
  0xc1   :  { %s6107_s0 = scalar_lea.hbm %s7125_s12, 16 }
  0xc2   :  { %p6108_p4 = scmp.ne.s32.totalorder %s7125_s12, %s6107_s0  ;;  %p6111_p5 = scmp.lt.u32.totalorder %s6107_s0, %s7125_s12 }
  0xc4   :  { %p6113_p6 = pnand %p6111_p5, %p6108_p4 }
  0xc6   :  { %6116 = shalt.err (!%p6113_p6)
}
  0xc7   :  { %s6117_s10 = scalar_lea.vmem %s155_s28, 16  ;;  %s6121_s29 = scalar_lea.vmem %s155_s28, 32 }
  0xc8   :  { %p6118_p7 = scmp.ne.s32.totalorder %s155_s28, %s6117_s10  ;;  %p6122_p8 = scmp.lt.s32.totalorder %s155_s28, %s155_s28 }
  0xc9   :  { %p6123_p9 = scmp.lt.s32.totalorder %s6121_s29, %s6117_s10 }
  0xcb   :  { %p6124_p10 = por %p6123_p9, %p6122_p8 }
  0xcd   :  { %p6125_p11 = pnand %p6124_p10, %p6118_p7 }
  0xcf   :  { %6128 = shalt.err (!%p6125_p11)
}
  0xd0   :  { %157 = dma.hbm_to_vmem [thread:$0]  %s7125_s12, 16, %s155_s28, [#allocation21]  }
  0xd1   :  { %s6129_s19 = scalar_lea.hbm %s7128_s15, 1024 }
  0xd2   :  { %p6130_p12 = scmp.ne.s32.totalorder %s7128_s15, %s6129_s19  ;;  %p6133_p13 = scmp.lt.u32.totalorder %s6129_s19, %s7128_s15 }
  0xd4   :  { %p6135_p0 = pnand %p6133_p13, %p6130_p12 }
  0xd6   :  { %6138 = shalt.err (!%p6135_p0)
}
  0xd7   :  { %s6139_s8 = scalar_lea.vmem %s176_s3, 1024  ;;  %p6144_p2 = scmp.lt.s32.totalorder %s176_s3, %s176_s3 }
  0xd8   :  { %p6140_p1 = scmp.ne.s32.totalorder %s176_s3, %s6139_s8  ;;  %p6145_p3 = scmp.lt.s32.totalorder %s6139_s8, %s6139_s8 }
  0xda   :  { %p6146_p4 = por %p6145_p3, %p6144_p2 }
  0xdc   :  { %p6147_p5 = pnand %p6146_p4, %p6140_p1 }
  0xde   :  { %6150 = shalt.err (!%p6147_p5)
}
  0xdf   :  { %181 = dma.hbm_to_vmem [thread:$0]  %s7128_s15, 1024, %s176_s3, [#allocation24], %s6192_s25, %s6192_s25, %s6193_s1  }
  0xe0   :  { %s6204_s27 = smov [#allocation26]   ;;  %s6151_s26 = scalar_lea.hbm %s7129_s16, 16 }
  0xe1   :  { %s188_s28 = sshll.u32 %s6204_s27, 4  ;;  %p6152_p6 = scmp.ne.s32.totalorder %s7129_s16, %s6151_s26  ;;  %s189_s28 = int_to_ptr.vmem [resolvable:$true] %s188_s28 }
  0xe2   :  { %p6155_p7 = scmp.lt.u32.totalorder %s6151_s26, %s7129_s16 }
  0xe4   :  { %p6157_p8 = pnand %p6155_p7, %p6152_p6 }
  0xe6   :  { %6160 = shalt.err (!%p6157_p8)
}
  0xe7   :  { %s6161_s24 = scalar_lea.vmem %s189_s28, 16  ;;  %s6165_s15 = scalar_lea.vmem %s189_s28, 32 }
  0xe8   :  { %p6162_p9 = scmp.ne.s32.totalorder %s189_s28, %s6161_s24  ;;  %p6166_p10 = scmp.lt.s32.totalorder %s189_s28, %s189_s28 }
  0xe9   :  { %p6167_p11 = scmp.lt.s32.totalorder %s6165_s15, %s6161_s24 }
  0xeb   :  { %p6168_p12 = por %p6167_p11, %p6166_p10 }
  0xed   :  { %p6169_p13 = pnand %p6168_p12, %p6162_p9 }
  0xef   :  { %6172 = shalt.err (!%p6169_p13)
}
  0xf0   :  { %191 = dma.hbm_to_vmem [thread:$0]  %s7129_s16, 16, %s189_s28, [#allocation27]  }
  0xf1   :  { %6173 = dma.done.wait [#allocation7], 512  }
  0xf2   :  { %6174 = vsyncadd [#allocation7], 4294966784 }
  0xf3   :  { %6175 = dma.done.wait [#allocation9], 272  }
  0xf4   :  { %6176 = vsyncadd [#allocation9], 4294967024 }
  0xf5   :  { %6177 = dma.done.wait [#allocation12], 528  }
  0xf6   :  { %6178 = vsyncadd [#allocation12], 4294966768 }
  0xf7   :  { %6179 = dma.done.wait [#allocation15], 1536  }
  0xf8   :  { %6180 = vsyncadd [#allocation15], 4294965760 }
  0xf9   :  { %6181 = dma.done.wait [#allocation18], 1040  }
  0xfa   :  { %6182 = vsyncadd [#allocation18], 4294966256 }
  0xfb   :  { %6183 = dma.done.wait [#allocation21], 528  }
  0xfc   :  { %6184 = vsyncadd [#allocation21], 4294966768 }
  0xfd   :  { %6185 = dma.done.wait [#allocation24], 1040  }
  0xfe   :  { %6186 = vsyncadd [#allocation24], 4294966256 }
  0xff   :  { %6187 = dma.done.wait [#allocation27], 16  }
 0x100   :  { %6188 = vsyncadd [#allocation27], 4294967280  ;;  %v264_v0 = vlaneseq  ;;  %v6205_v1 = vmov 1983009808   ;;  %v6206_v3 = vmov 0.0|0.0   ;;  %vm6207_vm0 = vmmov 0  }
 0x101   :  { %v262_v2 = vunpack.c.l.s4 %v6205_v1  ;;  %5379 = vmatprep.subr.bf16.mxu1 %v6206_v3  ;;  %v6208_v4 = vmov 0.0   ;;  %s7135_s10 = sld [smem:[#allocation37_spill]]  ;;  %s7136_s30 = sld [smem:[#allocation36_spill]]  ;;  %v426_v22 = vld [vmem:[#allocation6] sm:$0xff]  ;;  %v427_v23 = vld [vmem:[#allocation6 + $0x8] sm:$0xff]  ;;  %v428_v28 = vld [vmem:[#allocation6 + $0x10] sm:$0xff] }
 0x102   :  { %4948 = vmatprep.mubr.msk.f32.mxu1 %vm6207_vm0, %v6208_v4  ;;  %v265_v6 = vshrl.u32 %v264_v0, 7  ;;  %v6531_v27 = vpack.c.bf16 %v427_v23, %v426_v22  ;;  %v429_v29 = vld [vmem:[#allocation6 + $0x18] sm:$0xff]  ;;  %vm293_vm1 = vcmask 130048   ;;  %v4659_v35 = vld [vmem:[#allocation8] ss:$0 sm:$0xff]  ;;  %s6209_s7 = smov 64  }
 0x103   :  { %v263_v5 = vunpack.c.0.s8 %v262_v2  ;;  %v6539_v33 = vpack.c.bf16 %v429_v29, %v428_v28  ;;  %s6210_s18 = smov 32   ;;  %vm531_vm2 = vcmask 254976   ;;  %vm430_vm3 = vcmask 261120  }
 0x104   :  { %5381 = vmatpush3.bf16.msra.mxu1 %v6531_v27  ;;  %vm1520_vm4 = vcmask 517376   ;;  %vm2336_vm5 = vcmask 523264  }
 0x105   :  { %v6506_v10 = vsub.s32 %v263_v5, %v265_v6  ;;  %5382 = vmatprep.subr.bf16.mxu1 %v6206_v3 }
 0x107   :  { %v242_v7 = vld [vmem:[%s7135_s10] sm:$0xff]  ;;  %v243_v8 = vld [vmem:[%s7135_s10 + $0x8] sm:$0xff] }
 0x108   :  { %v234_v9 = vld [vmem:[%s7136_s30] sm:$0x3]  ;;  %v5375_v11 = vpack.c.bf16 %v243_v8, %v242_v7  ;;  %v235_v12 = vld [vmem:[%s7136_s30 + $0x2] sm:$0x3]  ;;  %v236_v13 = vld [vmem:[%s7136_s30 + $0x4] sm:$0x3]  ;;  %5384 = vmatpush3.bf16.msra.mxu1 %v6539_v33 }
 0x109   :  { %v237_v14 = vld [vmem:[%s7136_s30 + $0x6] sm:$0x3]  ;;  %v259_v15 = vcombine.low %v234_v9, %v235_v12  ;;  %v238_v17 = vld [vmem:[%s7136_s30 + $0x8] sm:$0x3]  ;;  %v239_v18 = vld [vmem:[%s7136_s30 + $0xa] sm:$0x3]  ;;  %5391 = vmatprep.subr.bf16.mxu1 %v6206_v3 }
 0x10a   :  { %v260_v16 = vcombine.low %v236_v13, %v237_v14  ;;  %v240_v19 = vld [vmem:[%s7136_s30 + $0xc] sm:$0x3]  ;;  %5376 = vmatprep.subr.bf16.mxu0 %v5375_v11  ;;  %v241_v20 = vld [vmem:[%s7136_s30 + $0xe] sm:$0x3]  ;;  %v276_v21 = vcombine.low %v238_v17, %v239_v18 }
 0x10b   :  { %5378 = vmatpush3.bf16.msra.mxu0 %v5375_v11  ;;  %v267_v24 = vrot.slane %v259_v15, %v6506_v10  ;;  %v277_v26 = vcombine.low %v240_v19, %v241_v20  ;;  %4949 = vmatmul.mubr.f32.vlgmr.msra.gmra.mrb[0].mxu1 %v6208_v4 }
 0x10c   :  { %v274_v25 = vrot.slane %v260_v16, %v6506_v10  ;;  %v284_v30 = vrot.slane %v276_v21, %v6506_v10  ;;  %5385 = vmatprep.subr.bf16.mxu0 %v6206_v3  ;;  %5393 = vmatpush3.bf16.msra.mxu1 %v6531_v27 }
 0x10d   :  { %v291_v32 = vrot.slane %v277_v26, %v6506_v10  ;;  %4970 = vmatprep.mubr.msk.f32.mxu1 %vm6207_vm0, %v6208_v4  ;;  %5394 = vmatprep.subr.bf16.mxu1 %v6206_v3 }
 0x10e   :  { %v6535_v31 = vcombine.low %v267_v24, %v274_v25 }
 0x10f   :  { %v6544_v34 = vcombine.low %v284_v30, %v291_v32 }
 0x110   :  { %4937 = vmatprep.mubr.msk.f32.mxu0 %vm293_vm1, %v6535_v31  ;;  %5396 = vmatpush3.bf16.msra.mxu1 %v6539_v33 }
 0x111   :  { %4938 = vmatmul.mubr.msk.f32.vlgmr.msra.gmra.mrb[0].mxu0 %vm293_vm1, %v6544_v34  ;;  %5403 = vmatprep.subr.bf16.mxu1 %v6206_v3 }
 0x112   :  { %5387 = vmatpush3.bf16.msra.mxu0 %v6531_v27  ;;  %4959 = vmatprep.mubr.msk.f32.mxu0 %vm6207_vm0, %v6208_v4 }
 0x113   :  { %5388 = vmatprep.subr.bf16.mxu0 %v6206_v3 }
 0x116   :  { %5390 = vmatpush3.bf16.msra.mxu0 %v6539_v33 }
 0x117   :  { %5397 = vmatprep.subr.bf16.mxu0 %v6206_v3 }
 0x1de   :  { %v500_v42 = vpop.f32.mrb[0].mxu1 }
 0x1df   :  { %v4950_v45 = vpop.f32.mrb[1].mxu1 }
 0x1e4   :  { %v4939_v36 = vpop.f32.mrb[0].mxu0 }
 0x1e5   :  { %v370_v37 = vadd.f32 %v4939_v36, %v4659_v35  ;;  %v364_v38 = vpop.f32.mrb[1].mxu0 }
 0x1e6   :  { %v365_v39 = vadd.f32 %v4659_v35, %v364_v38 }
 0x1e7   :  { %v392_v40 = vcombine.high %v370_v37, %v370_v37  ;;  %v399_v41 = vrot.slane %v370_v37, %v6506_v10  ;;  %4664 = vst.sshfl [vmem:[#allocation2 + $0x8] sm:$0x3 pattern:$0x76325410] %v370_v37 }
 0x1e8   :  { %v375_v43 = vcombine.high %v365_v39, %v365_v39  ;;  %v382_v44 = vrot.slane %v365_v39, %v6506_v10  ;;  %4662 = vst.sshfl [vmem:[#allocation2] sm:$0x3 pattern:$0x76325410] %v365_v39 }
 0x1e9   :  { %v406_v46 = vrot.slane %v392_v40, %v6506_v10  ;;  %v407_v47 = vcombine.high %v399_v41, %v399_v41  ;;  %4665 = vst.sshfl [vmem:[#allocation2 + $0xc] sm:$0x3 pattern:$0x76325410] %v392_v40 }
 0x1ea   :  { %v389_v48 = vrot.slane %v375_v43, %v6506_v10  ;;  %v390_v49 = vcombine.high %v382_v44, %v382_v44  ;;  %4663 = vst.sshfl [vmem:[#allocation2 + $0x4] sm:$0x3 pattern:$0x76325410] %v375_v43 }
 0x1eb   :  { %v408_v50 = vcombine.high %v406_v46, %v406_v46  ;;  %422 = vst [vmem:[#allocation2 + $0xa] sm:$0x3] %v407_v47 }
 0x1ec   :  { %v391_v51 = vcombine.high %v389_v48, %v389_v48  ;;  %418 = vst [vmem:[#allocation2 + $0x2] sm:$0x3] %v390_v49 }
 0x1ed   :  { %424 = vst [vmem:[#allocation2 + $0xe] sm:$0x3] %v408_v50 }
 0x1ee   :  { %420 = vst [vmem:[#allocation2 + $0x6] sm:$0x3] %v391_v51 }
 0x1ef   :  { %v425_v52 = vld [vmem:[#allocation2] sm:$0x3] }
 0x1f0   :  { %v504_v53 = vadd.f32 %v500_v42, %v425_v52 }
 0x1f1   :  { %v641_v26 = vld [vmem:[#allocation2 + $0x4] sm:$0x3] }
 0x1f2   :  { %5661 = vtanh.f32 %v504_v53  ;;  %v505_v55 = vmul.f32 0.5, %v504_v53 }
 0x1f3   :  { %v534_v7 = vld [vmem:[#allocation2 + $0x2] sm:$0x3] }
 0x1f4   :  { %5663 = vtanh.f32 %v505_v55 }
 0x1f5   :  { %v748_v48 = vld [vmem:[#allocation2 + $0x6] sm:$0x3] }
 0x1fc   :  { %v5662_v54 = vpop.eup %5661 }
 0x1fd   :  { %512 = vrot.lane.b32.xlu0 %v5662_v54, %s6209_s7 }
 0x1fe   :  { %v5664_v56 = vpop.eup %5663 }
 0x1ff   :  { %v507_v57 = vadd.f32 1.0, %v5664_v56 }
 0x201   :  { %v508_v58 = vmul.f32 0.5, %v507_v57 }
 0x203   :  { %v510_v61 = vmul.f32 0.0, %v508_v58 }
 0x26f   :  { %v513_v59 = vpop.permute.xlu0 %512 }
 0x270   :  { %v515_v60 = vmul.f32 %v513_v59, %v508_v58 }
 0x272   :  { %517 = vrot.lane.b32.xlu0 %v515_v60, %s6210_s18 }
 0x2e4   :  { %v518_v62 = vpop.permute.xlu0 %517 }
 0x2e5   :  { %v520_v63 = vadd.f32 %v518_v62, %v510_v61 }
 0x2e7   :  { %5665 = vtanh.f32 %v520_v63 }
 0x2f1   :  { %v5666_v1 = vpop.eup %5665 }
 0x2f2   :  { %523 = vrot.lane.b32.xlu1 %v5666_v1, %s6209_s7 }
 0x364   :  { %v524_v2 = vpop.permute.xlu1 %523 }
 0x365   :  { %v526_v5 = vmul.f32 %v524_v2, %v508_v58 }
 0x367   :  { %528 = vrot.lane.b32.xlu1 %v526_v5, %s6210_s18  ;;  %v855_v5 = vld [vmem:[#allocation2 + $0x8] sm:$0x3] }
 0x3d9   :  { %v529_v6 = vpop.permute.xlu1 %528 }
 0x3da   :  { %532 = vst.msk [vmem:[#allocation3] sm:$0x3] %vm531_vm2, %v529_v6  ;;  %4960 = vmatmul.mubr.msk.f32.vlgmr.msra.gmra.mrb[2].mxu0 %vm430_vm3, %v529_v6 }
 0x3db   :  { %5399 = vmatpush3.bf16.msra.mxu0 %v6531_v27  ;;  %4981 = vmatprep.mubr.msk.f32.mxu0 %vm6207_vm0, %v6208_v4 }
 0x3dc   :  { %5400 = vmatprep.subr.bf16.mxu0 %v6206_v3 }
 0x3df   :  { %5402 = vmatpush3.bf16.msra.mxu0 %v6539_v33 }
 0x3e0   :  { %5409 = vmatprep.subr.bf16.mxu0 %v6206_v3 }
 0x4ad   :  { %v607_v8 = vpop.f32.mrb[2].mxu0 }
 0x4ae   :  { %v611_v9 = vadd.f32 %v607_v8, %v534_v7  ;;  %v4961_v11 = vpop.f32.mrb[3].mxu0 }
 0x4b0   :  { %5667 = vtanh.f32 %v611_v9  ;;  %v612_v13 = vmul.f32 0.5, %v611_v9 }
 0x4b2   :  { %5669 = vtanh.f32 %v612_v13 }
 0x4ba   :  { %v5668_v12 = vpop.eup %5667 }
 0x4bb   :  { %619 = vrot.lane.b32.xlu0 %v5668_v12, %s6209_s7 }
 0x4bc   :  { %v5670_v14 = vpop.eup %5669 }
 0x4bd   :  { %v614_v15 = vadd.f32 1.0, %v5670_v14 }
 0x4bf   :  { %v615_v16 = vmul.f32 0.5, %v614_v15 }
 0x4c1   :  { %v617_v19 = vmul.f32 %v615_v16, %v520_v63 }
 0x52d   :  { %v620_v17 = vpop.permute.xlu0 %619 }
 0x52e   :  { %v622_v18 = vmul.f32 %v620_v17, %v615_v16 }
 0x530   :  { %624 = vrot.lane.b32.xlu1 %v622_v18, %s6210_s18 }
 0x5a2   :  { %v625_v20 = vpop.permute.xlu1 %624 }
 0x5a3   :  { %v627_v21 = vadd.f32 %v625_v20, %v617_v19 }
 0x5a5   :  { %5671 = vtanh.f32 %v627_v21 }
 0x5af   :  { %v5672_v22 = vpop.eup %5671 }
 0x5b0   :  { %630 = vrot.lane.b32.xlu0 %v5672_v22, %s6209_s7 }
 0x622   :  { %v631_v23 = vpop.permute.xlu0 %630 }
 0x623   :  { %v633_v24 = vmul.f32 %v631_v23, %v615_v16 }
 0x625   :  { %635 = vrot.lane.b32.xlu1 %v633_v24, %s6210_s18  ;;  %v962_v24 = vld [vmem:[#allocation2 + $0xa] sm:$0x3] }
 0x697   :  { %v636_v25 = vpop.permute.xlu1 %635 }
 0x698   :  { %639 = vst.msk [vmem:[#allocation3 + $0x2] sm:$0x3] %vm531_vm2, %v636_v25  ;;  %4971 = vmatmul.mubr.msk.f32.vlgmr.msra.gmra.mrb[2].mxu1 %vm430_vm3, %v636_v25 }
 0x699   :  { %5405 = vmatpush3.bf16.msra.mxu1 %v6531_v27  ;;  %4992 = vmatprep.mubr.msk.f32.mxu1 %vm6207_vm0, %v6208_v4 }
 0x69a   :  { %5406 = vmatprep.subr.bf16.mxu1 %v6206_v3 }
 0x69d   :  { %5408 = vmatpush3.bf16.msra.mxu1 %v6539_v33 }
 0x69e   :  { %5415 = vmatprep.subr.bf16.mxu1 %v6206_v3 }
 0x76b   :  { %v714_v28 = vpop.f32.mrb[2].mxu1 }
 0x76c   :  { %v718_v29 = vadd.f32 %v714_v28, %v641_v26  ;;  %v4972_v30 = vpop.f32.mrb[3].mxu1 }
 0x76e   :  { %5673 = vtanh.f32 %v718_v29  ;;  %v719_v35 = vmul.f32 0.5, %v718_v29 }
 0x770   :  { %5675 = vtanh.f32 %v719_v35 }
 0x778   :  { %v5674_v32 = vpop.eup %5673 }
 0x779   :  { %726 = vrot.lane.b32.xlu0 %v5674_v32, %s6209_s7 }
 0x77a   :  { %v5676_v36 = vpop.eup %5675 }
 0x77b   :  { %v721_v37 = vadd.f32 1.0, %v5676_v36 }
 0x77d   :  { %v722_v38 = vmul.f32 0.5, %v721_v37 }
 0x77f   :  { %v724_v41 = vmul.f32 %v722_v38, %v627_v21 }
 0x7eb   :  { %v727_v39 = vpop.permute.xlu0 %726 }
 0x7ec   :  { %v729_v40 = vmul.f32 %v727_v39, %v722_v38 }
 0x7ee   :  { %731 = vrot.lane.b32.xlu1 %v729_v40, %s6210_s18 }
 0x860   :  { %v732_v42 = vpop.permute.xlu1 %731 }
 0x861   :  { %v734_v43 = vadd.f32 %v732_v42, %v724_v41 }
 0x863   :  { %5677 = vtanh.f32 %v734_v43 }
 0x86d   :  { %v5678_v44 = vpop.eup %5677 }
 0x86e   :  { %737 = vrot.lane.b32.xlu0 %v5678_v44, %s6209_s7  ;;  %v1069_v44 = vld [vmem:[#allocation2 + $0xc] sm:$0x3] }
 0x8e0   :  { %v738_v45 = vpop.permute.xlu0 %737 }
 0x8e1   :  { %v740_v46 = vmul.f32 %v738_v45, %v722_v38 }
 0x8e3   :  { %742 = vrot.lane.b32.xlu1 %v740_v46, %s6210_s18 }
 0x955   :  { %v743_v47 = vpop.permute.xlu1 %742 }
 0x956   :  { %746 = vst.msk [vmem:[#allocation3 + $0x4] sm:$0x3] %vm531_vm2, %v743_v47  ;;  %4982 = vmatmul.mubr.msk.f32.vlgmr.msra.gmra.mrb[4].mxu0 %vm430_vm3, %v743_v47 }
 0x957   :  { %5411 = vmatpush3.bf16.msra.mxu0 %v6531_v27  ;;  %5003 = vmatprep.mubr.msk.f32.mxu0 %vm6207_vm0, %v6208_v4 }
 0x958   :  { %5412 = vmatprep.subr.bf16.mxu0 %v6206_v3 }
 0x95b   :  { %5414 = vmatpush3.bf16.msra.mxu0 %v6539_v33 }
 0x95c   :  { %5421 = vmatprep.subr.bf16.mxu0 %v6206_v3 }
 0xa29   :  { %v821_v49 = vpop.f32.mrb[4].mxu0 }
 0xa2a   :  { %v825_v50 = vadd.f32 %v821_v49, %v748_v48  ;;  %v4983_v51 = vpop.f32.mrb[5].mxu0 }
 0xa2c   :  { %5679 = vtanh.f32 %v825_v50  ;;  %v826_v53 = vmul.f32 0.5, %v825_v50 }
 0xa2e   :  { %5681 = vtanh.f32 %v826_v53 }
 0xa36   :  { %v5680_v52 = vpop.eup %5679 }
 0xa37   :  { %833 = vrot.lane.b32.xlu0 %v5680_v52, %s6209_s7 }
 0xa38   :  { %v5682_v54 = vpop.eup %5681 }
 0xa39   :  { %v828_v55 = vadd.f32 1.0, %v5682_v54 }
 0xa3b   :  { %v829_v56 = vmul.f32 0.5, %v828_v55 }
 0xa3d   :  { %v831_v59 = vmul.f32 %v829_v56, %v734_v43 }
 0xaa9   :  { %v834_v57 = vpop.permute.xlu0 %833 }
 0xaaa   :  { %v836_v58 = vmul.f32 %v834_v57, %v829_v56  ;;  %v1282_v57 = vld [vmem:[#allocation10] sm:$0xff] }
 0xaac   :  { %838 = vrot.lane.b32.xlu1 %v836_v58, %s6210_s18  ;;  %v1283_v58 = vld [vmem:[#allocation10 + $0x8] sm:$0xff] }
 0xb1e   :  { %v839_v60 = vpop.permute.xlu1 %838 }
 0xb1f   :  { %v841_v61 = vadd.f32 %v839_v60, %v831_v59  ;;  %v5427_v59 = vpack.c.bf16 %v1283_v58, %v1282_v57 }
 0xb21   :  { %5683 = vtanh.f32 %v841_v61 }
 0xb2b   :  { %v5684_v62 = vpop.eup %5683 }
 0xb2c   :  { %844 = vrot.lane.b32.xlu0 %v5684_v62, %s6209_s7  ;;  %v1420_v62 = vld [vmem:[#allocation11 + $0x8] sm:$0xff] }
 0xb9e   :  { %v845_v63 = vpop.permute.xlu0 %844 }
 0xb9f   :  { %v847_v1 = vmul.f32 %v845_v63, %v829_v56 }
 0xba1   :  { %849 = vrot.lane.b32.xlu1 %v847_v1, %s6210_s18  ;;  %v1421_v1 = vld [vmem:[#allocation11 + $0x10] sm:$0xff] }
 0xc13   :  { %v850_v2 = vpop.permute.xlu1 %849 }
 0xc14   :  { %853 = vst.msk [vmem:[#allocation3 + $0x6] sm:$0x3] %vm531_vm2, %v850_v2  ;;  %4993 = vmatmul.mubr.msk.f32.vlgmr.msra.gmra.mrb[4].mxu1 %vm430_vm3, %v850_v2  ;;  %v1422_v2 = vld [vmem:[#allocation11 + $0x18] sm:$0xff] }
 0xc15   :  { %5417 = vmatpush3.bf16.msra.mxu1 %v6531_v27  ;;  %5014 = vmatprep.mubr.msk.f32.mxu1 %vm6207_vm0, %v6208_v4 }
 0xc16   :  { %5418 = vmatprep.subr.bf16.mxu1 %v6206_v3 }
 0xc19   :  { %5420 = vmatpush3.bf16.msra.mxu1 %v6539_v33 }
 0xc1a   :  { %5428 = vmatprep.subr.bf16.mxu1 %v5427_v59 }
 0xce7   :  { %v928_v6 = vpop.f32.mrb[4].mxu1 }
 0xce8   :  { %v932_v7 = vadd.f32 %v928_v6, %v855_v5  ;;  %v4994_v8 = vpop.f32.mrb[5].mxu1  ;;  %v6649_v5 = vpack.c.bf16 %v1422_v2, %v1421_v1 }
 0xcea   :  { %5685 = vtanh.f32 %v932_v7  ;;  %v933_v11 = vmul.f32 0.5, %v932_v7  ;;  %v4673_v7 = vld [vmem:[#allocation13] ss:$0 sm:$0xff] }
 0xcec   :  { %5687 = vtanh.f32 %v933_v11 }
 0xcf4   :  { %v5686_v9 = vpop.eup %5685 }
 0xcf5   :  { %940 = vrot.lane.b32.xlu0 %v5686_v9, %s6209_s7 }
 0xcf6   :  { %v5688_v12 = vpop.eup %5687 }
 0xcf7   :  { %v935_v13 = vadd.f32 1.0, %v5688_v12 }
 0xcf9   :  { %v936_v14 = vmul.f32 0.5, %v935_v13 }
 0xcfb   :  { %v938_v17 = vmul.f32 %v936_v14, %v841_v61  ;;  %v1419_v61 = vld [vmem:[#allocation11] sm:$0xff] }
 0xcfc   :  { %v6645_v63 = vpack.c.bf16 %v1420_v62, %v1419_v61 }
 0xd67   :  { %v941_v15 = vpop.permute.xlu0 %940 }
 0xd68   :  { %v943_v16 = vmul.f32 %v941_v15, %v936_v14 }
 0xd6a   :  { %945 = vrot.lane.b32.xlu1 %v943_v16, %s6210_s18 }
 0xddc   :  { %v946_v18 = vpop.permute.xlu1 %945 }
 0xddd   :  { %v948_v19 = vadd.f32 %v946_v18, %v938_v17 }
 0xddf   :  { %5689 = vtanh.f32 %v948_v19 }
 0xde9   :  { %v5690_v20 = vpop.eup %5689 }
 0xdea   :  { %951 = vrot.lane.b32.xlu0 %v5690_v20, %s6209_s7 }
 0xe5c   :  { %v952_v21 = vpop.permute.xlu0 %951 }
 0xe5d   :  { %v954_v22 = vmul.f32 %v952_v21, %v936_v14 }
 0xe5f   :  { %956 = vrot.lane.b32.xlu1 %v954_v22, %s6210_s18 }
 0xed1   :  { %v957_v23 = vpop.permute.xlu1 %956 }
 0xed2   :  { %960 = vst.msk [vmem:[#allocation3 + $0x8] sm:$0x3] %vm531_vm2, %v957_v23  ;;  %5004 = vmatmul.mubr.msk.f32.vlgmr.msra.gmra.mrb[6].mxu0 %vm430_vm3, %v957_v23  ;;  %v6658_v23 = vld [vmem:[#allocation2 + $0xe] sm:$0x3] }
 0xed3   :  { %5423 = vmatpush3.bf16.msra.mxu0 %v6531_v27  ;;  %5025 = vmatprep.mubr.msk.f32.mxu0 %vm6207_vm0, %v6208_v4 }
 0xed4   :  { %5424 = vmatprep.subr.bf16.mxu0 %v6206_v3 }
 0xed7   :  { %5426 = vmatpush3.bf16.msra.mxu0 %v6539_v33 }
 0xed8   :  { %5431 = vmatprep.subr.bf16.mxu0 %v6206_v3 }
 0xfa5   :  { %v1035_v25 = vpop.f32.mrb[6].mxu0 }
 0xfa6   :  { %v1039_v26 = vadd.f32 %v1035_v25, %v962_v24  ;;  %v5005_v28 = vpop.f32.mrb[7].mxu0 }
 0xfa8   :  { %5691 = vtanh.f32 %v1039_v26  ;;  %v1040_v30 = vmul.f32 0.5, %v1039_v26 }
 0xfaa   :  { %5693 = vtanh.f32 %v1040_v30 }
 0xfb2   :  { %v5692_v29 = vpop.eup %5691 }
 0xfb3   :  { %1047 = vrot.lane.b32.xlu0 %v5692_v29, %s6209_s7 }
 0xfb4   :  { %v5694_v27 = vpop.eup %5693 }
 0xfb5   :  { %v1042_v32 = vadd.f32 1.0, %v5694_v27 }
 0xfb7   :  { %v1043_v35 = vmul.f32 0.5, %v1042_v32 }
 0xfb9   :  { %v1045_v33 = vmul.f32 %v1043_v35, %v948_v19 }
0x1025   :  { %v1048_v36 = vpop.permute.xlu0 %1047 }
0x1026   :  { %v1050_v37 = vmul.f32 %v1048_v36, %v1043_v35 }
0x1028   :  { %1052 = vrot.lane.b32.xlu1 %v1050_v37, %s6210_s18 }
0x109a   :  { %v1053_v38 = vpop.permute.xlu1 %1052 }
0x109b   :  { %v1055_v39 = vadd.f32 %v1053_v38, %v1045_v33 }
0x109d   :  { %5695 = vtanh.f32 %v1055_v39 }
0x10a7   :  { %v5696_v40 = vpop.eup %5695 }
0x10a8   :  { %1058 = vrot.lane.b32.xlu0 %v5696_v40, %s6209_s7 }
0x111a   :  { %v1059_v41 = vpop.permute.xlu0 %1058 }
0x111b   :  { %v1061_v42 = vmul.f32 %v1059_v41, %v1043_v35 }
0x111d   :  { %1063 = vrot.lane.b32.xlu1 %v1061_v42, %s6210_s18 }
0x118f   :  { %v1064_v43 = vpop.permute.xlu1 %1063 }
0x1190   :  { %1067 = vst.msk [vmem:[#allocation3 + $0xa] sm:$0x3] %vm531_vm2, %v1064_v43  ;;  %5015 = vmatmul.mubr.msk.f32.vlgmr.msra.gmra.mrb[6].mxu1 %vm430_vm3, %v1064_v43 }
0x1191   :  { %5032 = vmatprep.mubr.msk.f32.mxu1 %vm293_vm1, %v6535_v31  ;;  %5430 = vmatpush3.bf16.msra.mxu1 %v5427_v59 }
0x1192   :  { %5437 = vmatprep.subr.bf16.mxu1 %v6206_v3 }
0x1194   :  { %5033 = vmatmul.mubr.msk.f32.vlgmr.msra.gmra.mrb[8].mxu1 %vm293_vm1, %v6544_v34 }
0x1195   :  { %5054 = vmatprep.mubr.msk.f32.mxu1 %vm6207_vm0, %v6208_v4  ;;  %5439 = vmatpush3.bf16.msra.mxu1 %v6645_v63 }
0x1196   :  { %5440 = vmatprep.subr.bf16.mxu1 %v6206_v3 }
0x1199   :  { %5442 = vmatpush3.bf16.msra.mxu1 %v6649_v5 }
0x119a   :  { %5449 = vmatprep.subr.bf16.mxu1 %v6206_v3 }
0x1263   :  { %v1142_v45 = vpop.f32.mrb[6].mxu1 }
0x1264   :  { %v1146_v46 = vadd.f32 %v1142_v45, %v1069_v44  ;;  %v5016_v47 = vpop.f32.mrb[7].mxu1 }
0x1266   :  { %5697 = vtanh.f32 %v1146_v46  ;;  %v1147_v49 = vmul.f32 0.5, %v1146_v46 }
0x1267   :  { %v5034_v8 = vpop.f32.mrb[8].mxu1 }
0x1268   :  { %5699 = vtanh.f32 %v1147_v49  ;;  %v1363_v9 = vadd.f32 %v5034_v8, %v4673_v7  ;;  %v1357_v11 = vpop.f32.mrb[9].mxu1 }
0x1269   :  { %v1358_v12 = vadd.f32 %v4673_v7, %v1357_v11 }
0x126a   :  { %v1385_v13 = vcombine.high %v1363_v9, %v1363_v9  ;;  %v1392_v14 = vrot.slane %v1363_v9, %v6506_v10  ;;  %4678 = vst.sshfl [vmem:[#allocation2 + $0x8] sm:$0x3 pattern:$0x76325410] %v1363_v9 }
0x126b   :  { %v1368_v15 = vcombine.high %v1358_v12, %v1358_v12  ;;  %v1375_v16 = vrot.slane %v1358_v12, %v6506_v10  ;;  %4676 = vst.sshfl [vmem:[#allocation2] sm:$0x3 pattern:$0x76325410] %v1358_v12 }
0x126c   :  { %v1399_v17 = vrot.slane %v1385_v13, %v6506_v10  ;;  %v1400_v18 = vcombine.high %v1392_v14, %v1392_v14  ;;  %4679 = vst.sshfl [vmem:[#allocation2 + $0xc] sm:$0x3 pattern:$0x76325410] %v1385_v13 }
0x126d   :  { %v1382_v19 = vrot.slane %v1368_v15, %v6506_v10  ;;  %v1383_v20 = vcombine.high %v1375_v16, %v1375_v16  ;;  %4677 = vst.sshfl [vmem:[#allocation2 + $0x4] sm:$0x3 pattern:$0x76325410] %v1368_v15 }
0x126e   :  { %v1401_v21 = vcombine.high %v1399_v17, %v1399_v17  ;;  %1415 = vst [vmem:[#allocation2 + $0xa] sm:$0x3] %v1400_v18 }
0x126f   :  { %v1384_v22 = vcombine.high %v1382_v19, %v1382_v19  ;;  %1411 = vst [vmem:[#allocation2 + $0x2] sm:$0x3] %v1383_v20 }
0x1270   :  { %v5698_v48 = vpop.eup %5697  ;;  %1417 = vst [vmem:[#allocation2 + $0xe] sm:$0x3] %v1401_v21 }
0x1271   :  { %1154 = vrot.lane.b32.xlu0 %v5698_v48, %s6209_s7  ;;  %1413 = vst [vmem:[#allocation2 + $0x6] sm:$0x3] %v1384_v22 }
0x1272   :  { %v5700_v50 = vpop.eup %5699 }
0x1273   :  { %v1149_v51 = vadd.f32 1.0, %v5700_v50  ;;  %v1522_v47 = vld [vmem:[#allocation2 + $0xc] sm:$0x3] }
0x1275   :  { %v1150_v52 = vmul.f32 0.5, %v1149_v51 }
0x1277   :  { %v1152_v55 = vmul.f32 %v1150_v52, %v1055_v39  ;;  %v1418_v28 = vld [vmem:[#allocation2 + $0xe] sm:$0x3] }
0x12e3   :  { %v1155_v53 = vpop.permute.xlu0 %1154 }
0x12e4   :  { %v1157_v54 = vmul.f32 %v1155_v53, %v1150_v52 }
0x12e6   :  { %1159 = vrot.lane.b32.xlu1 %v1157_v54, %s6210_s18 }
0x1358   :  { %v1160_v56 = vpop.permute.xlu1 %1159 }
0x1359   :  { %v6636_v31 = vadd.f32 %v1160_v56, %v1152_v55 }
0x135b   :  { %5701 = vtanh.f32 %v6636_v31 }
0x1365   :  { %v5702_v60 = vpop.eup %5701 }
0x1366   :  { %1165 = vrot.lane.b32.xlu0 %v5702_v60, %s6209_s7 }
0x13d8   :  { %v1166_v34 = vpop.permute.xlu0 %1165 }
0x13d9   :  { %v1168_v6 = vmul.f32 %v1166_v34, %v1150_v52  ;;  %v1629_v34 = vld [vmem:[#allocation2 + $0xa] sm:$0x3] }
0x13db   :  { %1170 = vrot.lane.b32.xlu1 %v1168_v6, %s6210_s18 }
0x144d   :  { %v1171_v24 = vpop.permute.xlu1 %1170 }
0x144e   :  { %1174 = vst.msk [vmem:[#allocation3 + $0xc] sm:$0x3] %vm531_vm2, %v1171_v24  ;;  %5026 = vmatmul.mubr.msk.f32.vlgmr.msra.gmra.mrb[8].mxu0 %vm430_vm3, %v1171_v24 }
0x144f   :  { %5433 = vmatpush3.bf16.msra.mxu0 %v6645_v63  ;;  %5043 = vmatprep.mubr.msk.f32.mxu0 %vm6207_vm0, %v6208_v4 }
0x1450   :  { %5434 = vmatprep.subr.bf16.mxu0 %v6206_v3 }
0x1453   :  { %5436 = vmatpush3.bf16.msra.mxu0 %v6649_v5 }
0x1454   :  { %5443 = vmatprep.subr.bf16.mxu0 %v6206_v3 }
0x1456   :  { %5044 = vmatmul.mubr.f32.vlgmr.msra.gmra.mrb[10].mxu0 %v6208_v4 }
0x1457   :  { %5445 = vmatpush3.bf16.msra.mxu0 %v6645_v63  ;;  %5065 = vmatprep.mubr.msk.f32.mxu0 %vm6207_vm0, %v6208_v4 }
0x1458   :  { %5446 = vmatprep.subr.bf16.mxu0 %v6206_v3 }
0x145b   :  { %5448 = vmatpush3.bf16.msra.mxu0 %v6649_v5 }
0x145c   :  { %5455 = vmatprep.subr.bf16.mxu0 %v6206_v3 }
0x1521   :  { %v6675_v25 = vpop.f32.mrb[8].mxu0 }
0x1522   :  { %v5027_v26 = vpop.f32.mrb[9].mxu0 }
0x1523   :  { %v1736_v26 = vld [vmem:[#allocation2 + $0x8] sm:$0x3] }
0x1529   :  { %v1489_v29 = vpop.f32.mrb[10].mxu0 }
0x152a   :  { %v1493_v30 = vadd.f32 %v1489_v29, %v1418_v28  ;;  %v5045_v27 = vpop.f32.mrb[11].mxu0 }
0x152c   :  { %5703 = vtanh.f32 %v1493_v30  ;;  %v1494_v35 = vmul.f32 0.5, %v1493_v30 }
0x152e   :  { %5705 = vtanh.f32 %v1494_v35 }
0x1536   :  { %v5704_v32 = vpop.eup %5703 }
0x1537   :  { %1501 = vrot.lane.b32.xlu0 %v5704_v32, %s6209_s7 }
0x1538   :  { %v5706_v36 = vpop.eup %5705 }
0x1539   :  { %v1496_v37 = vadd.f32 1.0, %v5706_v36 }
0x153b   :  { %v1497_v33 = vmul.f32 0.5, %v1496_v37 }
0x153d   :  { %v1499_v40 = vmul.f32 0.0, %v1497_v33 }
0x15a9   :  { %v1502_v38 = vpop.permute.xlu0 %1501 }
0x15aa   :  { %v1504_v39 = vmul.f32 %v1502_v38, %v1497_v33 }
0x15ac   :  { %1506 = vrot.lane.b32.xlu1 %v1504_v39, %s6210_s18 }
0x161e   :  { %v1507_v41 = vpop.permute.xlu1 %1506 }
0x161f   :  { %v1509_v42 = vadd.f32 %v1507_v41, %v1499_v40 }
0x1621   :  { %5707 = vtanh.f32 %v1509_v42 }
0x162b   :  { %v5708_v43 = vpop.eup %5707 }
0x162c   :  { %1512 = vrot.lane.b32.xlu0 %v5708_v43, %s6209_s7 }
0x169e   :  { %v1513_v44 = vpop.permute.xlu0 %1512 }
0x169f   :  { %v6680_v45 = vmul.f32 %v1513_v44, %v1497_v33 }
0x16a1   :  { %1527 = vrot.lane.b32.xlu1 %v6680_v45, %s6210_s18 }
0x1713   :  { %v1528_v46 = vpop.permute.xlu1 %1527 }
0x1714   :  { %5055 = vmatmul.mubr.msk.f32.vlgmr.msra.gmra.mrb[10].mxu1 %vm430_vm3, %v1528_v46 }
0x1715   :  { %5451 = vmatpush3.bf16.msra.mxu1 %v6645_v63  ;;  %5076 = vmatprep.mubr.msk.f32.mxu1 %vm6207_vm0, %v6208_v4 }
0x1716   :  { %5452 = vmatprep.subr.bf16.mxu1 %v6206_v3 }
0x1719   :  { %5454 = vmatpush3.bf16.msra.mxu1 %v6649_v5 }
0x171a   :  { %5461 = vmatprep.subr.bf16.mxu1 %v6206_v3 }
0x17e7   :  { %v1597_v48 = vpop.f32.mrb[10].mxu1 }
0x17e8   :  { %v1601_v49 = vadd.f32 %v1597_v48, %v1522_v47  ;;  %v5056_v50 = vpop.f32.mrb[11].mxu1  ;;  %v1843_v47 = vld [vmem:[#allocation2 + $0x6] sm:$0x3] }
0x17ea   :  { %5709 = vtanh.f32 %v1601_v49  ;;  %v1602_v52 = vmul.f32 0.5, %v1601_v49 }
0x17ec   :  { %5711 = vtanh.f32 %v1602_v52 }
0x17f4   :  { %v5710_v51 = vpop.eup %5709 }
0x17f5   :  { %1609 = vrot.lane.b32.xlu0 %v5710_v51, %s6209_s7 }
0x17f6   :  { %v5712_v53 = vpop.eup %5711 }
0x17f7   :  { %v1604_v54 = vadd.f32 1.0, %v5712_v53 }
0x17f9   :  { %v1605_v55 = vmul.f32 0.5, %v1604_v54 }
0x17fb   :  { %v1607_v58 = vmul.f32 %v1605_v55, %v1509_v42 }
0x1867   :  { %v1610_v56 = vpop.permute.xlu0 %1609 }
0x1868   :  { %v1612_v57 = vmul.f32 %v1610_v56, %v1605_v55 }
0x186a   :  { %1614 = vrot.lane.b32.xlu1 %v1612_v57, %s6210_s18 }
0x18dc   :  { %v1615_v59 = vpop.permute.xlu1 %1614 }
0x18dd   :  { %v1617_v60 = vadd.f32 %v1615_v59, %v1607_v58 }
0x18df   :  { %5713 = vtanh.f32 %v1617_v60 }
0x18e9   :  { %v5714_v61 = vpop.eup %5713 }
0x18ea   :  { %1620 = vrot.lane.b32.xlu0 %v5714_v61, %s6209_s7 }
0x195c   :  { %v1621_v62 = vpop.permute.xlu0 %1620 }
0x195d   :  { %v6694_v1 = vmul.f32 %v1621_v62, %v1605_v55 }
0x195f   :  { %1634 = vrot.lane.b32.xlu1 %v6694_v1, %s6210_s18 }
0x19d1   :  { %v1635_v2 = vpop.permute.xlu1 %1634 }
0x19d2   :  { %5066 = vmatmul.mubr.msk.f32.vlgmr.msra.gmra.mrb[12].mxu0 %vm430_vm3, %v1635_v2 }
0x19d3   :  { %5457 = vmatpush3.bf16.msra.mxu0 %v6645_v63  ;;  %5087 = vmatprep.mubr.msk.f32.mxu0 %vm6207_vm0, %v6208_v4 }
0x19d4   :  { %5458 = vmatprep.subr.bf16.mxu0 %v6206_v3 }
0x19d7   :  { %5460 = vmatpush3.bf16.msra.mxu0 %v6649_v5 }
0x19d8   :  { %5467 = vmatprep.subr.bf16.mxu0 %v6206_v3 }
0x1aa5   :  { %v1704_v6 = vpop.f32.mrb[12].mxu0 }
0x1aa6   :  { %v1708_v7 = vadd.f32 %v1704_v6, %v1629_v34  ;;  %v5067_v8 = vpop.f32.mrb[13].mxu0  ;;  %v1950_v6 = vld [vmem:[#allocation2 + $0x4] sm:$0x3] }
0x1aa8   :  { %5715 = vtanh.f32 %v1708_v7  ;;  %v1709_v11 = vmul.f32 0.5, %v1708_v7 }
0x1aaa   :  { %5717 = vtanh.f32 %v1709_v11 }
0x1ab2   :  { %v5716_v9 = vpop.eup %5715 }
0x1ab3   :  { %1716 = vrot.lane.b32.xlu0 %v5716_v9, %s6209_s7 }
0x1ab4   :  { %v5718_v12 = vpop.eup %5717 }
0x1ab5   :  { %v1711_v13 = vadd.f32 1.0, %v5718_v12 }
0x1ab7   :  { %v1712_v14 = vmul.f32 0.5, %v1711_v13 }
0x1ab9   :  { %v1714_v17 = vmul.f32 %v1712_v14, %v1617_v60 }
0x1b25   :  { %v1717_v15 = vpop.permute.xlu0 %1716 }
0x1b26   :  { %v1719_v16 = vmul.f32 %v1717_v15, %v1712_v14 }
0x1b28   :  { %1721 = vrot.lane.b32.xlu1 %v1719_v16, %s6210_s18 }
0x1b9a   :  { %v1722_v18 = vpop.permute.xlu1 %1721 }
0x1b9b   :  { %v1724_v19 = vadd.f32 %v1722_v18, %v1714_v17 }
0x1b9d   :  { %5719 = vtanh.f32 %v1724_v19 }
0x1ba7   :  { %v5720_v20 = vpop.eup %5719 }
0x1ba8   :  { %1727 = vrot.lane.b32.xlu0 %v5720_v20, %s6209_s7 }
0x1c1a   :  { %v1728_v21 = vpop.permute.xlu0 %1727 }
0x1c1b   :  { %v6708_v22 = vmul.f32 %v1728_v21, %v1712_v14 }
0x1c1d   :  { %1741 = vrot.lane.b32.xlu1 %v6708_v22, %s6210_s18 }
0x1c8f   :  { %v1742_v24 = vpop.permute.xlu1 %1741 }
0x1c90   :  { %5077 = vmatmul.mubr.msk.f32.vlgmr.msra.gmra.mrb[12].mxu1 %vm430_vm3, %v1742_v24 }
0x1c91   :  { %5463 = vmatpush3.bf16.msra.mxu1 %v6645_v63  ;;  %5098 = vmatprep.mubr.msk.f32.mxu1 %vm6207_vm0, %v6208_v4 }
0x1c92   :  { %5464 = vmatprep.subr.bf16.mxu1 %v6206_v3 }
0x1c95   :  { %5466 = vmatpush3.bf16.msra.mxu1 %v6649_v5 }
0x1c96   :  { %5473 = vmatprep.subr.bf16.mxu1 %v6206_v3 }
0x1d63   :  { %v1811_v28 = vpop.f32.mrb[12].mxu1 }
0x1d64   :  { %v1815_v29 = vadd.f32 %v1811_v28, %v1736_v26  ;;  %v5078_v30 = vpop.f32.mrb[13].mxu1  ;;  %v2057_v26 = vld [vmem:[#allocation2 + $0x2] sm:$0x3] }
0x1d66   :  { %5721 = vtanh.f32 %v1815_v29  ;;  %v1816_v32 = vmul.f32 0.5, %v1815_v29 }
0x1d68   :  { %5723 = vtanh.f32 %v1816_v32 }
0x1d70   :  { %v5722_v27 = vpop.eup %5721 }
0x1d71   :  { %1823 = vrot.lane.b32.xlu0 %v5722_v27, %s6209_s7 }
0x1d72   :  { %v5724_v35 = vpop.eup %5723 }
0x1d73   :  { %v1818_v36 = vadd.f32 1.0, %v5724_v35 }
0x1d75   :  { %v1819_v37 = vmul.f32 0.5, %v1818_v36 }
0x1d77   :  { %v1821_v39 = vmul.f32 %v1819_v37, %v1724_v19 }
0x1de3   :  { %v1824_v33 = vpop.permute.xlu0 %1823 }
0x1de4   :  { %v1826_v38 = vmul.f32 %v1824_v33, %v1819_v37 }
0x1de6   :  { %1828 = vrot.lane.b32.xlu1 %v1826_v38, %s6210_s18 }
0x1e58   :  { %v1829_v40 = vpop.permute.xlu1 %1828 }
0x1e59   :  { %v1831_v41 = vadd.f32 %v1829_v40, %v1821_v39 }
0x1e5b   :  { %5725 = vtanh.f32 %v1831_v41 }
0x1e65   :  { %v5726_v42 = vpop.eup %5725 }
0x1e66   :  { %1834 = vrot.lane.b32.xlu0 %v5726_v42, %s6209_s7  ;;  %v1253_v42 = vadd.f32 %v6675_v25, %v6658_v23 }
0x1ed8   :  { %v1835_v43 = vpop.permute.xlu0 %1834 }
0x1ed9   :  { %v6722_v44 = vmul.f32 %v1835_v43, %v1819_v37 }
0x1edb   :  { %1848 = vrot.lane.b32.xlu1 %v6722_v44, %s6210_s18 }
0x1f4d   :  { %v1849_v46 = vpop.permute.xlu1 %1848 }
0x1f4e   :  { %5088 = vmatmul.mubr.msk.f32.vlgmr.msra.gmra.mrb[14].mxu0 %vm430_vm3, %v1849_v46 }
0x1f4f   :  { %5469 = vmatpush3.bf16.msra.mxu0 %v6645_v63  ;;  %5109 = vmatprep.mubr.msk.f32.mxu0 %vm6207_vm0, %v6208_v4 }
0x1f50   :  { %5470 = vmatprep.subr.bf16.mxu0 %v6206_v3 }
0x1f53   :  { %5472 = vmatpush3.bf16.msra.mxu0 %v6649_v5 }
0x2021   :  { %v1918_v48 = vpop.f32.mrb[14].mxu0 }
0x2022   :  { %v1922_v49 = vadd.f32 %v1918_v48, %v1843_v47  ;;  %v5089_v50 = vpop.f32.mrb[15].mxu0  ;;  %v1254_v47 = vmul.f32 0.5, %v1253_v42 }
0x2024   :  { %5727 = vtanh.f32 %v1922_v49  ;;  %v1923_v52 = vmul.f32 0.5, %v1922_v49 }
0x2026   :  { %5729 = vtanh.f32 %v1923_v52 }
0x202e   :  { %v5728_v51 = vpop.eup %5727 }
0x202f   :  { %1930 = vrot.lane.b32.xlu0 %v5728_v51, %s6209_s7 }
0x2030   :  { %v5730_v53 = vpop.eup %5729 }
0x2031   :  { %v1925_v54 = vadd.f32 1.0, %v5730_v53 }
0x2033   :  { %v1926_v55 = vmul.f32 0.5, %v1925_v54 }
0x2035   :  { %v1928_v58 = vmul.f32 %v1926_v55, %v1831_v41 }
0x20a1   :  { %v1931_v56 = vpop.permute.xlu0 %1930 }
0x20a2   :  { %v1933_v57 = vmul.f32 %v1931_v56, %v1926_v55 }
0x20a4   :  { %1935 = vrot.lane.b32.xlu1 %v1933_v57, %s6210_s18 }
0x2116   :  { %v1936_v59 = vpop.permute.xlu1 %1935 }
0x2117   :  { %v1938_v60 = vadd.f32 %v1936_v59, %v1928_v58 }
0x2119   :  { %5731 = vtanh.f32 %v1938_v60 }
0x2123   :  { %v5732_v61 = vpop.eup %5731 }
0x2124   :  { %1941 = vrot.lane.b32.xlu0 %v5732_v61, %s6209_s7 }
0x2196   :  { %v1942_v62 = vpop.permute.xlu0 %1941 }
0x2197   :  { %v6735_v2 = vmul.f32 %v1942_v62, %v1926_v55 }
0x2199   :  { %1955 = vrot.lane.b32.xlu1 %v6735_v2, %s6210_s18 }
0x220b   :  { %v1956_v34 = vpop.permute.xlu1 %1955 }
0x220c   :  { %5099 = vmatmul.mubr.msk.f32.vlgmr.msra.gmra.mrb[14].mxu1 %vm430_vm3, %v1956_v34 }
0x220d   :  { %5475 = vmatpush3.bf16.msra.mxu1 %v6645_v63  ;;  %5120 = vmatprep.mubr.msk.f32.mxu1 %vm6207_vm0, %v6208_v4 }
0x220e   :  { %5476 = vmatprep.subr.bf16.mxu1 %v6206_v3 }
0x2211   :  { %5478 = vmatpush3.bf16.msra.mxu1 %v6649_v5 }
0x2212   :  { %5495 = vmatprep.subr.bf16.mxu1 %v6206_v3 }
0x22df   :  { %v2025_v7 = vpop.f32.mrb[14].mxu1 }
0x22e0   :  { %v2029_v8 = vadd.f32 %v2025_v7, %v1950_v6  ;;  %v5100_v9 = vpop.f32.mrb[15].mxu1 }
0x22e2   :  { %5733 = vtanh.f32 %v2029_v8  ;;  %v2030_v12 = vmul.f32 0.5, %v2029_v8 }
0x22e4   :  { %5735 = vtanh.f32 %v2030_v12 }
0x22ec   :  { %v5734_v11 = vpop.eup %5733 }
0x22ed   :  { %2037 = vrot.lane.b32.xlu0 %v5734_v11, %s6209_s7 }
0x22ee   :  { %v5736_v63 = vpop.eup %5735 }
0x22ef   :  { %v2032_v13 = vadd.f32 1.0, %v5736_v63 }
0x22f1   :  { %v2033_v14 = vmul.f32 0.5, %v2032_v13 }
0x22f3   :  { %v2035_v5 = vmul.f32 %v2033_v14, %v1938_v60  ;;  %v2164_v60 = vld [vmem:[#allocation2] sm:$0x3] }
0x235f   :  { %v2038_v15 = vpop.permute.xlu0 %2037 }
0x2360   :  { %v2040_v16 = vmul.f32 %v2038_v15, %v2033_v14 }
0x2362   :  { %2042 = vrot.lane.b32.xlu1 %v2040_v16, %s6210_s18 }
0x23d4   :  { %v2043_v17 = vpop.permute.xlu1 %2042 }
0x23d5   :  { %v2045_v18 = vadd.f32 %v2043_v17, %v2035_v5  ;;  %v2279_v17 = vld [vmem:[#allocation14] sm:$0xff] }
0x23d7   :  { %5737 = vtanh.f32 %v2045_v18 }
0x23e1   :  { %v5738_v19 = vpop.eup %5737 }
0x23e2   :  { %2048 = vrot.lane.b32.xlu0 %v5738_v19, %s6209_s7 }
0x2454   :  { %v2049_v20 = vpop.permute.xlu0 %2048 }
0x2455   :  { %v2051_v21 = vmul.f32 %v2049_v20, %v2033_v14  ;;  %v2281_v20 = vld [vmem:[#allocation14 + $0x10] sm:$0xff] }
0x2457   :  { %2062 = vrot.lane.b32.xlu1 %v2051_v21, %s6210_s18 }
0x24c9   :  { %v2063_v24 = vpop.permute.xlu1 %2062 }
0x24ca   :  { %5110 = vmatmul.mubr.msk.f32.vlgmr.msra.gmra.mrb[16].mxu0 %vm430_vm3, %v2063_v24 }
0x259d   :  { %v2132_v28 = vpop.f32.mrb[16].mxu0 }
0x259e   :  { %v2136_v29 = vadd.f32 %v2132_v28, %v2057_v26  ;;  %v5111_v30 = vpop.f32.mrb[17].mxu0  ;;  %v2283_v26 = vld [vmem:[#allocation14 + $0x20] sm:$0xff]  ;;  %v2284_v28 = vld [vmem:[#allocation14 + $0x28] sm:$0xff] }
0x259f   :  { %v2286_v30 = vld [vmem:[#allocation14 + $0x38] sm:$0xff] }
0x25a0   :  { %5739 = vtanh.f32 %v2136_v29  ;;  %v2137_v32 = vmul.f32 0.5, %v2136_v29  ;;  %v5487_v29 = vpack.c.bf16 %v2284_v28, %v2283_v26 }
0x25a2   :  { %5741 = vtanh.f32 %v2137_v32 }
0x25aa   :  { %v5740_v27 = vpop.eup %5739 }
0x25ab   :  { %2144 = vrot.lane.b32.xlu0 %v5740_v27, %s6209_s7 }
0x25ac   :  { %v5742_v35 = vpop.eup %5741 }
0x25ad   :  { %v2139_v36 = vadd.f32 1.0, %v5742_v35 }
0x25af   :  { %v2140_v37 = vmul.f32 0.5, %v2139_v36  ;;  %v2469_v36 = vld [vmem:[#allocation16] sm:$0xff] }
0x25b1   :  { %v2142_v39 = vmul.f32 %v2140_v37, %v2045_v18  ;;  %v2280_v18 = vld [vmem:[#allocation14 + $0x8] sm:$0xff] }
0x25b2   :  { %v5479_v19 = vpack.c.bf16 %v2280_v18, %v2279_v17 }
0x25b4   :  { %5480 = vmatprep.subr.bf16.mxu0 %v5479_v19 }
0x25b5   :  { %5482 = vmatpush3.bf16.msra.mxu0 %v5479_v19 }
0x261d   :  { %v2145_v33 = vpop.permute.xlu0 %2144 }
0x261e   :  { %v2147_v38 = vmul.f32 %v2145_v33, %v2140_v37  ;;  %v2471_v33 = vld [vmem:[#allocation16 + $0x10] sm:$0xff] }
0x2620   :  { %2149 = vrot.lane.b32.xlu1 %v2147_v38, %s6210_s18 }
0x2692   :  { %v2150_v40 = vpop.permute.xlu1 %2149 }
0x2693   :  { %v2152_v41 = vadd.f32 %v2150_v40, %v2142_v39  ;;  %v2472_v39 = vld [vmem:[#allocation16 + $0x18] sm:$0xff] }
0x2694   :  { %v6790_v40 = vpack.c.bf16 %v2472_v39, %v2471_v33 }
0x2695   :  { %5743 = vtanh.f32 %v2152_v41 }
0x2696   :  { %5745 = vtanh.f32 %v1253_v42 }
0x2697   :  { %5747 = vtanh.f32 %v1254_v47 }
0x269f   :  { %v5744_v43 = vpop.eup %5743 }
0x26a0   :  { %2155 = vrot.lane.b32.xlu0 %v5744_v43, %s6209_s7  ;;  %v5746_v46 = vpop.eup %5745 }
0x26a1   :  { %v5748_v48 = vpop.eup %5747 }
0x26a2   :  { %v1256_v49 = vadd.f32 1.0, %v5748_v48 }
0x26a4   :  { %1261 = vrot.lane.b32.xlu0 %v5746_v46, %s6209_s7  ;;  %v1257_v52 = vmul.f32 0.5, %v1256_v49 }
0x26a6   :  { %v1259_v25 = vmul.f32 %v1257_v52, %v6636_v31 }
0x2712   :  { %v2156_v50 = vpop.permute.xlu0 %2155 }
0x2713   :  { %v2158_v51 = vmul.f32 %v2156_v50, %v2140_v37  ;;  %v2470_v37 = vld [vmem:[#allocation16 + $0x8] sm:$0xff] }
0x2714   :  { %v6787_v38 = vpack.c.bf16 %v2470_v37, %v2469_v36 }
0x2715   :  { %2169 = vrot.lane.b32.xlu1 %v2158_v51, %s6210_s18 }
0x2716   :  { %v1262_v53 = vpop.permute.xlu0 %1261 }
0x2717   :  { %v1264_v54 = vmul.f32 %v1262_v53, %v1257_v52 }
0x2719   :  { %1266 = vrot.lane.b32.xlu0 %v1264_v54, %s6210_s18 }
0x2787   :  { %v2170_v23 = vpop.permute.xlu1 %2169 }
0x2788   :  { %5121 = vmatmul.mubr.msk.f32.vlgmr.msra.gmra.mrb[16].mxu1 %vm430_vm3, %v2170_v23 }
0x2789   :  { %5150 = vmatprep.mubr.msk.f32.mxu1 %vm6207_vm0, %v6208_v4  ;;  %5497 = vmatpush3.bf16.msra.mxu1 %v6787_v38 }
0x278a   :  { %5498 = vmatprep.subr.bf16.mxu1 %v6206_v3 }
0x278b   :  { %v1267_v55 = vpop.permute.xlu0 %1266 }
0x278c   :  { %v1269_v56 = vadd.f32 %v1267_v55, %v1259_v25 }
0x278d   :  { %5500 = vmatpush3.bf16.msra.mxu1 %v6790_v40 }
0x278e   :  { %5749 = vtanh.f32 %v1269_v56  ;;  %5501 = vmatprep.subr.bf16.mxu1 %v6206_v3 }
0x2790   :  { %5151 = vmatmul.mubr.f32.vlgmr.msra.gmra.mrb[18].mxu1 %v6208_v4 }
0x2791   :  { %5503 = vmatpush3.bf16.msra.mxu1 %v6787_v38  ;;  %5161 = vmatprep.mubr.msk.f32.mxu1 %vm6207_vm0, %v6208_v4 }
0x2792   :  { %5504 = vmatprep.subr.bf16.mxu1 %v6206_v3 }
0x2795   :  { %5506 = vmatpush3.bf16.msra.mxu1 %v6790_v40 }
0x2796   :  { %5513 = vmatprep.subr.bf16.mxu1 %v6206_v3 }
0x2798   :  { %v5750_v57 = vpop.eup %5749 }
0x2799   :  { %1272 = vrot.lane.b32.xlu0 %v5750_v57, %s6209_s7 }
0x280b   :  { %v1273_v58 = vpop.permute.xlu0 %1272 }
0x280c   :  { %v1275_v59 = vmul.f32 %v1273_v58, %v1257_v52 }
0x280e   :  { %1277 = vrot.lane.b32.xlu0 %v1275_v59, %s6210_s18 }
0x2812   :  { %2053 = vrot.lane.b32.xlu0 %v2051_v21, %s6209_s7  ;;  %v2282_v21 = vld [vmem:[#allocation14 + $0x18] sm:$0xff] }
0x2813   :  { %v5483_v24 = vpack.c.bf16 %v2282_v21, %v2281_v20 }
0x2815   :  { %5484 = vmatprep.subr.bf16.mxu0 %v5483_v24 }
0x2816   :  { %1625 = vrot.lane.b32.xlu0 %v6694_v1, %s6209_s7  ;;  %5486 = vmatpush3.bf16.msra.mxu0 %v5483_v24 }
0x2817   :  { %5488 = vmatprep.subr.bf16.mxu0 %v5487_v29 }
0x281a   :  { %5490 = vmatpush3.bf16.msra.mxu0 %v5487_v29 }
0x285b   :  { %v2239_v61 = vpop.f32.mrb[16].mxu1 }
0x285c   :  { %v2243_v62 = vadd.f32 %v2239_v61, %v2164_v60  ;;  %v5122_v34 = vpop.f32.mrb[17].mxu1 }
0x285e   :  { %5751 = vtanh.f32 %v2243_v62  ;;  %v2244_v9 = vmul.f32 0.5, %v2243_v62 }
0x2860   :  { %5753 = vtanh.f32 %v2244_v9 }
0x2863   :  { %v2539_v62 = vpop.f32.mrb[18].mxu1 }
0x2864   :  { %v5152_v34 = vpop.f32.mrb[19].mxu1 }
0x2868   :  { %v5752_v31 = vpop.eup %5751 }
0x2869   :  { %2251 = vrot.lane.b32.xlu1 %v5752_v31, %s6209_s7  ;;  %v4687_v31 = vld [vmem:[#allocation17] ss:$0 sm:$0xff] }
0x286a   :  { %v5754_v1 = vpop.eup %5753 }
0x286b   :  { %v2246_v11 = vadd.f32 1.0, %v5754_v1 }
0x286d   :  { %v2247_v12 = vmul.f32 0.5, %v2246_v11 }
0x286f   :  { %v2249_v14 = vmul.f32 %v2247_v12, %v2152_v41 }
0x2880   :  { %v1278_v6 = vpop.permute.xlu0 %1277 }
0x2881   :  { %1281 = vst.msk [vmem:[#allocation3 + $0xe] sm:$0x3] %vm531_vm2, %v1278_v6 }
0x2884   :  { %v2054_v7 = vpop.permute.xlu0 %2053 }
0x2885   :  { %2056 = vst.msk [vmem:[#allocation3 + $0x4] sm:$0x3] %vm1520_vm4, %v2054_v7 }
0x2888   :  { %v1626_v8 = vpop.permute.xlu0 %1625 }
0x2889   :  { %1628 = vst.msk [vmem:[#allocation3 + $0xc] sm:$0x3] %vm1520_vm4, %v1626_v8 }
0x288c   :  { %v2273_v47 = vld [vmem:[#allocation3 + $0x4] sm:$0x3] }
0x2890   :  { %v2277_v53 = vld [vmem:[#allocation3 + $0xc] sm:$0x3] }
0x28db   :  { %v2252_v63 = vpop.permute.xlu1 %2251 }
0x28dc   :  { %v2254_v13 = vmul.f32 %v2252_v63, %v2247_v12 }
0x28de   :  { %2256 = vrot.lane.b32.xlu1 %v2254_v13, %s6210_s18 }
0x2950   :  { %v2257_v15 = vpop.permute.xlu1 %2256 }
0x2951   :  { %v2259_v16 = vadd.f32 %v2257_v15, %v2249_v14 }
0x2953   :  { %5755 = vtanh.f32 %v2259_v16 }
0x295d   :  { %v5756_v5 = vpop.eup %5755 }
0x295e   :  { %2262 = vrot.lane.b32.xlu1 %v5756_v5, %s6209_s7 }
0x2962   :  { %1946 = vrot.lane.b32.xlu1 %v6735_v2, %s6209_s7  ;;  %v2285_v2 = vld [vmem:[#allocation14 + $0x30] sm:$0xff] }
0x2966   :  { %2160 = vrot.lane.b32.xlu1 %v2158_v51, %s6209_s7 }
0x296a   :  { %1517 = vrot.lane.b32.xlu1 %v6680_v45, %s6209_s7  ;;  %v5491_v45 = vpack.c.bf16 %v2286_v30, %v2285_v2 }
0x296c   :  { %5492 = vmatprep.subr.bf16.mxu0 %v5491_v45 }
0x296d   :  { %5494 = vmatpush3.bf16.msra.mxu0 %v5491_v45 }
0x296e   :  { %1732 = vrot.lane.b32.xlu1 %v6708_v22, %s6209_s7  ;;  %5507 = vmatprep.subr.bf16.mxu0 %v6206_v3 }
0x29d0   :  { %v2263_v27 = vpop.permute.xlu1 %2262 }
0x29d1   :  { %v2265_v32 = vmul.f32 %v2263_v27, %v2247_v12 }
0x29d3   :  { %2267 = vrot.lane.b32.xlu0 %v2265_v32, %s6209_s7 }
0x29d4   :  { %v1947_v22 = vpop.permute.xlu1 %1946 }
0x29d5   :  { %1949 = vst.msk [vmem:[#allocation3 + $0x6] sm:$0x3] %vm1520_vm4, %v1947_v22 }
0x29d7   :  { %1839 = vrot.lane.b32.xlu0 %v6722_v44, %s6209_s7 }
0x29d8   :  { %v2161_v35 = vpop.permute.xlu1 %2160 }
0x29d9   :  { %2163 = vst.msk [vmem:[#allocation3 + $0x2] sm:$0x3] %vm1520_vm4, %v2161_v35 }
0x29dc   :  { %v1518_v41 = vpop.permute.xlu1 %1517  ;;  %v2274_v46 = vld [vmem:[#allocation3 + $0x6] sm:$0x3] }
0x29dd   :  { %1521 = vst.msk [vmem:[#allocation3 + $0xe] sm:$0x3] %vm1520_vm4, %v1518_v41  ;;  %v2303_v48 = vcombine.low %v2273_v47, %v2274_v46 }
0x29df   :  { %v2317_v23 = vrot.slane %v2303_v48, %v6506_v10 }
0x29e0   :  { %v1733_v44 = vpop.permute.xlu1 %1732  ;;  %v2272_v50 = vld [vmem:[#allocation3 + $0x2] sm:$0x3] }
0x29e1   :  { %1735 = vst.msk [vmem:[#allocation3 + $0xa] sm:$0x3] %vm1520_vm4, %v1733_v44 }
0x29e4   :  { %v2278_v51 = vld [vmem:[#allocation3 + $0xe] sm:$0x3] }
0x29e5   :  { %v2320_v25 = vcombine.low %v2277_v53, %v2278_v51 }
0x29e7   :  { %v2334_v60 = vrot.slane %v2320_v25, %v6506_v10 }
0x29e8   :  { %v2276_v56 = vld [vmem:[#allocation3 + $0xa] sm:$0x3] }
0x2a45   :  { %v2268_v42 = vpop.permute.xlu0 %2267 }
0x2a46   :  { %2270 = vst.msk [vmem:[#allocation3] sm:$0x3] %vm1520_vm4, %v2268_v42 }
0x2a49   :  { %v1840_v43 = vpop.permute.xlu0 %1839 }
0x2a4a   :  { %1842 = vst.msk [vmem:[#allocation3 + $0x8] sm:$0x3] %vm1520_vm4, %v1840_v43 }
0x2a4d   :  { %v2271_v49 = vld [vmem:[#allocation3] sm:$0x3] }
0x2a4e   :  { %v2302_v52 = vcombine.low %v2271_v49, %v2272_v50 }
0x2a50   :  { %v2310_v54 = vrot.slane %v2302_v52, %v6506_v10 }
0x2a51   :  { %v2275_v55 = vld [vmem:[#allocation3 + $0x8] sm:$0x3] }
0x2a52   :  { %v6808_v57 = vcombine.low %v2310_v54, %v2317_v23  ;;  %v2319_v58 = vcombine.low %v2275_v55, %v2276_v56 }
0x2a54   :  { %5139 = vmatprep.mubr.msk.f32.mxu0 %vm2336_vm5, %v6808_v57  ;;  %v2327_v59 = vrot.slane %v2319_v58, %v6506_v10 }
0x2a56   :  { %v6814_v61 = vcombine.low %v2327_v59, %v2334_v60 }
0x2a58   :  { %5140 = vmatmul.mubr.msk.f32.vlgmr.msra.gmra.mrb[18].mxu0 %vm2336_vm5, %v6814_v61 }
0x2a59   :  { %5509 = vmatpush3.bf16.msra.mxu0 %v6787_v38  ;;  %5172 = vmatprep.mubr.msk.f32.mxu0 %vm6207_vm0, %v6208_v4 }
0x2a5a   :  { %5510 = vmatprep.subr.bf16.mxu0 %v6206_v3 }
0x2a5d   :  { %5512 = vmatpush3.bf16.msra.mxu0 %v6790_v40 }
0x2a5e   :  { %5519 = vmatprep.subr.bf16.mxu0 %v6206_v3 }
0x2b2b   :  { %v5141_v6 = vpop.f32.mrb[18].mxu0 }
0x2b2c   :  { %v2413_v7 = vadd.f32 %v5141_v6, %v4687_v31  ;;  %v2407_v8 = vpop.f32.mrb[19].mxu0 }
0x2b2d   :  { %v2408_v9 = vadd.f32 %v4687_v31, %v2407_v8 }
0x2b2e   :  { %v2435_v1 = vcombine.high %v2413_v7, %v2413_v7  ;;  %v2442_v11 = vrot.slane %v2413_v7, %v6506_v10  ;;  %4692 = vst.sshfl [vmem:[#allocation4 + $0x8] sm:$0x3 pattern:$0x76325410] %v2413_v7 }
0x2b2f   :  { %v2418_v12 = vcombine.high %v2408_v9, %v2408_v9  ;;  %v2425_v63 = vrot.slane %v2408_v9, %v6506_v10  ;;  %4690 = vst.sshfl [vmem:[#allocation4] sm:$0x3 pattern:$0x76325410] %v2408_v9 }
0x2b30   :  { %v2449_v13 = vrot.slane %v2435_v1, %v6506_v10  ;;  %v2450_v14 = vcombine.high %v2442_v11, %v2442_v11  ;;  %4693 = vst.sshfl [vmem:[#allocation4 + $0xc] sm:$0x3 pattern:$0x76325410] %v2435_v1 }
0x2b31   :  { %v2432_v15 = vrot.slane %v2418_v12, %v6506_v10  ;;  %v2433_v16 = vcombine.high %v2425_v63, %v2425_v63  ;;  %4691 = vst.sshfl [vmem:[#allocation4 + $0x4] sm:$0x3 pattern:$0x76325410] %v2418_v12 }
0x2b32   :  { %v2451_v5 = vcombine.high %v2449_v13, %v2449_v13  ;;  %2465 = vst [vmem:[#allocation4 + $0xa] sm:$0x3] %v2450_v14 }
0x2b33   :  { %v2434_v17 = vcombine.high %v2432_v15, %v2432_v15  ;;  %2461 = vst [vmem:[#allocation4 + $0x2] sm:$0x3] %v2433_v16 }
0x2b34   :  { %2467 = vst [vmem:[#allocation4 + $0xe] sm:$0x3] %v2451_v5 }
0x2b35   :  { %2463 = vst [vmem:[#allocation4 + $0x6] sm:$0x3] %v2434_v17 }
0x2b36   :  { %v2468_v18 = vld [vmem:[#allocation4] sm:$0x3] }
0x2b37   :  { %v2543_v19 = vadd.f32 %v2539_v62, %v2468_v18 }
0x2b38   :  { %v2679_v55 = vld [vmem:[#allocation4 + $0x4] sm:$0x3] }
0x2b39   :  { %5757 = vtanh.f32 %v2543_v19  ;;  %v2544_v21 = vmul.f32 0.5, %v2543_v19 }
0x2b3a   :  { %v2572_v37 = vld [vmem:[#allocation4 + $0x2] sm:$0x3] }
0x2b3b   :  { %5759 = vtanh.f32 %v2544_v21 }
0x2b3c   :  { %v2786_v15 = vld [vmem:[#allocation4 + $0x6] sm:$0x3] }
0x2b43   :  { %v5758_v20 = vpop.eup %5757 }
0x2b44   :  { %2551 = vrot.lane.b32.xlu1 %v5758_v20, %s6209_s7 }
0x2b45   :  { %v5760_v24 = vpop.eup %5759 }
0x2b46   :  { %v2546_v26 = vadd.f32 1.0, %v5760_v24 }
0x2b48   :  { %v2547_v28 = vmul.f32 0.5, %v2546_v26 }
0x2b4a   :  { %v2549_v30 = vmul.f32 0.0, %v2547_v28 }
0x2bb6   :  { %v2552_v29 = vpop.permute.xlu1 %2551 }
0x2bb7   :  { %v2554_v2 = vmul.f32 %v2552_v29, %v2547_v28 }
0x2bb9   :  { %2556 = vrot.lane.b32.xlu0 %v2554_v2, %s6210_s18 }
0x2c2b   :  { %v2557_v45 = vpop.permute.xlu0 %2556 }
0x2c2c   :  { %v2559_v27 = vadd.f32 %v2557_v45, %v2549_v30 }
0x2c2e   :  { %5761 = vtanh.f32 %v2559_v27 }
0x2c38   :  { %v5762_v32 = vpop.eup %5761 }
0x2c39   :  { %2562 = vrot.lane.b32.xlu1 %v5762_v32, %s6209_s7 }
0x2cab   :  { %v2563_v22 = vpop.permute.xlu1 %2562 }
0x2cac   :  { %v2565_v35 = vmul.f32 %v2563_v22, %v2547_v28 }
0x2cae   :  { %2567 = vrot.lane.b32.xlu0 %v2565_v35, %s6210_s18  ;;  %v2893_v35 = vld [vmem:[#allocation4 + $0x8] sm:$0x3] }
0x2d20   :  { %v2568_v36 = vpop.permute.xlu0 %2567 }
0x2d21   :  { %2570 = vst.msk [vmem:[#allocation5] sm:$0x3] %vm531_vm2, %v2568_v36  ;;  %5162 = vmatmul.mubr.msk.f32.vlgmr.msra.gmra.mrb[20].mxu1 %vm430_vm3, %v2568_v36 }
0x2d22   :  { %5515 = vmatpush3.bf16.msra.mxu1 %v6787_v38  ;;  %5183 = vmatprep.mubr.msk.f32.mxu1 %vm6207_vm0, %v6208_v4 }
0x2d23   :  { %5516 = vmatprep.subr.bf16.mxu1 %v6206_v3 }
0x2d26   :  { %5518 = vmatpush3.bf16.msra.mxu1 %v6790_v40 }
0x2d27   :  { %5525 = vmatprep.subr.bf16.mxu1 %v6206_v3 }
0x2df4   :  { %v2645_v33 = vpop.f32.mrb[20].mxu1 }
0x2df5   :  { %v2649_v39 = vadd.f32 %v2645_v33, %v2572_v37  ;;  %v5163_v41 = vpop.f32.mrb[21].mxu1 }
0x2df7   :  { %5763 = vtanh.f32 %v2649_v39  ;;  %v2650_v42 = vmul.f32 0.5, %v2649_v39 }
0x2df9   :  { %5765 = vtanh.f32 %v2650_v42 }
0x2e01   :  { %v5764_v44 = vpop.eup %5763 }
0x2e02   :  { %2657 = vrot.lane.b32.xlu1 %v5764_v44, %s6209_s7 }
0x2e03   :  { %v5766_v43 = vpop.eup %5765 }
0x2e04   :  { %v2652_v46 = vadd.f32 1.0, %v5766_v43 }
0x2e06   :  { %v2653_v47 = vmul.f32 0.5, %v2652_v46 }
0x2e08   :  { %v2655_v50 = vmul.f32 %v2653_v47, %v2559_v27 }
0x2e74   :  { %v2658_v48 = vpop.permute.xlu1 %2657 }
0x2e75   :  { %v2660_v49 = vmul.f32 %v2658_v48, %v2653_v47 }
0x2e77   :  { %2662 = vrot.lane.b32.xlu0 %v2660_v49, %s6210_s18 }
0x2ee9   :  { %v2663_v51 = vpop.permute.xlu0 %2662 }
0x2eea   :  { %v2665_v52 = vadd.f32 %v2663_v51, %v2655_v50 }
0x2eec   :  { %5767 = vtanh.f32 %v2665_v52 }
0x2ef6   :  { %v5768_v53 = vpop.eup %5767 }
0x2ef7   :  { %2668 = vrot.lane.b32.xlu1 %v5768_v53, %s6209_s7 }
0x2f69   :  { %v2669_v54 = vpop.permute.xlu1 %2668 }
0x2f6a   :  { %v2671_v23 = vmul.f32 %v2669_v54, %v2653_v47 }
0x2f6c   :  { %2673 = vrot.lane.b32.xlu0 %v2671_v23, %s6210_s18  ;;  %v3000_v23 = vld [vmem:[#allocation4 + $0xa] sm:$0x3] }
0x2fde   :  { %v2674_v25 = vpop.permute.xlu0 %2673 }
0x2fdf   :  { %2677 = vst.msk [vmem:[#allocation5 + $0x2] sm:$0x3] %vm531_vm2, %v2674_v25  ;;  %5173 = vmatmul.mubr.msk.f32.vlgmr.msra.gmra.mrb[20].mxu0 %vm430_vm3, %v2674_v25 }
0x2fe0   :  { %5521 = vmatpush3.bf16.msra.mxu0 %v6787_v38  ;;  %5194 = vmatprep.mubr.msk.f32.mxu0 %vm6207_vm0, %v6208_v4 }
0x2fe1   :  { %5522 = vmatprep.subr.bf16.mxu0 %v6206_v3 }
0x2fe4   :  { %5524 = vmatpush3.bf16.msra.mxu0 %v6790_v40 }
0x2fe5   :  { %5531 = vmatprep.subr.bf16.mxu0 %v6206_v3 }
0x30b2   :  { %v2752_v56 = vpop.f32.mrb[20].mxu0 }
0x30b3   :  { %v2756_v58 = vadd.f32 %v2752_v56, %v2679_v55  ;;  %v5174_v59 = vpop.f32.mrb[21].mxu0 }
0x30b5   :  { %5769 = vtanh.f32 %v2756_v58  ;;  %v2757_v62 = vmul.f32 0.5, %v2756_v58 }
0x30b7   :  { %5771 = vtanh.f32 %v2757_v62 }
0x30bf   :  { %v5770_v60 = vpop.eup %5769 }
0x30c0   :  { %2764 = vrot.lane.b32.xlu1 %v5770_v60, %s6209_s7 }
0x30c1   :  { %v5772_v34 = vpop.eup %5771 }
0x30c2   :  { %v2759_v31 = vadd.f32 1.0, %v5772_v34 }
0x30c4   :  { %v2760_v6 = vmul.f32 0.5, %v2759_v31 }
0x30c6   :  { %v2762_v9 = vmul.f32 %v2760_v6, %v2665_v52 }
0x3132   :  { %v2765_v7 = vpop.permute.xlu1 %2764 }
0x3133   :  { %v2767_v8 = vmul.f32 %v2765_v7, %v2760_v6 }
0x3135   :  { %2769 = vrot.lane.b32.xlu0 %v2767_v8, %s6210_s18  ;;  %v3320_v8 = vld [vmem:[#allocation19] sm:$0xff] }
0x31a7   :  { %v2770_v1 = vpop.permute.xlu0 %2769 }
0x31a8   :  { %v2772_v11 = vadd.f32 %v2770_v1, %v2762_v9  ;;  %v3321_v9 = vld [vmem:[#allocation19 + $0x8] sm:$0xff] }
0x31a9   :  { %v5543_v1 = vpack.c.bf16 %v3321_v9, %v3320_v8 }
0x31aa   :  { %5773 = vtanh.f32 %v2772_v11 }
0x31b4   :  { %v5774_v12 = vpop.eup %5773 }
0x31b5   :  { %2775 = vrot.lane.b32.xlu1 %v5774_v12, %s6209_s7 }
0x3227   :  { %v2776_v63 = vpop.permute.xlu1 %2775 }
0x3228   :  { %v2778_v13 = vmul.f32 %v2776_v63, %v2760_v6 }
0x322a   :  { %2780 = vrot.lane.b32.xlu0 %v2778_v13, %s6210_s18  ;;  %v3322_v13 = vld [vmem:[#allocation19 + $0x10] sm:$0xff] }
0x329c   :  { %v2781_v14 = vpop.permute.xlu0 %2780 }
0x329d   :  { %2784 = vst.msk [vmem:[#allocation5 + $0x4] sm:$0x3] %vm531_vm2, %v2781_v14  ;;  %5184 = vmatmul.mubr.msk.f32.vlgmr.msra.gmra.mrb[22].mxu1 %vm430_vm3, %v2781_v14  ;;  %v3323_v14 = vld [vmem:[#allocation19 + $0x18] sm:$0xff] }
0x329e   :  { %5527 = vmatpush3.bf16.msra.mxu1 %v6787_v38  ;;  %5205 = vmatprep.mubr.msk.f32.mxu1 %vm6207_vm0, %v6208_v4 }
0x329f   :  { %5528 = vmatprep.subr.bf16.mxu1 %v6206_v3 }
0x32a2   :  { %5530 = vmatpush3.bf16.msra.mxu1 %v6790_v40 }
0x32a3   :  { %5537 = vmatprep.subr.bf16.mxu1 %v6206_v3 }
0x3370   :  { %v2859_v16 = vpop.f32.mrb[22].mxu1 }
0x3371   :  { %v2863_v5 = vadd.f32 %v2859_v16, %v2786_v15  ;;  %v5185_v17 = vpop.f32.mrb[23].mxu1  ;;  %v5547_v15 = vpack.c.bf16 %v3323_v14, %v3322_v13 }
0x3372   :  { %v3325_v17 = vld [vmem:[#allocation19 + $0x28] sm:$0xff] }
0x3373   :  { %5775 = vtanh.f32 %v2863_v5  ;;  %v2864_v19 = vmul.f32 0.5, %v2863_v5  ;;  %v3324_v5 = vld [vmem:[#allocation19 + $0x20] sm:$0xff] }
0x3375   :  { %5777 = vtanh.f32 %v2864_v19  ;;  %v3326_v19 = vld [vmem:[#allocation19 + $0x30] sm:$0xff] }
0x337d   :  { %v5776_v18 = vpop.eup %5775 }
0x337e   :  { %2871 = vrot.lane.b32.xlu1 %v5776_v18, %s6209_s7  ;;  %v5551_v18 = vpack.c.bf16 %v3325_v17, %v3324_v5 }
0x337f   :  { %v5778_v20 = vpop.eup %5777 }
0x3380   :  { %v2866_v21 = vadd.f32 1.0, %v5778_v20  ;;  %v3327_v20 = vld [vmem:[#allocation19 + $0x38] sm:$0xff] }
0x3382   :  { %v2867_v24 = vmul.f32 0.5, %v2866_v21  ;;  %v5555_v21 = vpack.c.bf16 %v3327_v20, %v3326_v19 }
0x3384   :  { %v2869_v29 = vmul.f32 %v2867_v24, %v2772_v11 }
0x33f0   :  { %v2872_v26 = vpop.permute.xlu1 %2871 }
0x33f1   :  { %v2874_v28 = vmul.f32 %v2872_v26, %v2867_v24 }
0x33f3   :  { %2876 = vrot.lane.b32.xlu0 %v2874_v28, %s6210_s18 }
0x3465   :  { %v2877_v2 = vpop.permute.xlu0 %2876 }
0x3466   :  { %v2879_v30 = vadd.f32 %v2877_v2, %v2869_v29  ;;  %v4701_v2 = vld [vmem:[#allocation22] ss:$0 sm:$0xff] }
0x3468   :  { %5779 = vtanh.f32 %v2879_v30 }
0x3472   :  { %v5780_v45 = vpop.eup %5779 }
0x3473   :  { %2882 = vrot.lane.b32.xlu1 %v5780_v45, %s6209_s7 }
0x34e5   :  { %v2883_v27 = vpop.permute.xlu1 %2882 }
0x34e6   :  { %v2885_v32 = vmul.f32 %v2883_v27, %v2867_v24  ;;  %v3107_v24 = vld [vmem:[#allocation4 + $0xc] sm:$0x3] }
0x34e8   :  { %2887 = vrot.lane.b32.xlu0 %v2885_v32, %s6210_s18 }
0x355a   :  { %v2888_v22 = vpop.permute.xlu0 %2887 }
0x355b   :  { %2891 = vst.msk [vmem:[#allocation5 + $0x6] sm:$0x3] %vm531_vm2, %v2888_v22  ;;  %5195 = vmatmul.mubr.msk.f32.vlgmr.msra.gmra.mrb[22].mxu0 %vm430_vm3, %v2888_v22 }
0x355c   :  { %5533 = vmatpush3.bf16.msra.mxu0 %v6787_v38  ;;  %5216 = vmatprep.mubr.msk.f32.mxu0 %vm6207_vm0, %v6208_v4 }
0x355d   :  { %5534 = vmatprep.subr.bf16.mxu0 %v6206_v3 }
0x3560   :  { %5536 = vmatpush3.bf16.msra.mxu0 %v6790_v40 }
0x3561   :  { %5544 = vmatprep.subr.bf16.mxu0 %v5543_v1 }
0x362e   :  { %v2966_v36 = vpop.f32.mrb[22].mxu0 }
0x362f   :  { %v2970_v37 = vadd.f32 %v2966_v36, %v2893_v35  ;;  %v5196_v33 = vpop.f32.mrb[23].mxu0 }
0x3631   :  { %5781 = vtanh.f32 %v2970_v37  ;;  %v2971_v41 = vmul.f32 0.5, %v2970_v37 }
0x3633   :  { %5783 = vtanh.f32 %v2971_v41 }
0x363b   :  { %v5782_v39 = vpop.eup %5781 }
0x363c   :  { %2978 = vrot.lane.b32.xlu1 %v5782_v39, %s6209_s7 }
0x363d   :  { %v5784_v44 = vpop.eup %5783 }
0x363e   :  { %v2973_v42 = vadd.f32 1.0, %v5784_v44 }
0x3640   :  { %v2974_v43 = vmul.f32 0.5, %v2973_v42 }
0x3642   :  { %v2976_v48 = vmul.f32 %v2974_v43, %v2879_v30 }
0x36ae   :  { %v2979_v46 = vpop.permute.xlu1 %2978 }
0x36af   :  { %v2981_v47 = vmul.f32 %v2979_v46, %v2974_v43 }
0x36b1   :  { %2983 = vrot.lane.b32.xlu0 %v2981_v47, %s6210_s18 }
0x3723   :  { %v2984_v49 = vpop.permute.xlu0 %2983 }
0x3724   :  { %v2986_v50 = vadd.f32 %v2984_v49, %v2976_v48 }
0x3726   :  { %5785 = vtanh.f32 %v2986_v50 }
0x3730   :  { %v5786_v51 = vpop.eup %5785 }
0x3731   :  { %2989 = vrot.lane.b32.xlu1 %v5786_v51, %s6209_s7 }
0x37a3   :  { %v2990_v52 = vpop.permute.xlu1 %2989 }
0x37a4   :  { %v2992_v53 = vmul.f32 %v2990_v52, %v2974_v43  ;;  %v6908_v43 = vld [vmem:[#allocation4 + $0xe] sm:$0x3] }
0x37a6   :  { %2994 = vrot.lane.b32.xlu0 %v2992_v53, %s6210_s18 }
0x3818   :  { %v2995_v54 = vpop.permute.xlu0 %2994 }
0x3819   :  { %2998 = vst.msk [vmem:[#allocation5 + $0x8] sm:$0x3] %vm531_vm2, %v2995_v54  ;;  %5206 = vmatmul.mubr.msk.f32.vlgmr.msra.gmra.mrb[24].mxu1 %vm430_vm3, %v2995_v54 }
0x381a   :  { %5539 = vmatpush3.bf16.msra.mxu1 %v6787_v38  ;;  %5227 = vmatprep.mubr.msk.f32.mxu1 %vm6207_vm0, %v6208_v4 }
0x381b   :  { %5540 = vmatprep.subr.bf16.mxu1 %v6206_v3 }
0x381e   :  { %5542 = vmatpush3.bf16.msra.mxu1 %v6790_v40 }
0x381f   :  { %5559 = vmatprep.subr.bf16.mxu1 %v6206_v3 }
0x38ec   :  { %v3073_v25 = vpop.f32.mrb[24].mxu1 }
0x38ed   :  { %v3077_v55 = vadd.f32 %v3073_v25, %v3000_v23  ;;  %v5207_v56 = vpop.f32.mrb[25].mxu1  ;;  %v3463_v25 = vld [vmem:[#allocation20] sm:$0xff] }
0x38ef   :  { %5787 = vtanh.f32 %v3077_v55  ;;  %v3078_v59 = vmul.f32 0.5, %v3077_v55  ;;  %v3464_v55 = vld [vmem:[#allocation20 + $0x8] sm:$0xff] }
0x38f0   :  { %v6916_v56 = vpack.c.bf16 %v3464_v55, %v3463_v25 }
0x38f1   :  { %5789 = vtanh.f32 %v3078_v59  ;;  %v3466_v59 = vld [vmem:[#allocation20 + $0x18] sm:$0xff] }
0x38f9   :  { %v5788_v58 = vpop.eup %5787 }
0x38fa   :  { %3085 = vrot.lane.b32.xlu1 %v5788_v58, %s6209_s7  ;;  %v3465_v58 = vld [vmem:[#allocation20 + $0x10] sm:$0xff] }
0x38fb   :  { %v5790_v38 = vpop.eup %5789 }
0x38fc   :  { %v3080_v60 = vadd.f32 1.0, %v5790_v38  ;;  %v6920_v38 = vpack.c.bf16 %v3466_v59, %v3465_v58 }
0x38fe   :  { %v3081_v62 = vmul.f32 0.5, %v3080_v60 }
0x3900   :  { %v3083_v40 = vmul.f32 %v3081_v62, %v2986_v50 }
0x396c   :  { %v3086_v34 = vpop.permute.xlu1 %3085 }
0x396d   :  { %v3088_v31 = vmul.f32 %v3086_v34, %v3081_v62 }
0x396f   :  { %3090 = vrot.lane.b32.xlu0 %v3088_v31, %s6210_s18 }
0x39e1   :  { %v3091_v6 = vpop.permute.xlu0 %3090 }
0x39e2   :  { %v6889_v7 = vadd.f32 %v3091_v6, %v3083_v40 }
0x39e4   :  { %5791 = vtanh.f32 %v6889_v7 }
0x39ee   :  { %v5792_v11 = vpop.eup %5791 }
0x39ef   :  { %3096 = vrot.lane.b32.xlu1 %v5792_v11, %s6209_s7 }
0x3a61   :  { %v3097_v12 = vpop.permute.xlu1 %3096 }
0x3a62   :  { %v3099_v63 = vmul.f32 %v3097_v12, %v3081_v62 }
0x3a64   :  { %3101 = vrot.lane.b32.xlu0 %v3099_v63, %s6210_s18 }
0x3ad6   :  { %v3102_v16 = vpop.permute.xlu0 %3101 }
0x3ad7   :  { %3105 = vst.msk [vmem:[#allocation5 + $0xa] sm:$0x3] %vm531_vm2, %v3102_v16  ;;  %5217 = vmatmul.mubr.msk.f32.vlgmr.msra.gmra.mrb[24].mxu0 %vm430_vm3, %v3102_v16 }
0x3ad8   :  { %5546 = vmatpush3.bf16.msra.mxu0 %v5543_v1  ;;  %5246 = vmatprep.mubr.msk.f32.mxu0 %vm2336_vm5, %v6808_v57 }
0x3ad9   :  { %5548 = vmatprep.subr.bf16.mxu0 %v5547_v15 }
0x3adc   :  { %5550 = vmatpush3.bf16.msra.mxu0 %v5547_v15 }
0x3add   :  { %5552 = vmatprep.subr.bf16.mxu0 %v5551_v18 }
0x3ae0   :  { %5554 = vmatpush3.bf16.msra.mxu0 %v5551_v18 }
0x3ae1   :  { %5556 = vmatprep.subr.bf16.mxu0 %v5555_v21 }
0x3ae4   :  { %5558 = vmatpush3.bf16.msra.mxu0 %v5555_v21 }
0x3ae5   :  { %5571 = vmatprep.subr.bf16.mxu0 %v6206_v3 }
0x3ae7   :  { %5247 = vmatmul.mubr.msk.f32.vlgmr.msra.gmra.mrb[26].mxu0 %vm2336_vm5, %v6814_v61 }
0x3ae8   :  { %5279 = vmatprep.mubr.msk.f32.mxu0 %vm6207_vm0, %v6208_v4  ;;  %5573 = vmatpush3.bf16.msra.mxu0 %v6916_v56 }
0x3ae9   :  { %5574 = vmatprep.subr.bf16.mxu0 %v6206_v3 }
0x3aec   :  { %5576 = vmatpush3.bf16.msra.mxu0 %v6920_v38 }
0x3aed   :  { %5583 = vmatprep.subr.bf16.mxu0 %v6206_v3 }
0x3baa   :  { %v3180_v57 = vpop.f32.mrb[24].mxu0 }
0x3bab   :  { %v3184_v26 = vadd.f32 %v3180_v57, %v3107_v24  ;;  %v5218_v28 = vpop.f32.mrb[25].mxu0 }
0x3bad   :  { %5793 = vtanh.f32 %v3184_v26  ;;  %v3185_v46 = vmul.f32 0.5, %v3184_v26 }
0x3baf   :  { %5795 = vtanh.f32 %v3185_v46 }
0x3bb7   :  { %v5794_v29 = vpop.eup %5793 }
0x3bb8   :  { %3192 = vrot.lane.b32.xlu1 %v5794_v29, %s6209_s7 }
0x3bb9   :  { %v5796_v47 = vpop.eup %5795 }
0x3bba   :  { %v5248_v30 = vpop.f32.mrb[26].mxu0  ;;  %v3187_v48 = vadd.f32 1.0, %v5796_v47 }
0x3bbb   :  { %v3407_v45 = vadd.f32 %v5248_v30, %v4701_v2  ;;  %v3401_v27 = vpop.f32.mrb[27].mxu0 }
0x3bbc   :  { %v3402_v32 = vadd.f32 %v4701_v2, %v3401_v27  ;;  %v3188_v49 = vmul.f32 0.5, %v3187_v48 }
0x3bbd   :  { %v3429_v22 = vcombine.high %v3407_v45, %v3407_v45  ;;  %v3436_v35 = vrot.slane %v3407_v45, %v6506_v10  ;;  %4706 = vst.sshfl [vmem:[#allocation4 + $0x8] sm:$0x3 pattern:$0x76325410] %v3407_v45 }
0x3bbe   :  { %v3412_v61 = vcombine.high %v3402_v32, %v3402_v32  ;;  %v3419_v36 = vrot.slane %v3402_v32, %v6506_v10  ;;  %4704 = vst.sshfl [vmem:[#allocation4] sm:$0x3 pattern:$0x76325410] %v3402_v32  ;;  %v3190_v52 = vmul.f32 %v3188_v49, %v6889_v7 }
0x3bbf   :  { %v3443_v37 = vrot.slane %v3429_v22, %v6506_v10  ;;  %v3444_v33 = vcombine.high %v3436_v35, %v3436_v35  ;;  %4707 = vst.sshfl [vmem:[#allocation4 + $0xc] sm:$0x3 pattern:$0x76325410] %v3429_v22 }
0x3bc0   :  { %v3426_v39 = vrot.slane %v3412_v61, %v6506_v10  ;;  %v3427_v41 = vcombine.high %v3419_v36, %v3419_v36  ;;  %4705 = vst.sshfl [vmem:[#allocation4 + $0x4] sm:$0x3 pattern:$0x76325410] %v3412_v61 }
0x3bc1   :  { %v3445_v44 = vcombine.high %v3443_v37, %v3443_v37  ;;  %3459 = vst [vmem:[#allocation4 + $0xa] sm:$0x3] %v3444_v33 }
0x3bc2   :  { %v3428_v42 = vcombine.high %v3426_v39, %v3426_v39  ;;  %3455 = vst [vmem:[#allocation4 + $0x2] sm:$0x3] %v3427_v41 }
0x3bc3   :  { %3461 = vst [vmem:[#allocation4 + $0xe] sm:$0x3] %v3445_v44 }
0x3bc4   :  { %3457 = vst [vmem:[#allocation4 + $0x6] sm:$0x3] %v3428_v42 }
0x3bc6   :  { %v3565_v24 = vld [vmem:[#allocation4 + $0xc] sm:$0x3] }
0x3bc8   :  { %v3672_v44 = vld [vmem:[#allocation4 + $0xa] sm:$0x3] }
0x3bca   :  { %v3462_v6 = vld [vmem:[#allocation4 + $0xe] sm:$0x3] }
0x3c2a   :  { %v3193_v50 = vpop.permute.xlu1 %3192 }
0x3c2b   :  { %v3195_v51 = vmul.f32 %v3193_v50, %v3188_v49 }
0x3c2d   :  { %3197 = vrot.lane.b32.xlu0 %v3195_v51, %s6210_s18 }
0x3c9f   :  { %v3198_v53 = vpop.permute.xlu0 %3197 }
0x3ca0   :  { %v6912_v54 = vadd.f32 %v3198_v53, %v3190_v52 }
0x3ca2   :  { %5797 = vtanh.f32 %v6912_v54 }
0x3cac   :  { %v5798_v23 = vpop.eup %5797 }
0x3cad   :  { %3203 = vrot.lane.b32.xlu1 %v5798_v23, %s6209_s7 }
0x3d1f   :  { %v3204_v60 = vpop.permute.xlu1 %3203 }
0x3d20   :  { %v3206_v62 = vmul.f32 %v3204_v60, %v3188_v49 }
0x3d22   :  { %3208 = vrot.lane.b32.xlu0 %v3206_v62, %s6210_s18 }
0x3d94   :  { %v3209_v34 = vpop.permute.xlu0 %3208 }
0x3d95   :  { %3212 = vst.msk [vmem:[#allocation5 + $0xc] sm:$0x3] %vm531_vm2, %v3209_v34  ;;  %5228 = vmatmul.mubr.msk.f32.vlgmr.msra.gmra.mrb[26].mxu1 %vm430_vm3, %v3209_v34 }
0x3d96   :  { %5561 = vmatpush3.bf16.msra.mxu1 %v6916_v56  ;;  %5257 = vmatprep.mubr.msk.f32.mxu1 %vm6207_vm0, %v6208_v4 }
0x3d97   :  { %5562 = vmatprep.subr.bf16.mxu1 %v6206_v3 }
0x3d9a   :  { %5564 = vmatpush3.bf16.msra.mxu1 %v6920_v38 }
0x3d9b   :  { %5565 = vmatprep.subr.bf16.mxu1 %v6206_v3 }
0x3d9d   :  { %5258 = vmatmul.mubr.f32.vlgmr.msra.gmra.mrb[28].mxu1 %v6208_v4 }
0x3d9e   :  { %5567 = vmatpush3.bf16.msra.mxu1 %v6916_v56  ;;  %5268 = vmatprep.mubr.msk.f32.mxu1 %vm6207_vm0, %v6208_v4 }
0x3d9f   :  { %5568 = vmatprep.subr.bf16.mxu1 %v6206_v3 }
0x3da2   :  { %5570 = vmatpush3.bf16.msra.mxu1 %v6920_v38 }
0x3da3   :  { %5577 = vmatprep.subr.bf16.mxu1 %v6206_v3 }
0x3e68   :  { %v6940_v31 = vpop.f32.mrb[26].mxu1 }
0x3e69   :  { %v5229_v40 = vpop.f32.mrb[27].mxu1 }
0x3e6a   :  { %v3779_v40 = vld [vmem:[#allocation4 + $0x8] sm:$0x3] }
0x3e70   :  { %v3533_v7 = vpop.f32.mrb[28].mxu1 }
0x3e71   :  { %v3537_v8 = vadd.f32 %v3533_v7, %v3462_v6  ;;  %v5259_v9 = vpop.f32.mrb[29].mxu1 }
0x3e73   :  { %5799 = vtanh.f32 %v3537_v8  ;;  %v3538_v11 = vmul.f32 0.5, %v3537_v8 }
0x3e75   :  { %5801 = vtanh.f32 %v3538_v11 }
0x3e7d   :  { %v5800_v1 = vpop.eup %5799 }
0x3e7e   :  { %3545 = vrot.lane.b32.xlu1 %v5800_v1, %s6209_s7 }
0x3e7f   :  { %v5802_v12 = vpop.eup %5801 }
0x3e80   :  { %v3540_v63 = vadd.f32 1.0, %v5802_v12 }
0x3e82   :  { %v3541_v13 = vmul.f32 0.5, %v3540_v63 }
0x3e84   :  { %v3543_v16 = vmul.f32 0.0, %v3541_v13 }
0x3ef0   :  { %v3546_v14 = vpop.permute.xlu1 %3545 }
0x3ef1   :  { %v3548_v15 = vmul.f32 %v3546_v14, %v3541_v13 }
0x3ef3   :  { %3550 = vrot.lane.b32.xlu0 %v3548_v15, %s6210_s18 }
0x3f65   :  { %v3551_v5 = vpop.permute.xlu0 %3550 }
0x3f66   :  { %v3553_v17 = vadd.f32 %v3551_v5, %v3543_v16 }
0x3f68   :  { %5803 = vtanh.f32 %v3553_v17 }
0x3f72   :  { %v5804_v18 = vpop.eup %5803 }
0x3f73   :  { %3556 = vrot.lane.b32.xlu1 %v5804_v18, %s6209_s7 }
0x3fe5   :  { %v3557_v19 = vpop.permute.xlu1 %3556 }
0x3fe6   :  { %v6945_v20 = vmul.f32 %v3557_v19, %v3541_v13 }
0x3fe8   :  { %3570 = vrot.lane.b32.xlu0 %v6945_v20, %s6210_s18 }
0x405a   :  { %v3571_v21 = vpop.permute.xlu0 %3570 }
0x405b   :  { %5269 = vmatmul.mubr.msk.f32.vlgmr.msra.gmra.mrb[30].mxu1 %vm430_vm3, %v3571_v21 }
0x405c   :  { %5579 = vmatpush3.bf16.msra.mxu1 %v6916_v56  ;;  %5290 = vmatprep.mubr.msk.f32.mxu1 %vm6207_vm0, %v6208_v4 }
0x405d   :  { %5580 = vmatprep.subr.bf16.mxu1 %v6206_v3 }
0x4060   :  { %5582 = vmatpush3.bf16.msra.mxu1 %v6920_v38 }
0x4061   :  { %5589 = vmatprep.subr.bf16.mxu1 %v6206_v3 }
0x412e   :  { %v3640_v57 = vpop.f32.mrb[30].mxu1 }
0x412f   :  { %v3644_v26 = vadd.f32 %v3640_v57, %v3565_v24  ;;  %v5270_v28 = vpop.f32.mrb[31].mxu1  ;;  %v3886_v24 = vld [vmem:[#allocation4 + $0x6] sm:$0x3] }
0x4131   :  { %5805 = vtanh.f32 %v3644_v26  ;;  %v3645_v2 = vmul.f32 0.5, %v3644_v26 }
0x4133   :  { %5807 = vtanh.f32 %v3645_v2 }
0x413b   :  { %v5806_v29 = vpop.eup %5805 }
0x413c   :  { %3652 = vrot.lane.b32.xlu1 %v5806_v29, %s6209_s7 }
0x413d   :  { %v5808_v30 = vpop.eup %5807 }
0x413e   :  { %v3647_v45 = vadd.f32 1.0, %v5808_v30 }
0x4140   :  { %v3648_v27 = vmul.f32 0.5, %v3647_v45 }
0x4142   :  { %v3650_v35 = vmul.f32 %v3648_v27, %v3553_v17 }
0x41ae   :  { %v3653_v32 = vpop.permute.xlu1 %3652 }
0x41af   :  { %v3655_v22 = vmul.f32 %v3653_v32, %v3648_v27 }
0x41b1   :  { %3657 = vrot.lane.b32.xlu0 %v3655_v22, %s6210_s18 }
0x4223   :  { %v3658_v61 = vpop.permute.xlu0 %3657 }
0x4224   :  { %v3660_v36 = vadd.f32 %v3658_v61, %v3650_v35 }
0x4226   :  { %5809 = vtanh.f32 %v3660_v36 }
0x4230   :  { %v5810_v37 = vpop.eup %5809 }
0x4231   :  { %3663 = vrot.lane.b32.xlu1 %v5810_v37, %s6209_s7 }
0x42a3   :  { %v3664_v33 = vpop.permute.xlu1 %3663 }
0x42a4   :  { %v6959_v39 = vmul.f32 %v3664_v33, %v3648_v27 }
0x42a6   :  { %3677 = vrot.lane.b32.xlu0 %v6959_v39, %s6210_s18 }
0x4318   :  { %v3678_v41 = vpop.permute.xlu0 %3677 }
0x4319   :  { %5280 = vmatmul.mubr.msk.f32.vlgmr.msra.gmra.mrb[28].mxu0 %vm430_vm3, %v3678_v41 }
0x431a   :  { %5585 = vmatpush3.bf16.msra.mxu0 %v6916_v56  ;;  %5301 = vmatprep.mubr.msk.f32.mxu0 %vm6207_vm0, %v6208_v4 }
0x431b   :  { %5586 = vmatprep.subr.bf16.mxu0 %v6206_v3 }
0x431e   :  { %5588 = vmatpush3.bf16.msra.mxu0 %v6920_v38 }
0x431f   :  { %5595 = vmatprep.subr.bf16.mxu0 %v6206_v3 }
0x43ec   :  { %v3747_v42 = vpop.f32.mrb[28].mxu0 }
0x43ed   :  { %v3751_v46 = vadd.f32 %v3747_v42, %v3672_v44  ;;  %v5281_v47 = vpop.f32.mrb[29].mxu0  ;;  %v3993_v42 = vld [vmem:[#allocation4 + $0x4] sm:$0x3] }
0x43ef   :  { %5811 = vtanh.f32 %v3751_v46  ;;  %v3752_v49 = vmul.f32 0.5, %v3751_v46 }
0x43f1   :  { %5813 = vtanh.f32 %v3752_v49 }
0x43f9   :  { %v5812_v48 = vpop.eup %5811 }
0x43fa   :  { %3759 = vrot.lane.b32.xlu1 %v5812_v48, %s6209_s7 }
0x43fb   :  { %v5814_v50 = vpop.eup %5813 }
0x43fc   :  { %v3754_v51 = vadd.f32 1.0, %v5814_v50 }
0x43fe   :  { %v3755_v52 = vmul.f32 0.5, %v3754_v51 }
0x4400   :  { %v3757_v25 = vmul.f32 %v3755_v52, %v3660_v36 }
0x446c   :  { %v3760_v53 = vpop.permute.xlu1 %3759 }
0x446d   :  { %v3762_v23 = vmul.f32 %v3760_v53, %v3755_v52 }
0x446f   :  { %3764 = vrot.lane.b32.xlu0 %v3762_v23, %s6210_s18 }
0x44e1   :  { %v3765_v55 = vpop.permute.xlu0 %3764 }
0x44e2   :  { %v3767_v58 = vadd.f32 %v3765_v55, %v3757_v25 }
0x44e4   :  { %5815 = vtanh.f32 %v3767_v58 }
0x44ee   :  { %v5816_v59 = vpop.eup %5815 }
0x44ef   :  { %3770 = vrot.lane.b32.xlu1 %v5816_v59, %s6209_s7 }
0x4561   :  { %v3771_v60 = vpop.permute.xlu1 %3770 }
0x4562   :  { %v6973_v62 = vmul.f32 %v3771_v60, %v3755_v52  ;;  %v4100_v60 = vld [vmem:[#allocation4 + $0x2] sm:$0x3] }
0x4564   :  { %3784 = vrot.lane.b32.xlu0 %v6973_v62, %s6210_s18 }
0x45d6   :  { %v3785_v34 = vpop.permute.xlu0 %3784 }
0x45d7   :  { %5291 = vmatmul.mubr.msk.f32.vlgmr.msra.gmra.mrb[32].mxu1 %vm430_vm3, %v3785_v34 }
0x45d8   :  { %5591 = vmatpush3.bf16.msra.mxu1 %v6916_v56  ;;  %5312 = vmatprep.mubr.msk.f32.mxu1 %vm6207_vm0, %v6208_v4 }
0x45d9   :  { %5592 = vmatprep.subr.bf16.mxu1 %v6206_v3 }
0x45dc   :  { %5594 = vmatpush3.bf16.msra.mxu1 %v6920_v38 }
0x45dd   :  { %5601 = vmatprep.subr.bf16.mxu1 %v6206_v3 }
0x46aa   :  { %v3854_v6 = vpop.f32.mrb[32].mxu1 }
0x46ab   :  { %v3858_v7 = vadd.f32 %v3854_v6, %v3779_v40  ;;  %v5292_v8 = vpop.f32.mrb[33].mxu1 }
0x46ad   :  { %5817 = vtanh.f32 %v3858_v7  ;;  %v3859_v1 = vmul.f32 0.5, %v3858_v7 }
0x46af   :  { %5819 = vtanh.f32 %v3859_v1 }
0x46b7   :  { %v5818_v9 = vpop.eup %5817 }
0x46b8   :  { %3866 = vrot.lane.b32.xlu1 %v5818_v9, %s6209_s7 }
0x46b9   :  { %v5820_v11 = vpop.eup %5819 }
0x46ba   :  { %v3861_v12 = vadd.f32 1.0, %v5820_v11 }
0x46bc   :  { %v3862_v63 = vmul.f32 0.5, %v3861_v12 }
0x46be   :  { %v3864_v15 = vmul.f32 %v3862_v63, %v3767_v58 }
0x472a   :  { %v3867_v13 = vpop.permute.xlu1 %3866 }
0x472b   :  { %v3869_v14 = vmul.f32 %v3867_v13, %v3862_v63 }
0x472d   :  { %3871 = vrot.lane.b32.xlu0 %v3869_v14, %s6210_s18 }
0x479f   :  { %v3872_v16 = vpop.permute.xlu0 %3871 }
0x47a0   :  { %v3874_v5 = vadd.f32 %v3872_v16, %v3864_v15  ;;  %v3291_v16 = vadd.f32 %v6940_v31, %v6908_v43 }
0x47a2   :  { %5821 = vtanh.f32 %v3874_v5 }
0x47ac   :  { %v5822_v17 = vpop.eup %5821 }
0x47ad   :  { %3877 = vrot.lane.b32.xlu1 %v5822_v17, %s6209_s7 }
0x481f   :  { %v3878_v18 = vpop.permute.xlu1 %3877 }
0x4820   :  { %v6987_v19 = vmul.f32 %v3878_v18, %v3862_v63  ;;  %v3292_v18 = vmul.f32 0.5, %v3291_v16 }
0x4822   :  { %3891 = vrot.lane.b32.xlu0 %v6987_v19, %s6210_s18 }
0x4894   :  { %v3892_v21 = vpop.permute.xlu0 %3891 }
0x4895   :  { %5302 = vmatmul.mubr.msk.f32.vlgmr.msra.gmra.mrb[30].mxu0 %vm430_vm3, %v3892_v21 }
0x4896   :  { %5597 = vmatpush3.bf16.msra.mxu0 %v6916_v56  ;;  %5323 = vmatprep.mubr.msk.f32.mxu0 %vm6207_vm0, %v6208_v4 }
0x4897   :  { %5598 = vmatprep.subr.bf16.mxu0 %v6206_v3 }
0x489a   :  { %5600 = vmatpush3.bf16.msra.mxu0 %v6920_v38 }
0x4968   :  { %v3961_v57 = vpop.f32.mrb[30].mxu0 }
0x4969   :  { %v3965_v26 = vadd.f32 %v3961_v57, %v3886_v24  ;;  %v5303_v28 = vpop.f32.mrb[31].mxu0 }
0x496b   :  { %5823 = vtanh.f32 %v3965_v26  ;;  %v3966_v2 = vmul.f32 0.5, %v3965_v26 }
0x496d   :  { %5825 = vtanh.f32 %v3966_v2 }
0x4975   :  { %v5824_v29 = vpop.eup %5823 }
0x4976   :  { %3973 = vrot.lane.b32.xlu1 %v5824_v29, %s6209_s7 }
0x4977   :  { %v5826_v30 = vpop.eup %5825 }
0x4978   :  { %v3968_v45 = vadd.f32 1.0, %v5826_v30 }
0x497a   :  { %v3969_v27 = vmul.f32 0.5, %v3968_v45 }
0x497c   :  { %v3971_v35 = vmul.f32 %v3969_v27, %v3874_v5 }
0x49e8   :  { %v3974_v32 = vpop.permute.xlu1 %3973 }
0x49e9   :  { %v3976_v22 = vmul.f32 %v3974_v32, %v3969_v27 }
0x49eb   :  { %3978 = vrot.lane.b32.xlu0 %v3976_v22, %s6210_s18 }
0x4a5d   :  { %v3979_v61 = vpop.permute.xlu0 %3978 }
0x4a5e   :  { %v3981_v36 = vadd.f32 %v3979_v61, %v3971_v35  ;;  %v4207_v35 = vld [vmem:[#allocation4] sm:$0x3] }
0x4a60   :  { %5827 = vtanh.f32 %v3981_v36 }
0x4a6a   :  { %v5828_v37 = vpop.eup %5827 }
0x4a6b   :  { %3984 = vrot.lane.b32.xlu1 %v5828_v37, %s6209_s7 }
0x4add   :  { %v3985_v33 = vpop.permute.xlu1 %3984 }
0x4ade   :  { %v7000_v41 = vmul.f32 %v3985_v33, %v3969_v27 }
0x4ae0   :  { %3998 = vrot.lane.b32.xlu0 %v7000_v41, %s6210_s18 }
0x4b52   :  { %v3999_v44 = vpop.permute.xlu0 %3998 }
0x4b53   :  { %5313 = vmatmul.mubr.msk.f32.vlgmr.msra.gmra.mrb[34].mxu1 %vm430_vm3, %v3999_v44 }
0x4b54   :  { %5603 = vmatpush3.bf16.msra.mxu1 %v6916_v56  ;;  %5334 = vmatprep.mubr.msk.f32.mxu1 %vm6207_vm0, %v6208_v4 }
0x4b55   :  { %5604 = vmatprep.subr.bf16.mxu1 %v6206_v3 }
0x4b58   :  { %5606 = vmatpush3.bf16.msra.mxu1 %v6920_v38 }
0x4c26   :  { %v4068_v46 = vpop.f32.mrb[34].mxu1 }
0x4c27   :  { %v4072_v47 = vadd.f32 %v4068_v46, %v3993_v42  ;;  %v5314_v48 = vpop.f32.mrb[35].mxu1 }
0x4c29   :  { %5829 = vtanh.f32 %v4072_v47  ;;  %v4073_v50 = vmul.f32 0.5, %v4072_v47 }
0x4c2b   :  { %5831 = vtanh.f32 %v4073_v50 }
0x4c33   :  { %v5830_v49 = vpop.eup %5829 }
0x4c34   :  { %4080 = vrot.lane.b32.xlu1 %v5830_v49, %s6209_s7 }
0x4c35   :  { %v5832_v51 = vpop.eup %5831 }
0x4c36   :  { %v4075_v52 = vadd.f32 1.0, %v5832_v51 }
0x4c38   :  { %v4076_v56 = vmul.f32 0.5, %v4075_v52 }
0x4c3a   :  { %v4078_v3 = vmul.f32 %v4076_v56, %v3981_v36 }
0x4ca6   :  { %v4081_v53 = vpop.permute.xlu1 %4080 }
0x4ca7   :  { %v4083_v23 = vmul.f32 %v4081_v53, %v4076_v56 }
0x4ca9   :  { %4085 = vrot.lane.b32.xlu0 %v4083_v23, %s6210_s18  ;;  %v4322_v23 = vld [vmem:[%s7126_s13] sm:$0xff] }
0x4d1b   :  { %v4086_v4 = vpop.permute.xlu0 %4085 }
0x4d1c   :  { %v4088_v38 = vadd.f32 %v4086_v4, %v4078_v3  ;;  %v4323_v3 = vld [vmem:[%s7126_s13 + $0x8] sm:$0xff] }
0x4d1d   :  { %v5607_v4 = vpack.c.bf16 %v4323_v3, %v4322_v23 }
0x4d1e   :  { %5833 = vtanh.f32 %v4088_v38 }
0x4d1f   :  { %5608 = vmatprep.subr.bf16.mxu0 %v5607_v4 }
0x4d28   :  { %v5834_v25 = vpop.eup %5833 }
0x4d29   :  { %4091 = vrot.lane.b32.xlu1 %v5834_v25, %s6209_s7  ;;  %v4327_v25 = vld [vmem:[%s7126_s13 + $0x28] sm:$0xff] }
0x4d9b   :  { %v4092_v55 = vpop.permute.xlu1 %4091 }
0x4d9c   :  { %v4094_v58 = vmul.f32 %v4092_v55, %v4076_v56 }
0x4d9e   :  { %4105 = vrot.lane.b32.xlu0 %v4094_v58, %s6210_s18 }
0x4e10   :  { %v4106_v59 = vpop.permute.xlu0 %4105 }
0x4e11   :  { %5324 = vmatmul.mubr.msk.f32.vlgmr.msra.gmra.mrb[32].mxu0 %vm430_vm3, %v4106_v59  ;;  %v4329_v59 = vld [vmem:[%s7126_s13 + $0x38] sm:$0xff] }
0x4e12   :  { %5610 = vmatpush3.bf16.msra.mxu0 %v5607_v4 }
0x4ee4   :  { %v4175_v34 = vpop.f32.mrb[32].mxu0 }
0x4ee5   :  { %v4179_v40 = vadd.f32 %v4175_v34, %v4100_v60  ;;  %v5325_v6 = vpop.f32.mrb[33].mxu0 }
0x4ee7   :  { %5835 = vtanh.f32 %v4179_v40  ;;  %v4180_v8 = vmul.f32 0.5, %v4179_v40 }
0x4ee9   :  { %5837 = vtanh.f32 %v4180_v8 }
0x4ef1   :  { %v5836_v7 = vpop.eup %5835 }
0x4ef2   :  { %4187 = vrot.lane.b32.xlu1 %v5836_v7, %s6209_s7 }
0x4ef3   :  { %v5838_v9 = vpop.eup %5837 }
0x4ef4   :  { %v4182_v1 = vadd.f32 1.0, %v5838_v9 }
0x4ef6   :  { %v4183_v11 = vmul.f32 0.5, %v4182_v1 }
0x4ef8   :  { %v4185_v13 = vmul.f32 %v4183_v11, %v4088_v38  ;;  %v4326_v38 = vld [vmem:[%s7126_s13 + $0x20] sm:$0xff] }
0x4ef9   :  { %v5615_v55 = vpack.c.bf16 %v4327_v25, %v4326_v38 }
0x4f64   :  { %v4188_v12 = vpop.permute.xlu1 %4187 }
0x4f65   :  { %v4190_v63 = vmul.f32 %v4188_v12, %v4183_v11 }
0x4f67   :  { %4192 = vrot.lane.b32.xlu0 %v4190_v63, %s6210_s18 }
0x4fd9   :  { %v4193_v14 = vpop.permute.xlu0 %4192 }
0x4fda   :  { %v4195_v15 = vadd.f32 %v4193_v14, %v4185_v13 }
0x4fdc   :  { %5839 = vtanh.f32 %v4195_v15 }
0x4fdd   :  { %5841 = vtanh.f32 %v3291_v16 }
0x4fde   :  { %5843 = vtanh.f32 %v3292_v18 }
0x4fe6   :  { %v5840_v5 = vpop.eup %5839 }
0x4fe7   :  { %4198 = vrot.lane.b32.xlu1 %v5840_v5, %s6209_s7  ;;  %v5842_v17 = vpop.eup %5841 }
0x4fe8   :  { %v5844_v21 = vpop.eup %5843 }
0x4fe9   :  { %v3294_v24 = vadd.f32 1.0, %v5844_v21 }
0x4feb   :  { %3299 = vrot.lane.b32.xlu1 %v5842_v17, %s6209_s7  ;;  %v3295_v28 = vmul.f32 0.5, %v3294_v24 }
0x4fed   :  { %v3297_v31 = vmul.f32 %v3295_v28, %v6912_v54 }
0x5059   :  { %v4199_v57 = vpop.permute.xlu1 %4198 }
0x505a   :  { %v4201_v26 = vmul.f32 %v4199_v57, %v4183_v11 }
0x505c   :  { %4212 = vrot.lane.b32.xlu0 %v4201_v26, %s6210_s18 }
0x505d   :  { %v3300_v29 = vpop.permute.xlu1 %3299 }
0x505e   :  { %v3302_v2 = vmul.f32 %v3300_v29, %v3295_v28 }
0x5060   :  { %3304 = vrot.lane.b32.xlu1 %v3302_v2, %s6210_s18 }
0x50ce   :  { %v4213_v43 = vpop.permute.xlu0 %4212 }
0x50cf   :  { %5335 = vmatmul.mubr.msk.f32.vlgmr.msra.gmra.mrb[36].mxu1 %vm430_vm3, %v4213_v43 }
0x50d2   :  { %v3305_v30 = vpop.permute.xlu1 %3304 }
0x50d3   :  { %v3307_v45 = vadd.f32 %v3305_v30, %v3297_v31  ;;  %v4476_v31 = vld [vmem:[#allocation25] sm:$0xff]  ;;  %v4477_v30 = vld [vmem:[#allocation25 + $0x8] sm:$0xff] }
0x50d5   :  { %5845 = vtanh.f32 %v3307_v45  ;;  %v5623_v45 = vpack.c.bf16 %v4477_v30, %v4476_v31 }
0x50d7   :  { %5624 = vmatprep.subr.bf16.mxu1 %v5623_v45 }
0x50d8   :  { %5626 = vmatpush3.bf16.msra.mxu1 %v5623_v45 }
0x50df   :  { %v5846_v27 = vpop.eup %5845 }
0x50e0   :  { %3310 = vrot.lane.b32.xlu1 %v5846_v27, %s6209_s7  ;;  %v4478_v27 = vld [vmem:[#allocation25 + $0x10] sm:$0xff] }
0x5152   :  { %v3311_v32 = vpop.permute.xlu1 %3310 }
0x5153   :  { %v3313_v22 = vmul.f32 %v3311_v32, %v3295_v28  ;;  %v4479_v32 = vld [vmem:[#allocation25 + $0x18] sm:$0xff] }
0x5155   :  { %3315 = vrot.lane.b32.xlu1 %v3313_v22, %s6210_s18  ;;  %v4480_v22 = vld [vmem:[#allocation25 + $0x20] sm:$0xff] }
0x5159   :  { %4096 = vrot.lane.b32.xlu1 %v4094_v58, %s6209_s7  ;;  %v4328_v58 = vld [vmem:[%s7126_s13 + $0x30] sm:$0xff] }
0x515a   :  { %v5619_v60 = vpack.c.bf16 %v4329_v59, %v4328_v58 }
0x515d   :  { %3668 = vrot.lane.b32.xlu1 %v6959_v39, %s6209_s7 }
0x51a2   :  { %v4282_v61 = vpop.f32.mrb[36].mxu1 }
0x51a3   :  { %v4286_v36 = vadd.f32 %v4282_v61, %v4207_v35  ;;  %v5336_v37 = vpop.f32.mrb[37].mxu1  ;;  %v5627_v35 = vpack.c.bf16 %v4479_v32, %v4478_v27  ;;  %v4481_v61 = vld [vmem:[#allocation25 + $0x28] sm:$0xff] }
0x51a4   :  { %v4482_v37 = vld [vmem:[#allocation25 + $0x30] sm:$0xff] }
0x51a5   :  { %5847 = vtanh.f32 %v4286_v36  ;;  %v4287_v46 = vmul.f32 0.5, %v4286_v36  ;;  %5628 = vmatprep.subr.bf16.mxu1 %v5627_v35  ;;  %v5631_v36 = vpack.c.bf16 %v4481_v61, %v4480_v22 }
0x51a6   :  { %5630 = vmatpush3.bf16.msra.mxu1 %v5627_v35 }
0x51a7   :  { %5849 = vtanh.f32 %v4287_v46  ;;  %5632 = vmatprep.subr.bf16.mxu1 %v5631_v36 }
0x51aa   :  { %5634 = vmatpush3.bf16.msra.mxu1 %v5631_v36 }
0x51af   :  { %v5848_v54 = vpop.eup %5847 }
0x51b0   :  { %4294 = vrot.lane.b32.xlu0 %v5848_v54, %s6209_s7  ;;  %v4483_v54 = vld [vmem:[#allocation25 + $0x38] sm:$0xff] }
0x51b1   :  { %v5850_v39 = vpop.eup %5849 }
0x51b2   :  { %v4289_v47 = vadd.f32 1.0, %v5850_v39 }
0x51b4   :  { %v4290_v48 = vmul.f32 0.5, %v4289_v47 }
0x51b6   :  { %v4292_v51 = vmul.f32 %v4290_v48, %v4195_v15 }
0x51c7   :  { %v3316_v33 = vpop.permute.xlu1 %3315 }
0x51c8   :  { %3319 = vst.msk [vmem:[#allocation5 + $0xe] sm:$0x3] %vm531_vm2, %v3316_v33  ;;  %v5635_v33 = vpack.c.bf16 %v4483_v54, %v4482_v37 }
0x51ca   :  { %5636 = vmatprep.subr.bf16.mxu1 %v5635_v33 }
0x51cb   :  { %v4097_v44 = vpop.permute.xlu1 %4096  ;;  %5638 = vmatpush3.bf16.msra.mxu1 %v5635_v33 }
0x51cc   :  { %4099 = vst.msk [vmem:[#allocation5 + $0x4] sm:$0x3] %vm1520_vm4, %v4097_v44  ;;  %v4715_v44 = vld [vmem:[#allocation23] ss:$0 sm:$0xff] }
0x51cf   :  { %v3669_v42 = vpop.permute.xlu1 %3668 }
0x51d0   :  { %3671 = vst.msk [vmem:[#allocation5 + $0xc] sm:$0x3] %vm1520_vm4, %v3669_v42 }
0x51d3   :  { %v4316_v63 = vld [vmem:[#allocation5 + $0x4] sm:$0x3] }
0x51d7   :  { %v4320_v5 = vld [vmem:[#allocation5 + $0xc] sm:$0x3] }
0x5222   :  { %v4295_v49 = vpop.permute.xlu0 %4294 }
0x5223   :  { %v4297_v50 = vmul.f32 %v4295_v49, %v4290_v48 }
0x5225   :  { %4299 = vrot.lane.b32.xlu0 %v4297_v50, %s6210_s18 }
0x5297   :  { %v4300_v52 = vpop.permute.xlu0 %4299 }
0x5298   :  { %v4302_v56 = vadd.f32 %v4300_v52, %v4292_v51 }
0x529a   :  { %5851 = vtanh.f32 %v4302_v56 }
0x52a4   :  { %v5852_v53 = vpop.eup %5851 }
0x52a5   :  { %4305 = vrot.lane.b32.xlu0 %v5852_v53, %s6209_s7 }
0x52a9   :  { %3989 = vrot.lane.b32.xlu0 %v7000_v41, %s6209_s7  ;;  %v4324_v41 = vld [vmem:[%s7126_s13 + $0x10] sm:$0xff] }
0x52ad   :  { %4203 = vrot.lane.b32.xlu0 %v4201_v26, %s6209_s7 }
0x52b1   :  { %3561 = vrot.lane.b32.xlu0 %v6945_v20, %s6209_s7  ;;  %v4325_v20 = vld [vmem:[%s7126_s13 + $0x18] sm:$0xff] }
0x52b5   :  { %3775 = vrot.lane.b32.xlu0 %v6973_v62, %s6209_s7  ;;  %v5611_v62 = vpack.c.bf16 %v4325_v20, %v4324_v41 }
0x52b7   :  { %5612 = vmatprep.subr.bf16.mxu0 %v5611_v62 }
0x52b8   :  { %5614 = vmatpush3.bf16.msra.mxu0 %v5611_v62 }
0x52b9   :  { %5616 = vmatprep.subr.bf16.mxu0 %v5615_v55 }
0x52bc   :  { %5618 = vmatpush3.bf16.msra.mxu0 %v5615_v55 }
0x52bd   :  { %5620 = vmatprep.subr.bf16.mxu0 %v5619_v60 }
0x52c0   :  { %5622 = vmatpush3.bf16.msra.mxu0 %v5619_v60  ;;  %v4573_v60 = vand.u32 127, %v264_v0 }
0x52c2   :  { %vm4574_vm6 = vcmp.lt.s32.totalorder %v4573_v60, 43 }
0x5317   :  { %v4306_v34 = vpop.permute.xlu0 %4305 }
0x5318   :  { %v4308_v40 = vmul.f32 %v4306_v34, %v4290_v48  ;;  %v4718_v34 = vld [vmem:[#allocation26] ss:$0 sm:$0xff] }
0x531a   :  { %4310 = vrot.lane.b32.xlu1 %v4308_v40, %s6209_s7 }
0x531b   :  { %v3990_v6 = vpop.permute.xlu0 %3989 }
0x531c   :  { %3992 = vst.msk [vmem:[#allocation5 + $0x6] sm:$0x3] %vm1520_vm4, %v3990_v6 }
0x531e   :  { %3882 = vrot.lane.b32.xlu1 %v6987_v19, %s6209_s7 }
0x531f   :  { %v4204_v7 = vpop.permute.xlu0 %4203 }
0x5320   :  { %4206 = vst.msk [vmem:[#allocation5 + $0x2] sm:$0x3] %vm1520_vm4, %v4204_v7 }
0x5323   :  { %v3562_v8 = vpop.permute.xlu0 %3561  ;;  %v4317_v12 = vld [vmem:[#allocation5 + $0x6] sm:$0x3] }
0x5324   :  { %3564 = vst.msk [vmem:[#allocation5 + $0xe] sm:$0x3] %vm1520_vm4, %v3562_v8  ;;  %v4346_v13 = vcombine.low %v4316_v63, %v4317_v12 }
0x5326   :  { %v4360_v18 = vrot.slane %v4346_v13, %v6506_v10 }
0x5327   :  { %v3776_v9 = vpop.permute.xlu0 %3775  ;;  %v4315_v19 = vld [vmem:[#allocation5 + $0x2] sm:$0x3] }
0x5328   :  { %3778 = vst.msk [vmem:[#allocation5 + $0xa] sm:$0x3] %vm1520_vm4, %v3776_v9 }
0x532b   :  { %v4321_v15 = vld [vmem:[#allocation5 + $0xe] sm:$0x3] }
0x532c   :  { %v4363_v21 = vcombine.low %v4320_v5, %v4321_v15 }
0x532e   :  { %v4377_v2 = vrot.slane %v4363_v21, %v6506_v10 }
0x532f   :  { %v4319_v57 = vld [vmem:[#allocation5 + $0xa] sm:$0x3] }
0x538c   :  { %v4311_v1 = vpop.permute.xlu1 %4310 }
0x538d   :  { %4313 = vst.msk [vmem:[#allocation5] sm:$0x3] %vm1520_vm4, %v4311_v1 }
0x5390   :  { %v3883_v11 = vpop.permute.xlu1 %3882 }
0x5391   :  { %3885 = vst.msk [vmem:[#allocation5 + $0x8] sm:$0x3] %vm1520_vm4, %v3883_v11 }
0x5394   :  { %v4314_v14 = vld [vmem:[#allocation5] sm:$0x3] }
0x5395   :  { %v4345_v16 = vcombine.low %v4314_v14, %v4315_v19 }
0x5397   :  { %v4353_v17 = vrot.slane %v4345_v16, %v6506_v10 }
0x5398   :  { %v4318_v24 = vld [vmem:[#allocation5 + $0x8] sm:$0x3] }
0x5399   :  { %v4361_v26 = vcombine.low %v4353_v17, %v4360_v18  ;;  %v4362_v28 = vcombine.low %v4318_v24, %v4319_v57 }
0x539b   :  { %5353 = vmatprep.mubr.msk.f32.mxu0 %vm2336_vm5, %v4361_v26  ;;  %v4370_v29 = vrot.slane %v4362_v28, %v6506_v10 }
0x539d   :  { %v4378_v43 = vcombine.low %v4370_v29, %v4377_v2 }
0x539f   :  { %5354 = vmatmul.mubr.msk.f32.vlgmr.msra.gmra.mrb[34].mxu0 %vm2336_vm5, %v4378_v43 }
0x5472   :  { %v5355_v42 = vpop.f32.mrb[34].mxu0 }
0x5473   :  { %v4455_v46 = vadd.f32 %v5355_v42, %v4715_v44  ;;  %v4449_v39 = vpop.f32.mrb[35].mxu0 }
0x5474   :  { %v4450_v47 = vadd.f32 %v4715_v44, %v4449_v39 }
0x5475   :  { %v4461_v48 = vmul.f32 0.044715, %v4455_v46  ;;  %v4459_v55 = vmul.f32 0.5, %v4455_v46 }
0x5476   :  { %v4460_v49 = vmul.f32 0.044715, %v4450_v47  ;;  %v4458_v38 = vmul.f32 0.5, %v4450_v47 }
0x5477   :  { %v4463_v50 = vmul.f32 %v4461_v48, %v4455_v46 }
0x5478   :  { %v4462_v51 = vmul.f32 %v4460_v49, %v4450_v47 }
0x5479   :  { %v4465_v52 = vmul.f32 %v4463_v50, %v4455_v46 }
0x547a   :  { %v4464_v56 = vmul.f32 %v4462_v51, %v4450_v47 }
0x547b   :  { %v4467_v53 = vadd.f32 %v4465_v52, %v4455_v46 }
0x547c   :  { %v4466_v23 = vadd.f32 %v4464_v56, %v4450_v47 }
0x547d   :  { %v4469_v3 = vmul.f32 0.7978846, %v4467_v53 }
0x547e   :  { %v4468_v4 = vmul.f32 0.7978846, %v4466_v23 }
0x547f   :  { %5853 = vtanh.f32 %v4469_v3 }
0x5480   :  { %5855 = vtanh.f32 %v4468_v4 }
0x5489   :  { %v5854_v41 = vpop.eup %5853 }
0x548a   :  { %v5856_v20 = vpop.eup %5855  ;;  %v4473_v62 = vadd.f32 1.0, %v5854_v41 }
0x548b   :  { %v4472_v25 = vadd.f32 1.0, %v5856_v20 }
0x548c   :  { %v4475_v59 = vmul.f32 %v4473_v62, %v4459_v55 }
0x548d   :  { %v4474_v58 = vmul.f32 %v4472_v25, %v4458_v38 }
0x548f   :  { %5372 = vmatprep.mubr.msk.f32.mxu1 %vm2336_vm5, %v4474_v58 }
0x5490   :  { %5373 = vmatmul.mubr.msk.f32.vlgmr.msra.gmra.mrb[38].mxu1 %vm2336_vm5, %v4475_v59 }
0x5563   :  { %v5374_v40 = vpop.f32.mrb[38].mxu1 }
0x5564   :  { %v4569_v6 = vadd.f32 %v5374_v40, %v4718_v34  ;;  %v4563_v7 = vpop.f32.mrb[39].mxu1 }
0x5565   :  { %v4564_v8 = vadd.f32 %v4718_v34, %v4563_v7 }
0x5566   :  { %v4576_v9 = vsel %vm4574_vm6, %v4569_v6, -1e+30 }
0x5567   :  { %4579 = vmax.xlane.f32.xlu1 %v4576_v9  ;;  %v4575_v1 = vsel %vm4574_vm6, %v4564_v8, -1e+30 }
0x5568   :  { %4577 = vmax.xlane.f32.xlu0 %v4575_v1 }
0x55f4   :  { %v4580_v11 = vpop.xlane.xlu1 %4579 }
0x55f5   :  { %v4578_v12 = vpop.xlane.xlu0 %4577  ;;  %v4582_v63 = vsub.f32 %v4576_v9, %v4580_v11 }
0x55f6   :  { %v4581_v13 = vsub.f32 %v4575_v1, %v4578_v12 }
0x55f7   :  { %v4585_v19 = vmul.f32 1.442695, %v4582_v63 }
0x55f8   :  { %v4583_v14 = vmul.f32 1.442695, %v4581_v13 }
0x55fa   :  { %5857 = vpow2.f32 %v4583_v14 }
0x55fb   :  { %5859 = vpow2.f32 %v4585_v19 }
0x5604   :  { %v5858_v15 = vpop.eup %5857 }
0x5605   :  { %4587 = vadd.xlane.f32.xlu0 %v5858_v15  ;;  %v5860_v0 = vpop.eup %5859 }
0x5609   :  { %4589 = vadd.xlane.f32.xlu0 %v5860_v0 }
0x5692   :  { %v4588_v16 = vpop.xlane.xlu0 %4587 }
0x5693   :  { %5861 = vrcp.f32 %v4588_v16 }
0x5696   :  { %v4590_v5 = vpop.xlane.xlu0 %4589 }
0x5697   :  { %5863 = vrcp.f32 %v4590_v5 }
0x569d   :  { %v5862_v17 = vpop.eup %5861 }
0x569e   :  { %v4593_v18 = vmul.f32 %v5862_v17, %v5858_v15 }
0x56a0   :  { %v4597_v21 = vcombine.high %v4593_v18, %v4593_v18  ;;  %v4604_v24 = vrot.slane %v4593_v18, %v6506_v10  ;;  %4721 = vst.sshfl [vmem:[%s7130_s17] sm:$0x3 pattern:$0x76325410] %v4593_v18 }
0x56a1   :  { %v5864_v57 = vpop.eup %5863 }
0x56a2   :  { %v4611_v26 = vrot.slane %v4597_v21, %v6506_v10  ;;  %v4612_v28 = vcombine.high %v4604_v24, %v4604_v24  ;;  %4722 = vst.sshfl [vmem:[%s7130_s17 + $0x4] sm:$0x3 pattern:$0x76325410] %v4597_v21  ;;  %v4594_v29 = vmul.f32 %v5864_v57, %v5860_v0 }
0x56a4   :  { %v4613_v2 = vcombine.high %v4611_v26, %v4611_v26  ;;  %4640 = vst [vmem:[%s7130_s17 + $0x2] sm:$0x3] %v4612_v28  ;;  %v4614_v43 = vcombine.high %v4594_v29, %v4594_v29  ;;  %v4621_v31 = vrot.slane %v4594_v29, %v6506_v10  ;;  %4723 = vst.sshfl [vmem:[%s7130_s17 + $0x8] sm:$0x3 pattern:$0x76325410] %v4594_v29 }
0x56a6   :  { %4642 = vst [vmem:[%s7130_s17 + $0x6] sm:$0x3] %v4613_v2  ;;  %v4628_v30 = vrot.slane %v4614_v43, %v6506_v10  ;;  %v4629_v45 = vcombine.high %v4621_v31, %v4621_v31  ;;  %4724 = vst.sshfl [vmem:[%s7130_s17 + $0xc] sm:$0x3 pattern:$0x76325410] %v4614_v43 }
0x56a8   :  { %v4630_v27 = vcombine.high %v4628_v30, %v4628_v30  ;;  %4644 = vst [vmem:[%s7130_s17 + $0xa] sm:$0x3] %v4629_v45 }
0x56aa   :  { %4646 = vst [vmem:[%s7130_s17 + $0xe] sm:$0x3] %v4630_v27 }
0x56ab   :  { %4651 = vsyncpa [#allocation7], 1 }
0x56ac   :  { %4652 = vsyncpa [#allocation9], 1 }
0x56ad   :  { %4653 = vsyncpa [#allocation12], 1 }
0x56ae   :  { %4654 = vsyncpa [#allocation15], 1 }
0x56af   :  { %4655 = vsyncpa [#allocation18], 1 }
0x56b0   :  { %4656 = vsyncpa [#allocation21], 1 }
0x56b1   :  { %4657 = vsyncpa [#allocation24], 1 }
0x56b2   :  { %4658 = vsyncpa [#allocation27], 1 }

</bundles_post_ra>
